<compile_context>
chip_gen: v7x
topology: tpu7x:2x2x1
jax: 0.10.0
libtpu: 0.0.40
codegen_flags: <defaults>
</compile_context>

<pallas_src>
import functools

import jax
import jax.numpy as jnp
from jax import lax
from jax.experimental import pallas as pl
from jax.experimental.pallas import tpu as pltpu  # noqa: F401  (TPU backend registration)

# ---------------- synthetic model dims (small) ----------------
B = 2
H_SP = 4
W_SP = 4
L = H_SP * W_SP            # 16 spatial tokens per frame
BL = B * L                 # 32 stacked tokens (both batches in one slab)
D = 32                     # d_model
NH = 4                     # attention heads
DH = D // NH               # 8
HALF = DH // 2
MLP_HID = 2 * D            # 64

D_INNER = 2 * D            # 64  (mamba expand = 2)
D_STATE = 16
HEADDIM = 16
NH_M = D_INNER // HEADDIM  # 4 mamba heads
D_CONV = 4
CONV_CH = D_INNER + 2 * D_STATE               # 96
D_IN_PROJ = 2 * D_INNER + 2 * D_STATE + NH_M  # 164

EPS = 1e-5

# ---------------- packed small-parameter layout (rows of a (PK_ROWS,128) f32 array) ----
R_LN1G, R_LN1B, R_BQKV, R_BO = 0, 1, 2, 3
R_LN2G, R_LN2B, R_BMLP1, R_BMLP2 = 4, 5, 6, 7
R_RMSG, R_CONVB, R_DTB, R_ANEG, R_DKEXP, R_GATEG = 8, 9, 10, 11, 12, 13
R_CONVW = 14                         # D_CONV rows,   width CONV_CH
R_EXPAND = R_CONVW + D_CONV          # NH_M rows,     width D_INNER (head->channel expand)
R_COS = 24                           # BL rows,       width D
R_SIN = R_COS + BL                   # BL rows,       width D
R_TRI = R_SIN + BL                   # BL rows,       width BL  (block-diag causal, incl.)
R_ABIAS = R_TRI + BL                 # BL rows,       width BL  (0 / -1e30 batch mask)
PK_ROWS = R_ABIAS + BL               # 152
PK_COLS = 128

# packed big matrices: column offsets are 128-lane (vreg) aligned
C_WQKV, C_WO, C_WMLP1, C_WIN = 0, 128, 256, 384
WA_COLS = 640
C_WMLP2, C_WOUT = 0, 128
WB_ROWS = MLP_HID            # == D_INNER == 64 for this config
WB_COLS = 256


# ============================================================
# in-kernel helpers (pure jnp on values, Mosaic-lowerable)
# ============================================================

def _layernorm(x, g, b):
    mu = jnp.mean(x, axis=-1, keepdims=True)
    xc = x - mu
    var = jnp.mean(xc * xc, axis=-1, keepdims=True)
    return xc * lax.rsqrt(var + EPS) * g + b


def _rmsnorm(x, g):
    var = jnp.mean(x * x, axis=-1, keepdims=True)
    return x * lax.rsqrt(var + EPS) * g


def _sigmoid(x):
    return 1.0 / (1.0 + jnp.exp(-x))


def _silu(x):
    return x * _sigmoid(x)


def _gelu_tanh(x):
    c = 0.7978845608028654  # sqrt(2/pi)
    return 0.5 * x * (1.0 + jnp.tanh(c * (x + 0.044715 * x * x * x)))


def _softplus(x):
    return jnp.maximum(x, 0.0) + jnp.log(1.0 + jnp.exp(-jnp.abs(x)))


def _rotate_half_heads(t):
    # per-head-block rotate_half on the full (BL, D) slab via static slices (no pltpu.roll)
    pieces = []
    for hh in range(NH):
        lo = t[:, hh * DH:hh * DH + HALF]
        hi = t[:, hh * DH + HALF:(hh + 1) * DH]
        pieces.append(-hi)
        pieces.append(lo)
    return jnp.concatenate(pieces, axis=1)


# ============================================================
# fused TimeSpaceBlock kernel (single invocation, both batches stacked)
# ============================================================

def _timespace_kernel(x_ref, pk_ref, wa_ref, wb_ref, o_ref):
    f32 = jnp.float32
    x = x_ref[...].astype(f32)                                    # (BL, D)

    # ---- packed small params (one DMA; static row/lane slices) ----
    ln1g = pk_ref[R_LN1G:R_LN1G + 1, 0:D]
    ln1b = pk_ref[R_LN1B:R_LN1B + 1, 0:D]
    bqkv = pk_ref[R_BQKV:R_BQKV + 1, 0:3 * D]
    bo = pk_ref[R_BO:R_BO + 1, 0:D]
    ln2g = pk_ref[R_LN2G:R_LN2G + 1, 0:D]
    ln2b = pk_ref[R_LN2B:R_LN2B + 1, 0:D]
    bm1 = pk_ref[R_BMLP1:R_BMLP1 + 1, 0:MLP_HID]
    bm2 = pk_ref[R_BMLP2:R_BMLP2 + 1, 0:D]
    rmsg = pk_ref[R_RMSG:R_RMSG + 1, 0:D]
    convb = pk_ref[R_CONVB:R_CONVB + 1, 0:CONV_CH]
    dtb = pk_ref[R_DTB:R_DTB + 1, 0:NH_M]
    a_vals = pk_ref[R_ANEG:R_ANEG + 1, 0:NH_M]                    # negative decay rates
    dk_exp = pk_ref[R_DKEXP:R_DKEXP + 1, 0:D_INNER]               # D skip, head-expanded
    gate = pk_ref[R_GATEG:R_GATEG + 1, 0:D_INNER]
    cw = pk_ref[R_CONVW:R_CONVW + D_CONV, 0:CONV_CH]              # (D_CONV, CONV_CH)
    e_mat = pk_ref[R_EXPAND:R_EXPAND + NH_M, 0:D_INNER]           # (NH_M, D_INNER) 0/1
    cos = pk_ref[R_COS:R_COS + BL, 0:D]
    sin = pk_ref[R_SIN:R_SIN + BL, 0:D]
    tri = pk_ref[R_TRI:R_TRI + BL, 0:BL]                          # causal & same-frame
    abias = pk_ref[R_ABIAS:R_ABIAS + BL, 0:BL]                    # 0 / -1e30 frame mask

    # ---------------- space: pre-LN MHSA with RoPE ----------------
    h = _layernorm(x, ln1g, ln1b)
    qkv = jnp.dot(h, wa_ref[:, C_WQKV:C_WQKV + 3 * D],
                  preferred_element_type=f32) + bqkv               # (BL, 3D)
    q_sl = qkv[:, 0:D]
    k_sl = qkv[:, D:2 * D]
    v_sl = qkv[:, 2 * D:3 * D]
    # RoPE once on the full-width slabs (instead of per head)
    q_sl = q_sl * cos + _rotate_half_heads(q_sl) * sin
    k_sl = k_sl * cos + _rotate_half_heads(k_sl) * sin

    scale = 1.0 / float(DH) ** 0.5
    o_heads = []
    for hh in range(NH):                                           # static unroll
        q = q_sl[:, hh * DH:(hh + 1) * DH]
        k = k_sl[:, hh * DH:(hh + 1) * DH]
        v = v_sl[:, hh * DH:(hh + 1) * DH]
        s = lax.dot_general(q, k, (((1,), (1,)), ((), ())),
                            preferred_element_type=f32) * scale + abias
        s = s - jnp.max(s, axis=-1, keepdims=True)
        p = jnp.exp(s)
        p = p * pl.reciprocal(jnp.sum(p, axis=-1, keepdims=True), approx=True)
        o_heads.append(jnp.dot(p, v, preferred_element_type=f32))  # (BL, DH)
    o_all = jnp.concatenate(o_heads, axis=1)                       # (BL, D)
    x = x + jnp.dot(o_all, wa_ref[:, C_WO:C_WO + D],
                    preferred_element_type=f32) + bo

    h2 = _layernorm(x, ln2g, ln2b)
    m = _gelu_tanh(jnp.dot(h2, wa_ref[:, C_WMLP1:C_WMLP1 + MLP_HID],
                           preferred_element_type=f32) + bm1)
    x = x + jnp.dot(m, wb_ref[0:MLP_HID, C_WMLP2:C_WMLP2 + D],
                    preferred_element_type=f32) + bm2

    # ---------------- time: Mamba2 (prefill, SSD matmul form) ----------------
    hm = _rmsnorm(x, rmsg)
    zxbcdt = jnp.dot(hm, wa_ref[:, C_WIN:C_WIN + D_IN_PROJ],
                     preferred_element_type=f32)                   # (BL, D_IN_PROJ)
    z = zxbcdt[:, 0:D_INNER]
    xbc = zxbcdt[:, D_INNER:D_INNER + CONV_CH]
    dt_raw = zxbcdt[:, D_INNER + CONV_CH:D_IN_PROJ]

    # depthwise causal conv1d over tokens + SiLU (per-frame: no cross-batch leakage)
    acc = xbc * cw[D_CONV - 1:D_CONV, :]                           # tap with zero delay
    for kt in range(D_CONV - 1):
        shift = D_CONV - 1 - kt
        pieces = []
        for b in range(B):
            pieces.append(jnp.zeros((shift, CONV_CH), f32))
            pieces.append(xbc[b * L:(b + 1) * L - shift, :])
        xs = jnp.concatenate(pieces, axis=0)
        acc = acc + xs * cw[kt:kt + 1, :]
    xbc = _silu(acc + convb)

    x_ssm = xbc[:, 0:D_INNER]
    bmat = xbc[:, D_INNER:D_INNER + D_STATE]
    cmat = xbc[:, D_INNER + D_STATE:CONV_CH]

    # selective SSM, diagonal-scaling form (shared across all heads, no head loop):
    #   y_t = exp(a*cs_t) * sum_{s<=t} (C_t.B_s) * exp(-a*cs_s) * dt_s * x_s  +  D * x_t
    # with cs = per-frame inclusive cumsum of dt (one masked matmul).
    cb = lax.dot_general(cmat, bmat, (((1,), (1,)), ((), ())),
                         preferred_element_type=f32)               # (BL, BL): C_t . B_s
    m_mat = cb * tri                                               # causal + block-diag
    dt_all = _softplus(dt_raw + dtb)                               # (BL, NH_M)
    cs = jnp.dot(tri, dt_all, preferred_element_type=f32)          # (BL, NH_M)
    dec_in = jnp.exp(-a_vals * cs) * dt_all                        # (BL, NH_M), dt folded in
    dec_out = jnp.exp(a_vals * cs)                                 # (BL, NH_M)
    # head -> channel expansion via tiny matmuls (replaces the per-head loop entirely)
    rhs = jnp.dot(dec_in, e_mat, preferred_element_type=f32) * x_ssm          # (BL, D_INNER)
    y = (jnp.dot(dec_out, e_mat, preferred_element_type=f32)
         * jnp.dot(m_mat, rhs, preferred_element_type=f32)
         + dk_exp * x_ssm)                                         # (BL, D_INNER)

    yg = y * _silu(z)                                              # gated
    inv = lax.rsqrt(jnp.mean(yg * yg, axis=-1, keepdims=True) + EPS)
    yn = yg * inv * gate                                           # gated RMSNorm(d_inner)
    x = x + jnp.dot(yn, wb_ref[0:D_INNER, C_WOUT:C_WOUT + D],
                    preferred_element_type=f32)

    o_ref[...] = x.astype(o_ref.dtype)


# ============================================================
# Parameters, packing & wrapper
# ============================================================

def init_params(key):
    ks = jax.random.split(key, 8)

    def n(k, shape, scale=0.02):
        return jax.random.normal(k, shape, jnp.float32) * scale

    p = {
        # SpatialFusion_Layer
        "ln1_g": jnp.ones((1, D), jnp.float32), "ln1_b": jnp.zeros((1, D), jnp.float32),
        "w_qkv": n(ks[0], (D, 3 * D)), "b_qkv": jnp.zeros((1, 3 * D), jnp.float32),
        "w_o": n(ks[1], (D, D)), "b_o": jnp.zeros((1, D), jnp.float32),
        "ln2_g": jnp.ones((1, D), jnp.float32), "ln2_b": jnp.zeros((1, D), jnp.float32),
        "w_mlp1": n(ks[2], (D, MLP_HID)), "b_mlp1": jnp.zeros((1, MLP_HID), jnp.float32),
        "w_mlp2": n(ks[3], (MLP_HID, D)), "b_mlp2": jnp.zeros((1, D), jnp.float32),
        # Mamba2
        "rms_g": jnp.ones((1, D), jnp.float32),
        "w_in": n(ks[4], (D, D_IN_PROJ)),
        "conv_w": n(ks[5], (D_CONV, CONV_CH), scale=0.1),
        "conv_b": jnp.zeros((1, CONV_CH), jnp.float32),
        "dt_bias": jnp.log(jnp.expm1(jnp.linspace(0.01, 0.1, NH_M).astype(jnp.float32))),
        "A_log": jnp.log(jnp.arange(1, NH_M + 1, dtype=jnp.float32)),
        "D_skip": jnp.ones((NH_M,), jnp.float32),
        "gate_g": jnp.ones((1, D_INNER), jnp.float32),
        "w_out": n(ks[6], (D_INNER, D)),
    }
    return p


def rotary_tables(ls, dh):
    half = dh // 2
    inv_freq = 1.0 / (10000.0 ** (jnp.arange(half, dtype=jnp.float32) / half))
    pos = jnp.arange(ls, dtype=jnp.float32)
    ang = pos[:, None] * inv_freq[None, :]                # (L, half)
    cos = jnp.concatenate([jnp.cos(ang), jnp.cos(ang)], axis=-1)
    sin = jnp.concatenate([jnp.sin(ang), jnp.sin(ang)], axis=-1)
    return cos, sin


def _pack_small(params, bb, ls):
    """All small params + RoPE tables + masks -> one lane-dense (PK_ROWS,128) f32 array."""
    bl = bb * ls
    cos_h, sin_h = rotary_tables(ls, DH)                  # (L, DH)
    cos_full = jnp.tile(cos_h, (bb, NH))                  # (BL, D): tiled over batch & heads
    sin_full = jnp.tile(sin_h, (bb, NH))

    idx = jnp.arange(bl)
    bid = idx // ls
    same = bid[:, None] == bid[None, :]
    r = idx[:, None]
    c = idx[None, :]
    tri = jnp.where((r >= c) & same, 1.0, 0.0).astype(jnp.float32)
    abias = jnp.where(same, 0.0, -1e30).astype(jnp.float32)

    a_neg = -jnp.exp(params["A_log"]).reshape(1, NH_M)    # negative decay rates
    dk_exp = jnp.repeat(params["D_skip"].reshape(1, NH_M), HEADDIM, axis=1)   # (1, D_INNER)
    e_mat = jnp.repeat(jnp.eye(NH_M, dtype=jnp.float32), HEADDIM, axis=1)     # (NH_M, D_INNER)

    entries = [
        (R_LN1G, params["ln1_g"]), (R_LN1B, params["ln1_b"]),
        (R_BQKV, params["b_qkv"]), (R_BO, params["b_o"]),
        (R_LN2G, params["ln2_g"]), (R_LN2B, params["ln2_b"]),
        (R_BMLP1, params["b_mlp1"]), (R_BMLP2, params["b_mlp2"]),
        (R_RMSG, params["rms_g"]), (R_CONVB, params["conv_b"]),
        (R_DTB, params["dt_bias"].reshape(1, NH_M)),
        (R_ANEG, a_neg),
        (R_DKEXP, dk_exp),
        (R_GATEG, params["gate_g"]),
        (R_CONVW, params["conv_w"]),
        (R_EXPAND, e_mat),
        (R_COS, cos_full), (R_SIN, sin_full),
        (R_TRI, tri), (R_ABIAS, abias),
    ]
    pk = jnp.zeros((PK_ROWS, PK_COLS), jnp.float32)
    for row, arr in entries:
        arr = jnp.asarray(arr, jnp.float32)
        if arr.ndim == 1:
            arr = arr[None, :]
        pk = pk.at[row:row + arr.shape[0], 0:arr.shape[1]].set(arr)
    return pk


def _pack_big(params):
    """Big matrices -> two slabs with 128-lane-aligned column offsets."""
    wa = jnp.zeros((D, WA_COLS), jnp.float32)
    wa = wa.at[:, C_WQKV:C_WQKV + 3 * D].set(params["w_qkv"])
    wa = wa.at[:, C_WO:C_WO + D].set(params["w_o"])
    wa = wa.at[:, C_WMLP1:C_WMLP1 + MLP_HID].set(params["w_mlp1"])
    wa = wa.at[:, C_WIN:C_WIN + D_IN_PROJ].set(params["w_in"])
    wb = jnp.zeros((WB_ROWS, WB_COLS), jnp.float32)
    wb = wb.at[0:MLP_HID, C_WMLP2:C_WMLP2 + D].set(params["w_mlp2"])
    wb = wb.at[0:D_INNER, C_WOUT:C_WOUT + D].set(params["w_out"])
    return wa, wb


def timespace_block_forward(x, params, H, W):
    bb, ls, dm = x.shape
    assert ls == H * W and dm == D and bb * ls == BL

    pk = _pack_small(params, bb, ls)
    wa, wb = _pack_big(params)
    x2d = x.reshape(bb * ls, dm)                          # stack batches along tokens

    out = pl.pallas_call(
        _timespace_kernel,
        out_shape=jax.ShapeDtypeStruct((bb * ls, dm), x.dtype),
    )(x2d, pk, wa, wb)
    return out.reshape(bb, ls, dm)


if __name__ == "__main__":
    key = jax.random.PRNGKey(0)
    kx, kp = jax.random.split(key)
    x = jax.random.normal(kx, (B, L, D), jnp.float32)      # (B, H*W, D) tokens
    params = init_params(kp)

    fwd = jax.jit(functools.partial(timespace_block_forward, H=H_SP, W=W_SP))
    out = jax.block_until_ready(fwd(x, params))

    assert out.shape == (B, L, D), out.shape
    assert bool(jnp.all(jnp.isfinite(out)))
    print("KERNEL_OK")
</pallas_src>

<mosaic_0001>
module attributes {stable_mosaic.version = 11 : i64} {
  func.func @_timespace_kernel(%arg0: memref<32x32xf32, #tpu.memory_space<vmem>>, %arg1: memref<152x128xf32, #tpu.memory_space<vmem>>, %arg2: memref<32x640xf32, #tpu.memory_space<vmem>>, %arg3: memref<64x256xf32, #tpu.memory_space<vmem>>, %arg4: memref<32x32xf32, #tpu.memory_space<vmem>>) attributes {dimension_semantics = [], scalar_prefetch = 0 : i64, scratch_operands = 0 : i64, tpu.core_type = #tpu.core_type<tc>} {
    %c0 = arith.constant 0 : index
    %c0_0 = arith.constant 0 : index
    %0 = vector.load %arg0[%c0, %c0_0] : memref<32x32xf32, #tpu.memory_space<vmem>>, vector<32x32xf32>
    %c0_1 = arith.constant 0 : index
    %c0_2 = arith.constant 0 : index
    %1 = vector.load %arg1[%c0_1, %c0_2] : memref<152x128xf32, #tpu.memory_space<vmem>>, vector<1x32xf32>
    %c1 = arith.constant 1 : index
    %c0_3 = arith.constant 0 : index
    %2 = vector.load %arg1[%c1, %c0_3] : memref<152x128xf32, #tpu.memory_space<vmem>>, vector<1x32xf32>
    %c2 = arith.constant 2 : index
    %c0_4 = arith.constant 0 : index
    %3 = vector.load %arg1[%c2, %c0_4] : memref<152x128xf32, #tpu.memory_space<vmem>>, vector<1x96xf32>
    %c3 = arith.constant 3 : index
    %c0_5 = arith.constant 0 : index
    %4 = vector.load %arg1[%c3, %c0_5] : memref<152x128xf32, #tpu.memory_space<vmem>>, vector<1x32xf32>
    %c4 = arith.constant 4 : index
    %c0_6 = arith.constant 0 : index
    %5 = vector.load %arg1[%c4, %c0_6] : memref<152x128xf32, #tpu.memory_space<vmem>>, vector<1x32xf32>
    %c5 = arith.constant 5 : index
    %c0_7 = arith.constant 0 : index
    %6 = vector.load %arg1[%c5, %c0_7] : memref<152x128xf32, #tpu.memory_space<vmem>>, vector<1x32xf32>
    %c6 = arith.constant 6 : index
    %c0_8 = arith.constant 0 : index
    %7 = vector.load %arg1[%c6, %c0_8] : memref<152x128xf32, #tpu.memory_space<vmem>>, vector<1x64xf32>
    %c7 = arith.constant 7 : index
    %c0_9 = arith.constant 0 : index
    %8 = vector.load %arg1[%c7, %c0_9] : memref<152x128xf32, #tpu.memory_space<vmem>>, vector<1x32xf32>
    %c8 = arith.constant 8 : index
    %c0_10 = arith.constant 0 : index
    %9 = vector.load %arg1[%c8, %c0_10] : memref<152x128xf32, #tpu.memory_space<vmem>>, vector<1x32xf32>
    %c9 = arith.constant 9 : index
    %c0_11 = arith.constant 0 : index
    %10 = vector.load %arg1[%c9, %c0_11] : memref<152x128xf32, #tpu.memory_space<vmem>>, vector<1x96xf32>
    %c10 = arith.constant 10 : index
    %c0_12 = arith.constant 0 : index
    %11 = vector.load %arg1[%c10, %c0_12] : memref<152x128xf32, #tpu.memory_space<vmem>>, vector<1x4xf32>
    %c11 = arith.constant 11 : index
    %c0_13 = arith.constant 0 : index
    %12 = vector.load %arg1[%c11, %c0_13] : memref<152x128xf32, #tpu.memory_space<vmem>>, vector<1x4xf32>
    %c12 = arith.constant 12 : index
    %c0_14 = arith.constant 0 : index
    %13 = vector.load %arg1[%c12, %c0_14] : memref<152x128xf32, #tpu.memory_space<vmem>>, vector<1x64xf32>
    %c13 = arith.constant 13 : index
    %c0_15 = arith.constant 0 : index
    %14 = vector.load %arg1[%c13, %c0_15] : memref<152x128xf32, #tpu.memory_space<vmem>>, vector<1x64xf32>
    %c14 = arith.constant 14 : index
    %c0_16 = arith.constant 0 : index
    %15 = vector.load %arg1[%c14, %c0_16] : memref<152x128xf32, #tpu.memory_space<vmem>>, vector<4x96xf32>
    %c18 = arith.constant 18 : index
    %c0_17 = arith.constant 0 : index
    %16 = vector.load %arg1[%c18, %c0_17] : memref<152x128xf32, #tpu.memory_space<vmem>>, vector<4x64xf32>
    %c24 = arith.constant 24 : index
    %c0_18 = arith.constant 0 : index
    %17 = vector.load %arg1[%c24, %c0_18] : memref<152x128xf32, #tpu.memory_space<vmem>>, vector<32x32xf32>
    %c56 = arith.constant 56 : index
    %c0_19 = arith.constant 0 : index
    %18 = vector.load %arg1[%c56, %c0_19] : memref<152x128xf32, #tpu.memory_space<vmem>>, vector<32x32xf32>
    %c88 = arith.constant 88 : index
    %c0_20 = arith.constant 0 : index
    %19 = vector.load %arg1[%c88, %c0_20] : memref<152x128xf32, #tpu.memory_space<vmem>>, vector<32x32xf32>
    %c120 = arith.constant 120 : index
    %c0_21 = arith.constant 0 : index
    %20 = vector.load %arg1[%c120, %c0_21] : memref<152x128xf32, #tpu.memory_space<vmem>>, vector<32x32xf32>
    %cst = arith.constant dense<0.000000e+00> : vector<32xf32>
    %21 = vector.multi_reduction <add>, %0, %cst [1] : vector<32x32xf32> to vector<32xf32>
    %22 = vector.shape_cast %21 : vector<32xf32> to vector<32x1xf32>
    %cst_22 = arith.constant 3.200000e+01 : f32
    %23 = vector.broadcast %cst_22 : f32 to vector<32x1xf32>
    %24 = arith.divf %22, %23 : vector<32x1xf32>
    %25 = vector.broadcast %24 : vector<32x1xf32> to vector<32x32xf32>
    %26 = arith.subf %0, %25 : vector<32x32xf32>
    %27 = arith.mulf %26, %26 : vector<32x32xf32>
    %cst_23 = arith.constant dense<0.000000e+00> : vector<32xf32>
    %28 = vector.multi_reduction <add>, %27, %cst_23 [1] : vector<32x32xf32> to vector<32xf32>
    %29 = vector.shape_cast %28 : vector<32xf32> to vector<32x1xf32>
    %cst_24 = arith.constant 3.200000e+01 : f32
    %30 = vector.broadcast %cst_24 : f32 to vector<32x1xf32>
    %31 = arith.divf %29, %30 : vector<32x1xf32>
    %cst_25 = arith.constant 9.99999974E-6 : f32
    %32 = vector.broadcast %cst_25 : f32 to vector<32x1xf32>
    %33 = arith.addf %31, %32 : vector<32x1xf32>
    %34 = math.rsqrt %33 : vector<32x1xf32>
    %35 = vector.broadcast %34 : vector<32x1xf32> to vector<32x32xf32>
    %36 = arith.mulf %26, %35 : vector<32x32xf32>
    %37 = vector.broadcast %1 : vector<1x32xf32> to vector<32x32xf32>
    %38 = arith.mulf %36, %37 : vector<32x32xf32>
    %39 = vector.broadcast %2 : vector<1x32xf32> to vector<32x32xf32>
    %40 = arith.addf %38, %39 : vector<32x32xf32>
    %c0_26 = arith.constant 0 : index
    %c0_27 = arith.constant 0 : index
    %41 = vector.load %arg2[%c0_26, %c0_27] : memref<32x640xf32, #tpu.memory_space<vmem>>, vector<32x96xf32>
    %cst_28 = arith.constant dense<0.000000e+00> : vector<32x96xf32>
    %42 = tpu.matmul %40, %41, %cst_28 {dimension_numbers = #tpu.dot_dimension_numbers<[1], [0], [0], [1], [0, 0, 1, 1], [], []>} : vector<32x32xf32>, vector<32x96xf32>, vector<32x96xf32> -> vector<32x96xf32>
    %43 = vector.broadcast %3 : vector<1x96xf32> to vector<32x96xf32>
    %44 = arith.addf %42, %43 : vector<32x96xf32>
    %45 = vector.extract_strided_slice %44 {offsets = [0, 0], sizes = [32, 32], strides = [1, 1]} : vector<32x96xf32> to vector<32x32xf32>
    %46 = vector.extract_strided_slice %44 {offsets = [0, 32], sizes = [32, 32], strides = [1, 1]} : vector<32x96xf32> to vector<32x32xf32>
    %47 = vector.extract_strided_slice %44 {offsets = [0, 64], sizes = [32, 32], strides = [1, 1]} : vector<32x96xf32> to vector<32x32xf32>
    %48 = arith.mulf %45, %17 : vector<32x32xf32>
    %49 = vector.extract_strided_slice %45 {offsets = [0, 0], sizes = [32, 4], strides = [1, 1]} : vector<32x32xf32> to vector<32x4xf32>
    %50 = vector.extract_strided_slice %45 {offsets = [0, 4], sizes = [32, 4], strides = [1, 1]} : vector<32x32xf32> to vector<32x4xf32>
    %cst_29 = arith.constant 0.000000e+00 : f32
    %51 = vector.broadcast %cst_29 : f32 to vector<32x4xf32>
    %52 = arith.subf %51, %50 : vector<32x4xf32>
    %53 = vector.extract_strided_slice %45 {offsets = [0, 8], sizes = [32, 4], strides = [1, 1]} : vector<32x32xf32> to vector<32x4xf32>
    %54 = vector.extract_strided_slice %45 {offsets = [0, 12], sizes = [32, 4], strides = [1, 1]} : vector<32x32xf32> to vector<32x4xf32>
    %cst_30 = arith.constant 0.000000e+00 : f32
    %55 = vector.broadcast %cst_30 : f32 to vector<32x4xf32>
    %56 = arith.subf %55, %54 : vector<32x4xf32>
    %57 = vector.extract_strided_slice %45 {offsets = [0, 16], sizes = [32, 4], strides = [1, 1]} : vector<32x32xf32> to vector<32x4xf32>
    %58 = vector.extract_strided_slice %45 {offsets = [0, 20], sizes = [32, 4], strides = [1, 1]} : vector<32x32xf32> to vector<32x4xf32>
    %cst_31 = arith.constant 0.000000e+00 : f32
    %59 = vector.broadcast %cst_31 : f32 to vector<32x4xf32>
    %60 = arith.subf %59, %58 : vector<32x4xf32>
    %61 = vector.extract_strided_slice %45 {offsets = [0, 24], sizes = [32, 4], strides = [1, 1]} : vector<32x32xf32> to vector<32x4xf32>
    %62 = vector.extract_strided_slice %45 {offsets = [0, 28], sizes = [32, 4], strides = [1, 1]} : vector<32x32xf32> to vector<32x4xf32>
    %cst_32 = arith.constant 0.000000e+00 : f32
    %63 = vector.broadcast %cst_32 : f32 to vector<32x4xf32>
    %64 = arith.subf %63, %62 : vector<32x4xf32>
    %65 = tpu.concatenate %52, %49, %56, %53, %60, %57, %64, %61 in 1 : vector<32x4xf32>, vector<32x4xf32>, vector<32x4xf32>, vector<32x4xf32>, vector<32x4xf32>, vector<32x4xf32>, vector<32x4xf32>, vector<32x4xf32> -> vector<32x32xf32>
    %66 = arith.mulf %65, %18 : vector<32x32xf32>
    %67 = arith.addf %48, %66 : vector<32x32xf32>
    %68 = arith.mulf %46, %17 : vector<32x32xf32>
    %69 = vector.extract_strided_slice %46 {offsets = [0, 0], sizes = [32, 4], strides = [1, 1]} : vector<32x32xf32> to vector<32x4xf32>
    %70 = vector.extract_strided_slice %46 {offsets = [0, 4], sizes = [32, 4], strides = [1, 1]} : vector<32x32xf32> to vector<32x4xf32>
    %cst_33 = arith.constant 0.000000e+00 : f32
    %71 = vector.broadcast %cst_33 : f32 to vector<32x4xf32>
    %72 = arith.subf %71, %70 : vector<32x4xf32>
    %73 = vector.extract_strided_slice %46 {offsets = [0, 8], sizes = [32, 4], strides = [1, 1]} : vector<32x32xf32> to vector<32x4xf32>
    %74 = vector.extract_strided_slice %46 {offsets = [0, 12], sizes = [32, 4], strides = [1, 1]} : vector<32x32xf32> to vector<32x4xf32>
    %cst_34 = arith.constant 0.000000e+00 : f32
    %75 = vector.broadcast %cst_34 : f32 to vector<32x4xf32>
    %76 = arith.subf %75, %74 : vector<32x4xf32>
    %77 = vector.extract_strided_slice %46 {offsets = [0, 16], sizes = [32, 4], strides = [1, 1]} : vector<32x32xf32> to vector<32x4xf32>
    %78 = vector.extract_strided_slice %46 {offsets = [0, 20], sizes = [32, 4], strides = [1, 1]} : vector<32x32xf32> to vector<32x4xf32>
    %cst_35 = arith.constant 0.000000e+00 : f32
    %79 = vector.broadcast %cst_35 : f32 to vector<32x4xf32>
    %80 = arith.subf %79, %78 : vector<32x4xf32>
    %81 = vector.extract_strided_slice %46 {offsets = [0, 24], sizes = [32, 4], strides = [1, 1]} : vector<32x32xf32> to vector<32x4xf32>
    %82 = vector.extract_strided_slice %46 {offsets = [0, 28], sizes = [32, 4], strides = [1, 1]} : vector<32x32xf32> to vector<32x4xf32>
    %cst_36 = arith.constant 0.000000e+00 : f32
    %83 = vector.broadcast %cst_36 : f32 to vector<32x4xf32>
    %84 = arith.subf %83, %82 : vector<32x4xf32>
    %85 = tpu.concatenate %72, %69, %76, %73, %80, %77, %84, %81 in 1 : vector<32x4xf32>, vector<32x4xf32>, vector<32x4xf32>, vector<32x4xf32>, vector<32x4xf32>, vector<32x4xf32>, vector<32x4xf32>, vector<32x4xf32> -> vector<32x32xf32>
    %86 = arith.mulf %85, %18 : vector<32x32xf32>
    %87 = arith.addf %68, %86 : vector<32x32xf32>
    %88 = vector.extract_strided_slice %67 {offsets = [0, 0], sizes = [32, 8], strides = [1, 1]} : vector<32x32xf32> to vector<32x8xf32>
    %89 = vector.extract_strided_slice %87 {offsets = [0, 0], sizes = [32, 8], strides = [1, 1]} : vector<32x32xf32> to vector<32x8xf32>
    %90 = vector.extract_strided_slice %47 {offsets = [0, 0], sizes = [32, 8], strides = [1, 1]} : vector<32x32xf32> to vector<32x8xf32>
    %cst_37 = arith.constant dense<0.000000e+00> : vector<32x32xf32>
    %91 = tpu.matmul %88, %89, %cst_37 {dimension_numbers = #tpu.dot_dimension_numbers<[1], [1], [0], [0], [0, 0, 1, 0], [], []>} : vector<32x8xf32>, vector<32x8xf32>, vector<32x32xf32> -> vector<32x32xf32>
    %cst_38 = arith.constant 0.353553385 : f32
    %92 = vector.broadcast %cst_38 : f32 to vector<32x32xf32>
    %93 = arith.mulf %91, %92 : vector<32x32xf32>
    %94 = arith.addf %93, %20 : vector<32x32xf32>
    %cst_39 = arith.constant dense<0xFF800000> : vector<32xf32>
    %95 = vector.multi_reduction <maximumf>, %94, %cst_39 [1] : vector<32x32xf32> to vector<32xf32>
    %96 = vector.shape_cast %95 : vector<32xf32> to vector<32x1xf32>
    %97 = vector.broadcast %96 : vector<32x1xf32> to vector<32x32xf32>
    %98 = arith.subf %94, %97 : vector<32x32xf32>
    %99 = math.exp %98 : vector<32x32xf32>
    %cst_40 = arith.constant dense<0.000000e+00> : vector<32xf32>
    %100 = vector.multi_reduction <add>, %99, %cst_40 [1] : vector<32x32xf32> to vector<32xf32>
    %101 = vector.shape_cast %100 : vector<32xf32> to vector<32x1xf32>
    %102 = tpu.reciprocal %101 {approx = true} : vector<32x1xf32> -> vector<32x1xf32>
    %103 = vector.broadcast %102 : vector<32x1xf32> to vector<32x32xf32>
    %104 = arith.mulf %99, %103 : vector<32x32xf32>
    %cst_41 = arith.constant dense<0.000000e+00> : vector<32x8xf32>
    %105 = tpu.matmul %104, %90, %cst_41 {dimension_numbers = #tpu.dot_dimension_numbers<[1], [0], [0], [1], [0, 0, 1, 1], [], []>} : vector<32x32xf32>, vector<32x8xf32>, vector<32x8xf32> -> vector<32x8xf32>
    %106 = vector.extract_strided_slice %67 {offsets = [0, 8], sizes = [32, 8], strides = [1, 1]} : vector<32x32xf32> to vector<32x8xf32>
    %107 = vector.extract_strided_slice %87 {offsets = [0, 8], sizes = [32, 8], strides = [1, 1]} : vector<32x32xf32> to vector<32x8xf32>
    %108 = vector.extract_strided_slice %47 {offsets = [0, 8], sizes = [32, 8], strides = [1, 1]} : vector<32x32xf32> to vector<32x8xf32>
    %cst_42 = arith.constant dense<0.000000e+00> : vector<32x32xf32>
    %109 = tpu.matmul %106, %107, %cst_42 {dimension_numbers = #tpu.dot_dimension_numbers<[1], [1], [0], [0], [0, 0, 1, 0], [], []>} : vector<32x8xf32>, vector<32x8xf32>, vector<32x32xf32> -> vector<32x32xf32>
    %cst_43 = arith.constant 0.353553385 : f32
    %110 = vector.broadcast %cst_43 : f32 to vector<32x32xf32>
    %111 = arith.mulf %109, %110 : vector<32x32xf32>
    %112 = arith.addf %111, %20 : vector<32x32xf32>
    %cst_44 = arith.constant dense<0xFF800000> : vector<32xf32>
    %113 = vector.multi_reduction <maximumf>, %112, %cst_44 [1] : vector<32x32xf32> to vector<32xf32>
    %114 = vector.shape_cast %113 : vector<32xf32> to vector<32x1xf32>
    %115 = vector.broadcast %114 : vector<32x1xf32> to vector<32x32xf32>
    %116 = arith.subf %112, %115 : vector<32x32xf32>
    %117 = math.exp %116 : vector<32x32xf32>
    %cst_45 = arith.constant dense<0.000000e+00> : vector<32xf32>
    %118 = vector.multi_reduction <add>, %117, %cst_45 [1] : vector<32x32xf32> to vector<32xf32>
    %119 = vector.shape_cast %118 : vector<32xf32> to vector<32x1xf32>
    %120 = tpu.reciprocal %119 {approx = true} : vector<32x1xf32> -> vector<32x1xf32>
    %121 = vector.broadcast %120 : vector<32x1xf32> to vector<32x32xf32>
    %122 = arith.mulf %117, %121 : vector<32x32xf32>
    %cst_46 = arith.constant dense<0.000000e+00> : vector<32x8xf32>
    %123 = tpu.matmul %122, %108, %cst_46 {dimension_numbers = #tpu.dot_dimension_numbers<[1], [0], [0], [1], [0, 0, 1, 1], [], []>} : vector<32x32xf32>, vector<32x8xf32>, vector<32x8xf32> -> vector<32x8xf32>
    %124 = vector.extract_strided_slice %67 {offsets = [0, 16], sizes = [32, 8], strides = [1, 1]} : vector<32x32xf32> to vector<32x8xf32>
    %125 = vector.extract_strided_slice %87 {offsets = [0, 16], sizes = [32, 8], strides = [1, 1]} : vector<32x32xf32> to vector<32x8xf32>
    %126 = vector.extract_strided_slice %47 {offsets = [0, 16], sizes = [32, 8], strides = [1, 1]} : vector<32x32xf32> to vector<32x8xf32>
    %cst_47 = arith.constant dense<0.000000e+00> : vector<32x32xf32>
    %127 = tpu.matmul %124, %125, %cst_47 {dimension_numbers = #tpu.dot_dimension_numbers<[1], [1], [0], [0], [0, 0, 1, 0], [], []>} : vector<32x8xf32>, vector<32x8xf32>, vector<32x32xf32> -> vector<32x32xf32>
    %cst_48 = arith.constant 0.353553385 : f32
    %128 = vector.broadcast %cst_48 : f32 to vector<32x32xf32>
    %129 = arith.mulf %127, %128 : vector<32x32xf32>
    %130 = arith.addf %129, %20 : vector<32x32xf32>
    %cst_49 = arith.constant dense<0xFF800000> : vector<32xf32>
    %131 = vector.multi_reduction <maximumf>, %130, %cst_49 [1] : vector<32x32xf32> to vector<32xf32>
    %132 = vector.shape_cast %131 : vector<32xf32> to vector<32x1xf32>
    %133 = vector.broadcast %132 : vector<32x1xf32> to vector<32x32xf32>
    %134 = arith.subf %130, %133 : vector<32x32xf32>
    %135 = math.exp %134 : vector<32x32xf32>
    %cst_50 = arith.constant dense<0.000000e+00> : vector<32xf32>
    %136 = vector.multi_reduction <add>, %135, %cst_50 [1] : vector<32x32xf32> to vector<32xf32>
    %137 = vector.shape_cast %136 : vector<32xf32> to vector<32x1xf32>
    %138 = tpu.reciprocal %137 {approx = true} : vector<32x1xf32> -> vector<32x1xf32>
    %139 = vector.broadcast %138 : vector<32x1xf32> to vector<32x32xf32>
    %140 = arith.mulf %135, %139 : vector<32x32xf32>
    %cst_51 = arith.constant dense<0.000000e+00> : vector<32x8xf32>
    %141 = tpu.matmul %140, %126, %cst_51 {dimension_numbers = #tpu.dot_dimension_numbers<[1], [0], [0], [1], [0, 0, 1, 1], [], []>} : vector<32x32xf32>, vector<32x8xf32>, vector<32x8xf32> -> vector<32x8xf32>
    %142 = vector.extract_strided_slice %67 {offsets = [0, 24], sizes = [32, 8], strides = [1, 1]} : vector<32x32xf32> to vector<32x8xf32>
    %143 = vector.extract_strided_slice %87 {offsets = [0, 24], sizes = [32, 8], strides = [1, 1]} : vector<32x32xf32> to vector<32x8xf32>
    %144 = vector.extract_strided_slice %47 {offsets = [0, 24], sizes = [32, 8], strides = [1, 1]} : vector<32x32xf32> to vector<32x8xf32>
    %cst_52 = arith.constant dense<0.000000e+00> : vector<32x32xf32>
    %145 = tpu.matmul %142, %143, %cst_52 {dimension_numbers = #tpu.dot_dimension_numbers<[1], [1], [0], [0], [0, 0, 1, 0], [], []>} : vector<32x8xf32>, vector<32x8xf32>, vector<32x32xf32> -> vector<32x32xf32>
    %cst_53 = arith.constant 0.353553385 : f32
    %146 = vector.broadcast %cst_53 : f32 to vector<32x32xf32>
    %147 = arith.mulf %145, %146 : vector<32x32xf32>
    %148 = arith.addf %147, %20 : vector<32x32xf32>
    %cst_54 = arith.constant dense<0xFF800000> : vector<32xf32>
    %149 = vector.multi_reduction <maximumf>, %148, %cst_54 [1] : vector<32x32xf32> to vector<32xf32>
    %150 = vector.shape_cast %149 : vector<32xf32> to vector<32x1xf32>
    %151 = vector.broadcast %150 : vector<32x1xf32> to vector<32x32xf32>
    %152 = arith.subf %148, %151 : vector<32x32xf32>
    %153 = math.exp %152 : vector<32x32xf32>
    %cst_55 = arith.constant dense<0.000000e+00> : vector<32xf32>
    %154 = vector.multi_reduction <add>, %153, %cst_55 [1] : vector<32x32xf32> to vector<32xf32>
    %155 = vector.shape_cast %154 : vector<32xf32> to vector<32x1xf32>
    %156 = tpu.reciprocal %155 {approx = true} : vector<32x1xf32> -> vector<32x1xf32>
    %157 = vector.broadcast %156 : vector<32x1xf32> to vector<32x32xf32>
    %158 = arith.mulf %153, %157 : vector<32x32xf32>
    %cst_56 = arith.constant dense<0.000000e+00> : vector<32x8xf32>
    %159 = tpu.matmul %158, %144, %cst_56 {dimension_numbers = #tpu.dot_dimension_numbers<[1], [0], [0], [1], [0, 0, 1, 1], [], []>} : vector<32x32xf32>, vector<32x8xf32>, vector<32x8xf32> -> vector<32x8xf32>
    %160 = tpu.concatenate %105, %123, %141, %159 in 1 : vector<32x8xf32>, vector<32x8xf32>, vector<32x8xf32>, vector<32x8xf32> -> vector<32x32xf32>
    %c0_57 = arith.constant 0 : index
    %c128 = arith.constant 128 : index
    %161 = vector.load %arg2[%c0_57, %c128] : memref<32x640xf32, #tpu.memory_space<vmem>>, vector<32x32xf32>
    %cst_58 = arith.constant dense<0.000000e+00> : vector<32x32xf32>
    %162 = tpu.matmul %160, %161, %cst_58 {dimension_numbers = #tpu.dot_dimension_numbers<[1], [0], [0], [1], [0, 0, 1, 1], [], []>} : vector<32x32xf32>, vector<32x32xf32>, vector<32x32xf32> -> vector<32x32xf32>
    %163 = arith.addf %0, %162 : vector<32x32xf32>
    %164 = vector.broadcast %4 : vector<1x32xf32> to vector<32x32xf32>
    %165 = arith.addf %163, %164 : vector<32x32xf32>
    %cst_59 = arith.constant dense<0.000000e+00> : vector<32xf32>
    %166 = vector.multi_reduction <add>, %165, %cst_59 [1] : vector<32x32xf32> to vector<32xf32>
    %167 = vector.shape_cast %166 : vector<32xf32> to vector<32x1xf32>
    %cst_60 = arith.constant 3.200000e+01 : f32
    %168 = vector.broadcast %cst_60 : f32 to vector<32x1xf32>
    %169 = arith.divf %167, %168 : vector<32x1xf32>
    %170 = vector.broadcast %169 : vector<32x1xf32> to vector<32x32xf32>
    %171 = arith.subf %165, %170 : vector<32x32xf32>
    %172 = arith.mulf %171, %171 : vector<32x32xf32>
    %cst_61 = arith.constant dense<0.000000e+00> : vector<32xf32>
    %173 = vector.multi_reduction <add>, %172, %cst_61 [1] : vector<32x32xf32> to vector<32xf32>
    %174 = vector.shape_cast %173 : vector<32xf32> to vector<32x1xf32>
    %cst_62 = arith.constant 3.200000e+01 : f32
    %175 = vector.broadcast %cst_62 : f32 to vector<32x1xf32>
    %176 = arith.divf %174, %175 : vector<32x1xf32>
    %cst_63 = arith.constant 9.99999974E-6 : f32
    %177 = vector.broadcast %cst_63 : f32 to vector<32x1xf32>
    %178 = arith.addf %176, %177 : vector<32x1xf32>
    %179 = math.rsqrt %178 : vector<32x1xf32>
    %180 = vector.broadcast %179 : vector<32x1xf32> to vector<32x32xf32>
    %181 = arith.mulf %171, %180 : vector<32x32xf32>
    %182 = vector.broadcast %5 : vector<1x32xf32> to vector<32x32xf32>
    %183 = arith.mulf %181, %182 : vector<32x32xf32>
    %184 = vector.broadcast %6 : vector<1x32xf32> to vector<32x32xf32>
    %185 = arith.addf %183, %184 : vector<32x32xf32>
    %c0_64 = arith.constant 0 : index
    %c256 = arith.constant 256 : index
    %186 = vector.load %arg2[%c0_64, %c256] : memref<32x640xf32, #tpu.memory_space<vmem>>, vector<32x64xf32>
    %cst_65 = arith.constant dense<0.000000e+00> : vector<32x64xf32>
    %187 = tpu.matmul %185, %186, %cst_65 {dimension_numbers = #tpu.dot_dimension_numbers<[1], [0], [0], [1], [0, 0, 1, 1], [], []>} : vector<32x32xf32>, vector<32x64xf32>, vector<32x64xf32> -> vector<32x64xf32>
    %188 = vector.broadcast %7 : vector<1x64xf32> to vector<32x64xf32>
    %189 = arith.addf %187, %188 : vector<32x64xf32>
    %cst_66 = arith.constant 5.000000e-01 : f32
    %190 = vector.broadcast %cst_66 : f32 to vector<32x64xf32>
    %191 = arith.mulf %190, %189 : vector<32x64xf32>
    %cst_67 = arith.constant 4.471500e-02 : f32
    %192 = vector.broadcast %cst_67 : f32 to vector<32x64xf32>
    %193 = arith.mulf %192, %189 : vector<32x64xf32>
    %194 = arith.mulf %193, %189 : vector<32x64xf32>
    %195 = arith.mulf %194, %189 : vector<32x64xf32>
    %196 = arith.addf %189, %195 : vector<32x64xf32>
    %cst_68 = arith.constant 0.797884583 : f32
    %197 = vector.broadcast %cst_68 : f32 to vector<32x64xf32>
    %198 = arith.mulf %197, %196 : vector<32x64xf32>
    %199 = math.tanh %198 : vector<32x64xf32>
    %cst_69 = arith.constant 1.000000e+00 : f32
    %200 = vector.broadcast %cst_69 : f32 to vector<32x64xf32>
    %201 = arith.addf %200, %199 : vector<32x64xf32>
    %202 = arith.mulf %191, %201 : vector<32x64xf32>
    %c0_70 = arith.constant 0 : index
    %c0_71 = arith.constant 0 : index
    %203 = vector.load %arg3[%c0_70, %c0_71] : memref<64x256xf32, #tpu.memory_space<vmem>>, vector<64x32xf32>
    %cst_72 = arith.constant dense<0.000000e+00> : vector<32x32xf32>
    %204 = tpu.matmul %202, %203, %cst_72 {dimension_numbers = #tpu.dot_dimension_numbers<[1], [0], [0], [1], [0, 0, 1, 1], [], []>} : vector<32x64xf32>, vector<64x32xf32>, vector<32x32xf32> -> vector<32x32xf32>
    %205 = arith.addf %165, %204 : vector<32x32xf32>
    %206 = vector.broadcast %8 : vector<1x32xf32> to vector<32x32xf32>
    %207 = arith.addf %205, %206 : vector<32x32xf32>
    %208 = arith.mulf %207, %207 : vector<32x32xf32>
    %cst_73 = arith.constant dense<0.000000e+00> : vector<32xf32>
    %209 = vector.multi_reduction <add>, %208, %cst_73 [1] : vector<32x32xf32> to vector<32xf32>
    %210 = vector.shape_cast %209 : vector<32xf32> to vector<32x1xf32>
    %cst_74 = arith.constant 3.200000e+01 : f32
    %211 = vector.broadcast %cst_74 : f32 to vector<32x1xf32>
    %212 = arith.divf %210, %211 : vector<32x1xf32>
    %cst_75 = arith.constant 9.99999974E-6 : f32
    %213 = vector.broadcast %cst_75 : f32 to vector<32x1xf32>
    %214 = arith.addf %212, %213 : vector<32x1xf32>
    %215 = math.rsqrt %214 : vector<32x1xf32>
    %216 = vector.broadcast %215 : vector<32x1xf32> to vector<32x32xf32>
    %217 = arith.mulf %207, %216 : vector<32x32xf32>
    %218 = vector.broadcast %9 : vector<1x32xf32> to vector<32x32xf32>
    %219 = arith.mulf %217, %218 : vector<32x32xf32>
    %c0_76 = arith.constant 0 : index
    %c384 = arith.constant 384 : index
    %220 = vector.load %arg2[%c0_76, %c384] : memref<32x640xf32, #tpu.memory_space<vmem>>, vector<32x164xf32>
    %cst_77 = arith.constant dense<0.000000e+00> : vector<32x164xf32>
    %221 = tpu.matmul %219, %220, %cst_77 {dimension_numbers = #tpu.dot_dimension_numbers<[1], [0], [0], [1], [0, 0, 1, 1], [], []>} : vector<32x32xf32>, vector<32x164xf32>, vector<32x164xf32> -> vector<32x164xf32>
    %222 = vector.extract_strided_slice %221 {offsets = [0, 0], sizes = [32, 64], strides = [1, 1]} : vector<32x164xf32> to vector<32x64xf32>
    %223 = vector.extract_strided_slice %221 {offsets = [0, 64], sizes = [32, 96], strides = [1, 1]} : vector<32x164xf32> to vector<32x96xf32>
    %224 = vector.extract_strided_slice %221 {offsets = [0, 160], sizes = [32, 4], strides = [1, 1]} : vector<32x164xf32> to vector<32x4xf32>
    %225 = vector.extract_strided_slice %15 {offsets = [3, 0], sizes = [1, 96], strides = [1, 1]} : vector<4x96xf32> to vector<1x96xf32>
    %226 = vector.broadcast %225 : vector<1x96xf32> to vector<32x96xf32>
    %227 = arith.mulf %223, %226 : vector<32x96xf32>
    %cst_78 = arith.constant 0.000000e+00 : f32
    %228 = vector.broadcast %cst_78 : f32 to vector<3x96xf32>
    %229 = vector.extract_strided_slice %223 {offsets = [0, 0], sizes = [13, 96], strides = [1, 1]} : vector<32x96xf32> to vector<13x96xf32>
    %cst_79 = arith.constant 0.000000e+00 : f32
    %230 = vector.broadcast %cst_79 : f32 to vector<3x96xf32>
    %231 = vector.extract_strided_slice %223 {offsets = [16, 0], sizes = [13, 96], strides = [1, 1]} : vector<32x96xf32> to vector<13x96xf32>
    %232 = tpu.concatenate %228, %229, %230, %231 in 0 : vector<3x96xf32>, vector<13x96xf32>, vector<3x96xf32>, vector<13x96xf32> -> vector<32x96xf32>
    %233 = vector.extract_strided_slice %15 {offsets = [0, 0], sizes = [1, 96], strides = [1, 1]} : vector<4x96xf32> to vector<1x96xf32>
    %234 = vector.broadcast %233 : vector<1x96xf32> to vector<32x96xf32>
    %235 = arith.mulf %232, %234 : vector<32x96xf32>
    %236 = arith.addf %227, %235 : vector<32x96xf32>
    %cst_80 = arith.constant 0.000000e+00 : f32
    %237 = vector.broadcast %cst_80 : f32 to vector<2x96xf32>
    %238 = vector.extract_strided_slice %223 {offsets = [0, 0], sizes = [14, 96], strides = [1, 1]} : vector<32x96xf32> to vector<14x96xf32>
    %cst_81 = arith.constant 0.000000e+00 : f32
    %239 = vector.broadcast %cst_81 : f32 to vector<2x96xf32>
    %240 = vector.extract_strided_slice %223 {offsets = [16, 0], sizes = [14, 96], strides = [1, 1]} : vector<32x96xf32> to vector<14x96xf32>
    %241 = tpu.concatenate %237, %238, %239, %240 in 0 : vector<2x96xf32>, vector<14x96xf32>, vector<2x96xf32>, vector<14x96xf32> -> vector<32x96xf32>
    %242 = vector.extract_strided_slice %15 {offsets = [1, 0], sizes = [1, 96], strides = [1, 1]} : vector<4x96xf32> to vector<1x96xf32>
    %243 = vector.broadcast %242 : vector<1x96xf32> to vector<32x96xf32>
    %244 = arith.mulf %241, %243 : vector<32x96xf32>
    %245 = arith.addf %236, %244 : vector<32x96xf32>
    %cst_82 = arith.constant 0.000000e+00 : f32
    %246 = vector.broadcast %cst_82 : f32 to vector<1x96xf32>
    %247 = vector.extract_strided_slice %223 {offsets = [0, 0], sizes = [15, 96], strides = [1, 1]} : vector<32x96xf32> to vector<15x96xf32>
    %cst_83 = arith.constant 0.000000e+00 : f32
    %248 = vector.broadcast %cst_83 : f32 to vector<1x96xf32>
    %249 = vector.extract_strided_slice %223 {offsets = [16, 0], sizes = [15, 96], strides = [1, 1]} : vector<32x96xf32> to vector<15x96xf32>
    %250 = tpu.concatenate %246, %247, %248, %249 in 0 : vector<1x96xf32>, vector<15x96xf32>, vector<1x96xf32>, vector<15x96xf32> -> vector<32x96xf32>
    %251 = vector.extract_strided_slice %15 {offsets = [2, 0], sizes = [1, 96], strides = [1, 1]} : vector<4x96xf32> to vector<1x96xf32>
    %252 = vector.broadcast %251 : vector<1x96xf32> to vector<32x96xf32>
    %253 = arith.mulf %250, %252 : vector<32x96xf32>
    %254 = arith.addf %245, %253 : vector<32x96xf32>
    %255 = vector.broadcast %10 : vector<1x96xf32> to vector<32x96xf32>
    %256 = arith.addf %254, %255 : vector<32x96xf32>
    %cst_84 = arith.constant 0.000000e+00 : f32
    %257 = vector.broadcast %cst_84 : f32 to vector<32x96xf32>
    %258 = arith.subf %257, %256 : vector<32x96xf32>
    %259 = math.exp %258 : vector<32x96xf32>
    %cst_85 = arith.constant 1.000000e+00 : f32
    %260 = vector.broadcast %cst_85 : f32 to vector<32x96xf32>
    %261 = arith.addf %260, %259 : vector<32x96xf32>
    %cst_86 = arith.constant 1.000000e+00 : f32
    %262 = vector.broadcast %cst_86 : f32 to vector<32x96xf32>
    %263 = arith.divf %262, %261 : vector<32x96xf32>
    %264 = arith.mulf %256, %263 : vector<32x96xf32>
    %265 = vector.extract_strided_slice %264 {offsets = [0, 0], sizes = [32, 64], strides = [1, 1]} : vector<32x96xf32> to vector<32x64xf32>
    %266 = vector.extract_strided_slice %264 {offsets = [0, 64], sizes = [32, 16], strides = [1, 1]} : vector<32x96xf32> to vector<32x16xf32>
    %267 = vector.extract_strided_slice %264 {offsets = [0, 80], sizes = [32, 16], strides = [1, 1]} : vector<32x96xf32> to vector<32x16xf32>
    %cst_87 = arith.constant dense<0.000000e+00> : vector<32x32xf32>
    %268 = tpu.matmul %267, %266, %cst_87 {dimension_numbers = #tpu.dot_dimension_numbers<[1], [1], [0], [0], [0, 0, 1, 0], [], []>} : vector<32x16xf32>, vector<32x16xf32>, vector<32x32xf32> -> vector<32x32xf32>
    %269 = arith.mulf %268, %19 : vector<32x32xf32>
    %270 = vector.broadcast %11 : vector<1x4xf32> to vector<32x4xf32>
    %271 = arith.addf %224, %270 : vector<32x4xf32>
    %cst_88 = arith.constant 0.000000e+00 : f32
    %272 = vector.broadcast %cst_88 : f32 to vector<32x4xf32>
    %273 = arith.maximumf %271, %272 : vector<32x4xf32>
    %274 = math.absf %271 : vector<32x4xf32>
    %cst_89 = arith.constant 0.000000e+00 : f32
    %275 = vector.broadcast %cst_89 : f32 to vector<32x4xf32>
    %276 = arith.subf %275, %274 : vector<32x4xf32>
    %277 = math.exp %276 : vector<32x4xf32>
    %cst_90 = arith.constant 1.000000e+00 : f32
    %278 = vector.broadcast %cst_90 : f32 to vector<32x4xf32>
    %279 = arith.addf %278, %277 : vector<32x4xf32>
    %280 = math.log %279 : vector<32x4xf32>
    %281 = arith.addf %273, %280 : vector<32x4xf32>
    %cst_91 = arith.constant dense<0.000000e+00> : vector<32x4xf32>
    %282 = tpu.matmul %19, %281, %cst_91 {dimension_numbers = #tpu.dot_dimension_numbers<[1], [0], [0], [1], [0, 0, 1, 1], [], []>} : vector<32x32xf32>, vector<32x4xf32>, vector<32x4xf32> -> vector<32x4xf32>
    %cst_92 = arith.constant 0.000000e+00 : f32
    %283 = vector.broadcast %cst_92 : f32 to vector<1x4xf32>
    %284 = arith.subf %283, %12 : vector<1x4xf32>
    %285 = vector.broadcast %284 : vector<1x4xf32> to vector<32x4xf32>
    %286 = arith.mulf %285, %282 : vector<32x4xf32>
    %287 = math.exp %286 : vector<32x4xf32>
    %288 = arith.mulf %287, %281 : vector<32x4xf32>
    %289 = vector.broadcast %12 : vector<1x4xf32> to vector<32x4xf32>
    %290 = arith.mulf %289, %282 : vector<32x4xf32>
    %291 = math.exp %290 : vector<32x4xf32>
    %cst_93 = arith.constant dense<0.000000e+00> : vector<32x64xf32>
    %292 = tpu.matmul %288, %16, %cst_93 {dimension_numbers = #tpu.dot_dimension_numbers<[1], [0], [0], [1], [0, 0, 1, 1], [], []>} : vector<32x4xf32>, vector<4x64xf32>, vector<32x64xf32> -> vector<32x64xf32>
    %293 = arith.mulf %292, %265 : vector<32x64xf32>
    %cst_94 = arith.constant dense<0.000000e+00> : vector<32x64xf32>
    %294 = tpu.matmul %291, %16, %cst_94 {dimension_numbers = #tpu.dot_dimension_numbers<[1], [0], [0], [1], [0, 0, 1, 1], [], []>} : vector<32x4xf32>, vector<4x64xf32>, vector<32x64xf32> -> vector<32x64xf32>
    %cst_95 = arith.constant dense<0.000000e+00> : vector<32x64xf32>
    %295 = tpu.matmul %269, %293, %cst_95 {dimension_numbers = #tpu.dot_dimension_numbers<[1], [0], [0], [1], [0, 0, 1, 1], [], []>} : vector<32x32xf32>, vector<32x64xf32>, vector<32x64xf32> -> vector<32x64xf32>
    %296 = arith.mulf %294, %295 : vector<32x64xf32>
    %297 = vector.broadcast %13 : vector<1x64xf32> to vector<32x64xf32>
    %298 = arith.mulf %297, %265 : vector<32x64xf32>
    %299 = arith.addf %296, %298 : vector<32x64xf32>
    %cst_96 = arith.constant 0.000000e+00 : f32
    %300 = vector.broadcast %cst_96 : f32 to vector<32x64xf32>
    %301 = arith.subf %300, %222 : vector<32x64xf32>
    %302 = math.exp %301 : vector<32x64xf32>
    %cst_97 = arith.constant 1.000000e+00 : f32
    %303 = vector.broadcast %cst_97 : f32 to vector<32x64xf32>
    %304 = arith.addf %303, %302 : vector<32x64xf32>
    %cst_98 = arith.constant 1.000000e+00 : f32
    %305 = vector.broadcast %cst_98 : f32 to vector<32x64xf32>
    %306 = arith.divf %305, %304 : vector<32x64xf32>
    %307 = arith.mulf %222, %306 : vector<32x64xf32>
    %308 = arith.mulf %299, %307 : vector<32x64xf32>
    %309 = arith.mulf %308, %308 : vector<32x64xf32>
    %cst_99 = arith.constant dense<0.000000e+00> : vector<32xf32>
    %310 = vector.multi_reduction <add>, %309, %cst_99 [1] : vector<32x64xf32> to vector<32xf32>
    %311 = vector.shape_cast %310 : vector<32xf32> to vector<32x1xf32>
    %cst_100 = arith.constant 6.400000e+01 : f32
    %312 = vector.broadcast %cst_100 : f32 to vector<32x1xf32>
    %313 = arith.divf %311, %312 : vector<32x1xf32>
    %cst_101 = arith.constant 9.99999974E-6 : f32
    %314 = vector.broadcast %cst_101 : f32 to vector<32x1xf32>
    %315 = arith.addf %313, %314 : vector<32x1xf32>
    %316 = math.rsqrt %315 : vector<32x1xf32>
    %317 = vector.broadcast %316 : vector<32x1xf32> to vector<32x64xf32>
    %318 = arith.mulf %308, %317 : vector<32x64xf32>
    %319 = vector.broadcast %14 : vector<1x64xf32> to vector<32x64xf32>
    %320 = arith.mulf %318, %319 : vector<32x64xf32>
    %c0_102 = arith.constant 0 : index
    %c128_103 = arith.constant 128 : index
    %321 = vector.load %arg3[%c0_102, %c128_103] : memref<64x256xf32, #tpu.memory_space<vmem>>, vector<64x32xf32>
    %cst_104 = arith.constant dense<0.000000e+00> : vector<32x32xf32>
    %322 = tpu.matmul %320, %321, %cst_104 {dimension_numbers = #tpu.dot_dimension_numbers<[1], [0], [0], [1], [0, 0, 1, 1], [], []>} : vector<32x64xf32>, vector<64x32xf32>, vector<32x32xf32> -> vector<32x32xf32>
    %323 = arith.addf %207, %322 : vector<32x32xf32>
    %c0_105 = arith.constant 0 : index
    %c0_106 = arith.constant 0 : index
    %324 = vector.load %arg4[%c0_105, %c0_106] : memref<32x32xf32, #tpu.memory_space<vmem>>, vector<32x32xf32>
    tpu.vector_store %arg4[%c0_105, %c0_106], %323 {strides = array<i32>} : memref<32x32xf32, #tpu.memory_space<vmem>>, vector<32x32xf32>,
    return
  }
}

</mosaic_0001>

<bundles_post_ra>
// kernel: tile.13
= control target key start
LH: loop header
LB: loop body
LE: loop exit
PB: predicated region body
PF: predicated region fallthrough
CT: control target
= control target key end

     0   :  { %s250_s0 = inlined_call_operand.vmem [shape: f32[16,8], index: 0, kind: input, shape index: {}]   ;;  %s251_s1 = inlined_call_operand.vmem [shape: f32[2,16,4,8], index: 1, kind: output, shape index: {}]  }
   0x1   :  { %v4_v0 = vld [vmem:[%s250_s0] ss:$0 sm:$0xff]  ;;  %v85_v1 = vld [vmem:[%s250_s0 + $0x1] ss:$0 sm:$0xff]  ;;  %v90_v2 = vld [vmem:[%s250_s0 + $0x2] ss:$0 sm:$0xff] }
   0x2   :  { %5 = vst [vmem:[%s251_s1] sm:$0x3] %v4_v0  ;;  %82 = vst [vmem:[%s251_s1 + $0x10] sm:$0x3] %v4_v0  ;;  %v95_v3 = vld [vmem:[%s250_s0 + $0x3] ss:$0 sm:$0xff] }
   0x3   :  { %83 = vst [vmem:[%s251_s1 + $0x20] sm:$0x3] %v4_v0  ;;  %84 = vst [vmem:[%s251_s1 + $0x30] sm:$0x3] %v4_v0  ;;  %v100_v4 = vld [vmem:[%s250_s0 + $0x4] ss:$0 sm:$0xff] }
   0x4   :  { %86 = vst [vmem:[%s251_s1 + $0x2] sm:$0x3] %v85_v1  ;;  %87 = vst [vmem:[%s251_s1 + $0x12] sm:$0x3] %v85_v1  ;;  %v105_v5 = vld [vmem:[%s250_s0 + $0x5] ss:$0 sm:$0xff] }
   0x5   :  { %88 = vst [vmem:[%s251_s1 + $0x22] sm:$0x3] %v85_v1  ;;  %89 = vst [vmem:[%s251_s1 + $0x32] sm:$0x3] %v85_v1  ;;  %v110_v6 = vld [vmem:[%s250_s0 + $0x6] ss:$0 sm:$0xff] }
   0x6   :  { %91 = vst [vmem:[%s251_s1 + $0x4] sm:$0x3] %v90_v2  ;;  %92 = vst [vmem:[%s251_s1 + $0x14] sm:$0x3] %v90_v2  ;;  %v115_v7 = vld [vmem:[%s250_s0 + $0x7] ss:$0 sm:$0xff] }
   0x7   :  { %93 = vst [vmem:[%s251_s1 + $0x24] sm:$0x3] %v90_v2  ;;  %94 = vst [vmem:[%s251_s1 + $0x34] sm:$0x3] %v90_v2 }
   0x8   :  { %96 = vst [vmem:[%s251_s1 + $0x6] sm:$0x3] %v95_v3  ;;  %97 = vst [vmem:[%s251_s1 + $0x16] sm:$0x3] %v95_v3 }
   0x9   :  { %98 = vst [vmem:[%s251_s1 + $0x26] sm:$0x3] %v95_v3  ;;  %99 = vst [vmem:[%s251_s1 + $0x36] sm:$0x3] %v95_v3 }
   0xa   :  { %101 = vst [vmem:[%s251_s1 + $0x8] sm:$0x3] %v100_v4  ;;  %102 = vst [vmem:[%s251_s1 + $0x18] sm:$0x3] %v100_v4 }
   0xb   :  { %103 = vst [vmem:[%s251_s1 + $0x28] sm:$0x3] %v100_v4  ;;  %104 = vst [vmem:[%s251_s1 + $0x38] sm:$0x3] %v100_v4 }
   0xc   :  { %106 = vst [vmem:[%s251_s1 + $0xa] sm:$0x3] %v105_v5  ;;  %107 = vst [vmem:[%s251_s1 + $0x1a] sm:$0x3] %v105_v5 }
   0xd   :  { %108 = vst [vmem:[%s251_s1 + $0x2a] sm:$0x3] %v105_v5  ;;  %109 = vst [vmem:[%s251_s1 + $0x3a] sm:$0x3] %v105_v5 }
   0xe   :  { %111 = vst [vmem:[%s251_s1 + $0xc] sm:$0x3] %v110_v6  ;;  %112 = vst [vmem:[%s251_s1 + $0x1c] sm:$0x3] %v110_v6 }
   0xf   :  { %113 = vst [vmem:[%s251_s1 + $0x2c] sm:$0x3] %v110_v6  ;;  %114 = vst [vmem:[%s251_s1 + $0x3c] sm:$0x3] %v110_v6 }
  0x10   :  { %116 = vst [vmem:[%s251_s1 + $0xe] sm:$0x3] %v115_v7  ;;  %117 = vst [vmem:[%s251_s1 + $0x1e] sm:$0x3] %v115_v7 }
  0x11   :  { %118 = vst [vmem:[%s251_s1 + $0x2e] sm:$0x3] %v115_v7  ;;  %119 = vst [vmem:[%s251_s1 + $0x3e] sm:$0x3] %v115_v7 }

// kernel: timespace_block_forward.1
= control target key start
LH: loop header
LB: loop body
LE: loop exit
PB: predicated region body
PF: predicated region fallthrough
CT: control target
= control target key end

     0   :  { %vm54_vm0 = vcmask 261120   ;;  %s5442_s0 = inlined_call_operand.vmem [shape: f32[32,32], index: 0, kind: input, shape index: {}]   ;;  %s5443_s1 = inlined_call_operand.vmem [shape: f32[152,128], index: 1, kind: input, shape index: {}]   ;;  %s5444_s2 = inlined_call_operand.vmem [shape: f32[32,640], index: 2, kind: input, shape index: {}]   ;;  %s5445_s3 = inlined_call_operand.vmem [shape: f32[64,256], index: 3, kind: input, shape index: {}]   ;;  %s5446_s4 = inlined_call_operand.hbm [shape: f32[32,32], index: 4, kind: output, shape index: {}]  }
   0x1   :  { %v18_v0 = vld [vmem:[%s5442_s0] sm:$0xff]  ;;  %v20_v1 = vld [vmem:[%s5442_s0 + $0x10] sm:$0xff]  ;;  %v19_v2 = vld [vmem:[%s5442_s0 + $0x8] sm:$0xff] }
   0x2   :  { %v55_v3 = vsel %vm54_vm0, %v18_v0, 0.0  ;;  %v61_v4 = vsel %vm54_vm0, %v20_v1, 0.0  ;;  %v21_v5 = vld [vmem:[%s5442_s0 + $0x18] sm:$0xff] }
   0x3   :  { %9 = vsyncpa [#allocation3], 0  ;;  %56 = vadd.xlane.f32.xlu0 %v55_v3  ;;  %62 = vadd.xlane.f32.xlu1 %v61_v4  ;;  %v58_v6 = vsel %vm54_vm0, %v19_v2, 0.0  ;;  %v64_v7 = vsel %vm54_vm0, %v21_v5, 0.0  ;;  %v124_v28 = vld [vmem:[%s5444_s2] sm:$0xff]  ;;  %v125_v29 = vld [vmem:[%s5444_s2 + $0x28] sm:$0xff] }
   0x4   :  { %v126_v30 = vld [vmem:[%s5444_s2 + $0x50] sm:$0xff]  ;;  %v3839_v31 = vpack.c.bf16 %v125_v29, %v124_v28  ;;  %v127_v32 = vld [vmem:[%s5444_s2 + $0x78] sm:$0xff]  ;;  %v3326_v47 = vld [vmem:[%s5443_s1] ss:$0 sm:$0xff]  ;;  %s4325_s11 = smov 100   ;;  %s4326_s12 = smov 92  }
   0x5   :  { %v3843_v33 = vpack.c.bf16 %v127_v32, %v126_v30  ;;  %v3327_v49 = vld [vmem:[%s5443_s1 + $0x1] ss:$0 sm:$0xff]  ;;  %s4327_s15 = smov 32   ;;  %vm269_vm1 = vcmask 31744   ;;  %vm274_vm2 = vcmask 64512   ;;  %vm279_vm3 = vcmask 97280  }
   0x6   :  { %3840 = vmatprep.subr.bf16.mxu1 %v3839_v31  ;;  %vm284_vm4 = vcmask 130048   ;;  %vm289_vm5 = vcmask 162816   ;;  %vm294_vm6 = vcmask 195584   ;;  %vm299_vm7 = vcmask 228352   ;;  %s4328_s30 = smov 124   ;;  %s4329_s5 = smov 96   ;;  %vm4551_vm8 = vmpackc.low %vm274_vm2, %vm274_vm2 }
   0x7   :  { %59 = vadd.xlane.f32.xlu0 %v58_v6  ;;  %65 = vadd.xlane.f32.xlu1 %v64_v7  ;;  %s4330_s6 = smov 4   ;;  %s4331_s16 = smov 64   ;;  %vm1910_vm9 = vcmask 523264   ;;  %vm2189_vm10 = vcmask 1042432   ;;  %vm2264_vm11 = vcmask 1041408   ;;  %vm2335_vm12 = vcmask 1040384   ;;  %vm5297_vm14 = vmpackc.low %vm284_vm4, %vm284_vm4 }
   0x8   :  { %3842 = vmatpush3.bf16.msra.mxu1 %v3839_v31  ;;  %s4332_s17 = smov 88   ;;  %s4333_s18 = smov 120   ;;  %vm2805_vm13 = vcmask 1043456  }
   0x9   :  { %3844 = vmatprep.subr.bf16.mxu1 %v3843_v33  ;;  %s4334_s19 = smov 56   ;;  %s4335_s20 = smov 80  }
   0xa   :  { %s4336_s21 = smov 112   ;;  %s4337_s22 = smov 48  }
   0xb   :  { %s4338_s23 = smov 72   ;;  %s4339_s24 = smov 104  }
   0xc   :  { %3846 = vmatpush3.bf16.msra.mxu1 %v3843_v33  ;;  %s4340_s25 = smov 40   ;;  %s4341_s26 = smov 8  }
   0xd   :  { %s4342_s27 = smov 16  }
  0x90   :  { %v57_v8 = vpop.xlane.xlu0 %56  ;;  %v63_v9 = vpop.xlane.xlu1 %62 }
  0x91   :  { %v68_v10 = vmul.f32 0.03125, %v57_v8  ;;  %v70_v11 = vmul.f32 0.03125, %v63_v9 }
  0x93   :  { %v72_v12 = vsub.f32 %v18_v0, %v68_v10  ;;  %v74_v13 = vsub.f32 %v20_v1, %v70_v11  ;;  %v3328_v0 = vld [vmem:[%s5443_s1 + $0x2] ss:$0 sm:$0xff] }
  0x94   :  { %v60_v14 = vpop.xlane.xlu0 %59  ;;  %v66_v15 = vpop.xlane.xlu1 %65 }
  0x95   :  { %v69_v16 = vmul.f32 0.03125, %v60_v14  ;;  %v71_v17 = vmul.f32 0.03125, %v66_v15  ;;  %v76_v18 = vmul.f32 %v72_v12, %v72_v12  ;;  %v78_v19 = vmul.f32 %v74_v13, %v74_v13  ;;  %v4451_v14 = vld [vmem:[%s5443_s1 + $0x20] sm:$0xff] }
  0x97   :  { %v73_v20 = vsub.f32 %v19_v2, %v69_v16  ;;  %v75_v21 = vsub.f32 %v21_v5, %v71_v17  ;;  %v80_v22 = vsel %vm54_vm0, %v76_v18, 0.0  ;;  %v86_v23 = vsel %vm54_vm0, %v78_v19, 0.0 }
  0x98   :  { %81 = vadd.xlane.f32.xlu0 %v80_v22 }
  0x99   :  { %v77_v24 = vmul.f32 %v73_v20, %v73_v20  ;;  %v79_v25 = vmul.f32 %v75_v21, %v75_v21 }
  0x9b   :  { %v83_v26 = vsel %vm54_vm0, %v77_v24, 0.0  ;;  %v89_v27 = vsel %vm54_vm0, %v79_v25, 0.0 }
  0x9c   :  { %87 = vadd.xlane.f32.xlu0 %v86_v23  ;;  %84 = vadd.xlane.f32.xlu1 %v83_v26  ;;  %v4464_v26 = vld [vmem:[%s5443_s1 + $0x38] sm:$0xff] }
  0xa0   :  { %90 = vadd.xlane.f32.xlu1 %v89_v27 }
 0x125   :  { %v82_v34 = vpop.xlane.xlu0 %81 }
 0x126   :  { %v92_v35 = vmul.f32 0.03125, %v82_v34 }
 0x128   :  { %v96_v36 = vadd.f32 1e-05, %v92_v35 }
 0x129   :  { %v85_v37 = vpop.xlane.xlu1 %84  ;;  %v88_v38 = vpop.xlane.xlu0 %87 }
 0x12a   :  { %4113 = vrsqrt.f32 %v96_v36  ;;  %v93_v39 = vmul.f32 0.03125, %v85_v37  ;;  %v94_v40 = vmul.f32 0.03125, %v88_v38  ;;  %v4477_v37 = vld [vmem:[%s5443_s1 + $0x40] sm:$0xff] }
 0x12c   :  { %v97_v41 = vadd.f32 1e-05, %v93_v39  ;;  %v98_v42 = vadd.f32 1e-05, %v94_v40 }
 0x12d   :  { %v91_v43 = vpop.xlane.xlu1 %90 }
 0x12e   :  { %4115 = vrsqrt.f32 %v97_v41  ;;  %v95_v44 = vmul.f32 0.03125, %v91_v43 }
 0x12f   :  { %4117 = vrsqrt.f32 %v98_v42 }
 0x130   :  { %v99_v45 = vadd.f32 1e-05, %v95_v44 }
 0x132   :  { %4119 = vrsqrt.f32 %v99_v45 }
 0x134   :  { %v4114_v46 = vpop.eup %4113 }
 0x135   :  { %v104_v48 = vmul.f32 %v4114_v46, %v72_v12  ;;  %v4490_v46 = vld [vmem:[%s5443_s1 + $0x48] sm:$0xff] }
 0x137   :  { %v112_v50 = vmul.f32 %v3326_v47, %v104_v48  ;;  %v4496_v48 = vld [vmem:[%s5443_s1 + $0x28] sm:$0xff] }
 0x138   :  { %v4116_v51 = vpop.eup %4115 }
 0x139   :  { %v4118_v52 = vpop.eup %4117  ;;  %v120_v53 = vadd.f32 %v3327_v49, %v112_v50  ;;  %v105_v54 = vmul.f32 %v4116_v51, %v73_v20 }
 0x13a   :  { %v106_v55 = vmul.f32 %v4118_v52, %v74_v13  ;;  %v4443_v13 = vld [vmem:[%s5443_s1 + $0x18] sm:$0xff] }
 0x13b   :  { %3591 = vmatprep.mubr.msk.f32.mxu1 %vm54_vm0, %v120_v53  ;;  %v113_v56 = vmul.f32 %v3326_v47, %v105_v54 }
 0x13c   :  { %v4120_v57 = vpop.eup %4119  ;;  %v114_v58 = vmul.f32 %v3326_v47, %v106_v55 }
 0x13d   :  { %v121_v59 = vadd.f32 %v3327_v49, %v113_v56  ;;  %v107_v60 = vmul.f32 %v4120_v57, %v75_v21  ;;  %v4511_v56 = vld [vmem:[%s5443_s1 + $0x30] sm:$0xff] }
 0x13e   :  { %v122_v61 = vadd.f32 %v3327_v49, %v114_v58  ;;  %v4516_v57 = vld [vmem:[%s5443_s1 + $0x50] sm:$0xff] }
 0x13f   :  { %3592 = vmatmul.mubr.msk.f32.vlgmr.msra.gmra.mrb[0].mxu1 %vm54_vm0, %v121_v59  ;;  %v115_v62 = vmul.f32 %v3326_v47, %v107_v60 }
 0x140   :  { %3594 = vmatprep.mubr.msk.f32.mxu1 %vm54_vm0, %v122_v61 }
 0x141   :  { %v123_v63 = vadd.f32 %v3327_v49, %v115_v62 }
 0x143   :  { %3595 = vmatmul.mubr.msk.f32.gmra.mrb[2].mxu1 %vm54_vm0, %v123_v63 }
 0x212   :  { %v3593_v1 = vpop.f32.mrb[0].mxu1 }
 0x213   :  { %v4417_v2 = vadd.f32 %v3593_v1, %v3328_v0  ;;  %v210_v3 = vpop.f32.mrb[1].mxu1 }
 0x214   :  { %v4419_v4 = vadd.f32 %v3328_v0, %v210_v3 }
 0x215   :  { %346 = vrot.lane.b32.xlu1 %v4417_v2, %s4325_s11  ;;  %v234_v11 = vsub.f32 0.0, %v4417_v2 }
 0x216   :  { %v3596_v5 = vpop.f32.mrb[2].mxu1  ;;  %v233_v6 = vsub.f32 0.0, %v4419_v4 }
 0x217   :  { %v220_v7 = vpop.f32.mrb[3].mxu1  ;;  %v4429_v10 = vadd.f32 %v3596_v5, %v3328_v0 }
 0x218   :  { %v4423_v8 = vadd.f32 %v3328_v0, %v220_v7  ;;  %332 = vrot.lane.b32.xlu0 %v233_v6, %s4326_s12 }
 0x219   :  { %344 = vrot.lane.b32.xlu1 %v4419_v4, %s4325_s11  ;;  %v236_v12 = vsub.f32 0.0, %v4429_v10 }
 0x21a   :  { %v235_v9 = vsub.f32 0.0, %v4423_v8 }
 0x21c   :  { %336 = vrot.lane.b32.xlu0 %v235_v9, %s4326_s12 }
 0x21d   :  { %334 = vrot.lane.b32.xlu1 %v234_v11, %s4326_s12 }
 0x220   :  { %348 = vrot.lane.b32.xlu0 %v4423_v8, %s4325_s11 }
 0x221   :  { %338 = vrot.lane.b32.xlu1 %v236_v12, %s4326_s12 }
 0x224   :  { %316 = vrot.lane.b32.xlu0 %v4443_v13, %s4327_s15 }
 0x225   :  { %350 = vrot.lane.b32.xlu1 %v4429_v10, %s4325_s11  ;;  %s4343_s11 = smov 24  }
 0x229   :  { %318 = vrot.lane.b32.xlu1 %v4451_v14, %s4327_s15 }
 0x287   :  { %v347_v15 = vpop.permute.xlu1 %346 }
 0x28a   :  { %v333_v16 = vpop.permute.xlu0 %332 }
 0x28b   :  { %v345_v17 = vpop.permute.xlu1 %344 }
 0x28c   :  { %v356_v18 = vsel %vm269_vm1, %v333_v16, %v345_v17 }
 0x28d   :  { %v360_v19 = vsel %vm274_vm2, %v356_v18, %v333_v16 }
 0x28e   :  { %v364_v20 = vsel %vm279_vm3, %v360_v19, %v345_v17  ;;  %v337_v21 = vpop.permute.xlu0 %336 }
 0x28f   :  { %v368_v22 = vsel %vm284_vm4, %v364_v20, %v333_v16  ;;  %v335_v23 = vpop.permute.xlu1 %334 }
 0x290   :  { %v372_v24 = vsel %vm289_vm5, %v368_v22, %v345_v17  ;;  %v357_v25 = vsel %vm269_vm1, %v335_v23, %v347_v15 }
 0x291   :  { %v361_v27 = vsel %vm274_vm2, %v357_v25, %v335_v23  ;;  %v376_v28 = vsel %vm294_vm6, %v372_v24, %v333_v16 }
 0x292   :  { %v365_v29 = vsel %vm279_vm3, %v361_v27, %v347_v15  ;;  %v349_v30 = vpop.permute.xlu0 %348  ;;  %v380_v31 = vsel %vm299_vm7, %v376_v28, %v345_v17 }
 0x293   :  { %v369_v32 = vsel %vm284_vm4, %v365_v29, %v335_v23  ;;  %v358_v33 = vsel %vm269_vm1, %v337_v21, %v349_v30  ;;  %v339_v34 = vpop.permute.xlu1 %338  ;;  %v384_v35 = vmul.f32 %v380_v31, %v4464_v26 }
 0x294   :  { %v362_v36 = vsel %vm274_vm2, %v358_v33, %v337_v21  ;;  %v373_v38 = vsel %vm289_vm5, %v369_v32, %v347_v15 }
 0x295   :  { %v366_v39 = vsel %vm279_vm3, %v362_v36, %v349_v30  ;;  %392 = vrot.lane.b32.xlu0 %v384_v35, %s4327_s15  ;;  %v377_v40 = vsel %vm294_vm6, %v373_v38, %v335_v23 }
 0x296   :  { %v370_v41 = vsel %vm284_vm4, %v366_v39, %v337_v21  ;;  %v381_v42 = vsel %vm299_vm7, %v377_v40, %v347_v15  ;;  %v317_v61 = vpop.permute.xlu0 %316 }
 0x297   :  { %v374_v43 = vsel %vm289_vm5, %v370_v41, %v349_v30  ;;  %v351_v44 = vpop.permute.xlu1 %350  ;;  %v385_v45 = vmul.f32 %v381_v42, %v4477_v37  ;;  %v328_v0 = vmul.f32 %v317_v61, %v4419_v4 }
 0x298   :  { %v359_v47 = vsel %vm269_vm1, %v339_v34, %v351_v44  ;;  %v378_v49 = vsel %vm294_vm6, %v374_v43, %v337_v21 }
 0x299   :  { %v363_v50 = vsel %vm274_vm2, %v359_v47, %v339_v34  ;;  %394 = vrot.lane.b32.xlu1 %v385_v45, %s4327_s15  ;;  %320 = vrot.lane.b32.xlu0 %v4496_v48, %s4327_s15  ;;  %v382_v51 = vsel %vm299_vm7, %v378_v49, %v349_v30  ;;  %v229_v47 = vmul.f32 %v4419_v4, %v4443_v13 }
 0x29a   :  { %v367_v52 = vsel %vm279_vm3, %v363_v50, %v351_v44  ;;  %v386_v53 = vmul.f32 %v382_v51, %v4490_v46 }
 0x29b   :  { %v371_v54 = vsel %vm284_vm4, %v367_v52, %v339_v34  ;;  %v319_v62 = vpop.permute.xlu1 %318 }
 0x29c   :  { %v375_v55 = vsel %vm289_vm5, %v371_v54, %v351_v44  ;;  %v329_v1 = vmul.f32 %v319_v62, %v4417_v2 }
 0x29d   :  { %322 = vrot.lane.b32.xlu1 %v4511_v56, %s4327_s15  ;;  %396 = vrot.lane.b32.xlu0 %v386_v53, %s4327_s15  ;;  %v379_v58 = vsel %vm294_vm6, %v375_v55, %v339_v34 }
 0x29e   :  { %v383_v59 = vsel %vm299_vm7, %v379_v58, %v351_v44 }
 0x29f   :  { %v387_v60 = vmul.f32 %v383_v59, %v4516_v57 }
 0x2a1   :  { %398 = vrot.lane.b32.xlu1 %v387_v60, %s4327_s15  ;;  %v230_v60 = vmul.f32 %v4417_v2, %v4451_v14 }
 0x2a5   :  { %241 = vrot.lane.b32.xlu1 %v233_v6, %s4328_s30 }
 0x2a9   :  { %243 = vrot.lane.b32.xlu1 %v234_v11, %s4328_s30 }
 0x307   :  { %v393_v63 = vpop.permute.xlu0 %392 }
 0x308   :  { %v404_v7 = vadd.f32 %v393_v63, %v328_v0 }
 0x30b   :  { %v395_v3 = vpop.permute.xlu1 %394  ;;  %v321_v5 = vpop.permute.xlu0 %320 }
 0x30c   :  { %v405_v15 = vadd.f32 %v395_v3, %v329_v1  ;;  %v330_v11 = vmul.f32 %v321_v5, %v4423_v8 }
 0x30e   :  { %v4531_v16 = vpack.i.bf16 %v405_v15, %v404_v7 }
 0x30f   :  { %v323_v17 = vpop.permute.xlu1 %322  ;;  %v397_v6 = vpop.permute.xlu0 %396 }
 0x310   :  { %4034 = vrot.lane.b32.xlu0 %v4531_v16, %s4329_s5  ;;  %v331_v18 = vmul.f32 %v323_v17, %v4429_v10  ;;  %v406_v20 = vadd.f32 %v397_v6, %v330_v11  ;;  %v231_v17 = vmul.f32 %v4423_v8, %v4496_v48 }
 0x313   :  { %v399_v19 = vpop.permute.xlu1 %398 }
 0x314   :  { %v407_v21 = vadd.f32 %v399_v19, %v331_v18  ;;  %257 = vrot.lane.b32.xlu0 %v4419_v4, %s4330_s6 }
 0x316   :  { %v4538_v22 = vpack.i.bf16 %v407_v21, %v406_v20 }
 0x317   :  { %v242_v23 = vpop.permute.xlu1 %241 }
 0x318   :  { %259 = vrot.lane.b32.xlu0 %v4417_v2, %s4330_s6  ;;  %4039 = vrot.lane.b32.xlu1 %v4538_v22, %s4329_s5 }
 0x31b   :  { %v244_v30 = vpop.permute.xlu1 %243 }
 0x31c   :  { %245 = vrot.lane.b32.xlu0 %v235_v9, %s4328_s30  ;;  %261 = vrot.lane.b32.xlu1 %v4423_v8, %s4330_s6 }
 0x320   :  { %247 = vrot.lane.b32.xlu0 %v236_v12, %s4328_s30  ;;  %263 = vrot.lane.b32.xlu1 %v4429_v10, %s4330_s6 }
 0x382   :  { %v4035_v24 = vpop.permute.xlu0 %4034 }
 0x383   :  { %v4037_v25 = vunpack.i.h.bf16 %v4035_v24  ;;  %v4036_v27 = vunpack.i.l.bf16 %v4035_v24 }
 0x385   :  { %v3847_v29 = vpack.c.bf16 %v4037_v25, %v4036_v27  ;;  %v4622_v25 = vld [vmem:[%s5443_s1 + $0x80] sm:$0xff] }
 0x386   :  { %v258_v9 = vpop.permute.xlu0 %257 }
 0x387   :  { %v270_v31 = vsel %vm269_vm1, %v242_v23, %v258_v9  ;;  %3849 = vmatprep.subr.msk.bf16.mxu1 %vm4551_vm8, %v3847_v29 }
 0x388   :  { %v275_v12 = vsel %vm274_vm2, %v270_v31, %v242_v23  ;;  %3852 = vmatpush3.bf16.xpose.msk.msra.mxu1 %vm4551_vm8, %v3847_v29 }
 0x389   :  { %v280_v32 = vsel %vm279_vm3, %v275_v12, %v258_v9 }
 0x38a   :  { %v285_v33 = vsel %vm284_vm4, %v280_v32, %v242_v23  ;;  %v4040_v34 = vpop.permute.xlu1 %4039  ;;  %v260_v35 = vpop.permute.xlu0 %259 }
 0x38b   :  { %v290_v36 = vsel %vm289_vm5, %v285_v33, %v258_v9  ;;  %v4042_v38 = vunpack.i.h.bf16 %v4040_v34  ;;  %v4041_v39 = vunpack.i.l.bf16 %v4040_v34  ;;  %v271_v40 = vsel %vm269_vm1, %v244_v30, %v260_v35  ;;  %v4636_v34 = vld [vmem:[%s5443_s1 + $0x88] sm:$0xff] }
 0x38c   :  { %v295_v41 = vsel %vm294_vm6, %v290_v36, %v242_v23  ;;  %v276_v42 = vsel %vm274_vm2, %v271_v40, %v244_v30  ;;  %v232_v23 = vmul.f32 %v4429_v10, %v4511_v56  ;;  %v4627_v56 = vld [vmem:[%s5443_s1 + $0x78] sm:$0xff] }
 0x38d   :  { %v300_v43 = vsel %vm299_vm7, %v295_v41, %v258_v9  ;;  %v3853_v44 = vpack.c.bf16 %v4042_v38, %v4041_v39  ;;  %v281_v45 = vsel %vm279_vm3, %v276_v42, %v260_v35  ;;  %v4641_v38 = vld [vmem:[%s5443_s1 + $0x90] sm:$0xff] }
 0x38e   :  { %v286_v49 = vsel %vm284_vm4, %v281_v45, %v244_v30  ;;  %v262_v50 = vpop.permute.xlu1 %261  ;;  %v246_v51 = vpop.permute.xlu0 %245  ;;  %v304_v52 = vmul.f32 %v300_v43, %v4464_v26 }
 0x38f   :  { %v291_v53 = vsel %vm289_vm5, %v286_v49, %v260_v35  ;;  %v272_v54 = vsel %vm269_vm1, %v246_v51, %v262_v50  ;;  %3855 = vmatprep.subr.msk.bf16.mxu1 %vm4551_vm8, %v3853_v44 }
 0x390   :  { %v296_v55 = vsel %vm294_vm6, %v291_v53, %v244_v30  ;;  %v277_v58 = vsel %vm274_vm2, %v272_v54, %v246_v51  ;;  %3858 = vmatpush3.bf16.xpose.msk.msra.mxu1 %vm4551_vm8, %v3853_v44  ;;  %v4581_v13 = vadd.f32 %v304_v52, %v229_v47 }
 0x391   :  { %v301_v59 = vsel %vm299_vm7, %v296_v55, %v260_v35  ;;  %v282_v26 = vsel %vm279_vm3, %v277_v58, %v262_v50  ;;  %v4651_v55 = vpack.i.bf16 %v4429_v10, %v4423_v8  ;;  %v4658_v58 = vpack.i.bf16 %v4417_v2, %v4419_v4 }
 0x392   :  { %v305_v61 = vmul.f32 %v301_v59, %v4477_v37  ;;  %v287_v62 = vsel %vm284_vm4, %v282_v26, %v246_v51  ;;  %v264_v63 = vpop.permute.xlu1 %263  ;;  %3605 = vmatprep.mubr.msk.f32.mxu1 %vm274_vm2, %v4581_v13  ;;  %v248_v0 = vpop.permute.xlu0 %247 }
 0x393   :  { %v292_v1 = vsel %vm289_vm5, %v287_v62, %v262_v50  ;;  %v273_v3 = vsel %vm269_vm1, %v248_v0, %v264_v63 }
 0x394   :  { %v4593_v5 = vadd.f32 %v305_v61, %v230_v60  ;;  %v297_v7 = vsel %vm294_vm6, %v292_v1, %v246_v51  ;;  %v278_v15 = vsel %vm274_vm2, %v273_v3, %v248_v0 }
 0x395   :  { %v283_v14 = vsel %vm279_vm3, %v278_v15, %v264_v63  ;;  %v302_v37 = vsel %vm299_vm7, %v297_v7, %v262_v50 }
 0x396   :  { %v288_v6 = vsel %vm284_vm4, %v283_v14, %v248_v0  ;;  %v306_v11 = vmul.f32 %v302_v37, %v4490_v46 }
 0x397   :  { %v293_v18 = vsel %vm289_vm5, %v288_v6, %v264_v63  ;;  %3606 = vmatmul.mubr.msk.f32.vlgmr.msra.gmra.mrb[4].mxu1 %vm274_vm2, %v4593_v5 }
 0x398   :  { %v298_v19 = vsel %vm294_vm6, %v293_v18, %v248_v0  ;;  %v4607_v20 = vadd.f32 %v306_v11, %v231_v17 }
 0x399   :  { %v303_v21 = vsel %vm299_vm7, %v298_v19, %v264_v63 }
 0x39a   :  { %3608 = vmatprep.mubr.msk.f32.mxu1 %vm274_vm2, %v4607_v20  ;;  %v307_v48 = vmul.f32 %v303_v21, %v4516_v57 }
 0x39c   :  { %v4615_v46 = vadd.f32 %v307_v48, %v232_v23 }
 0x39e   :  { %3609 = vmatmul.mubr.msk.f32.gmra.mrb[6].mxu1 %vm274_vm2, %v4615_v46 }
 0x46a   :  { %v3607_v24 = vpop.f32.mrb[4].mxu1 }
 0x46b   :  { %v526_v27 = vmul.f32 0.35355338, %v3607_v24  ;;  %v506_v29 = vpop.f32.mrb[5].mxu1 }
 0x46c   :  { %v525_v30 = vmul.f32 0.35355338, %v506_v29 }
 0x46d   :  { %v530_v57 = vadd.f32 %v526_v27, %v4622_v25 }
 0x46e   :  { %v529_v9 = vadd.f32 %v525_v30, %v4627_v56 }
 0x46f   :  { %v536_v31 = vsel %vm54_vm0, %v530_v57, -inf }
 0x470   :  { %537 = vmax.xlane.f32.xlu1 %v536_v31  ;;  %v533_v12 = vsel %vm54_vm0, %v529_v9, -inf }
 0x471   :  { %534 = vmax.xlane.f32.xlu0 %v533_v12  ;;  %v3610_v32 = vpop.f32.mrb[6].mxu1 }
 0x472   :  { %v516_v33 = vpop.f32.mrb[7].mxu1  ;;  %v528_v35 = vmul.f32 0.35355338, %v3610_v32 }
 0x473   :  { %v527_v36 = vmul.f32 0.35355338, %v516_v33 }
 0x474   :  { %v532_v41 = vadd.f32 %v528_v35, %v4641_v38 }
 0x475   :  { %v531_v39 = vadd.f32 %v527_v36, %v4636_v34 }
 0x476   :  { %v542_v42 = vsel %vm54_vm0, %v532_v41, -inf }
 0x477   :  { %v539_v40 = vsel %vm54_vm0, %v531_v39, -inf }
 0x478   :  { %540 = vmax.xlane.f32.xlu0 %v539_v40 }
 0x47c   :  { %543 = vmax.xlane.f32.xlu0 %v542_v42 }
 0x4fd   :  { %v538_v43 = vpop.xlane.xlu1 %537 }
 0x4fe   :  { %v546_v44 = vsub.f32 %v530_v57, %v538_v43  ;;  %v535_v45 = vpop.xlane.xlu0 %534 }
 0x4ff   :  { %v545_v47 = vsub.f32 %v529_v9, %v535_v45 }
 0x500   :  { %v551_v49 = vmul.f32 1.442695, %v546_v44 }
 0x501   :  { %v549_v50 = vmul.f32 1.442695, %v545_v47 }
 0x502   :  { %4121 = vpow2.f32 %v551_v49 }
 0x503   :  { %4123 = vpow2.f32 %v549_v50 }
 0x505   :  { %v541_v59 = vpop.xlane.xlu0 %540 }
 0x506   :  { %v547_v26 = vsub.f32 %v531_v39, %v541_v59 }
 0x508   :  { %v553_v8 = vmul.f32 1.442695, %v547_v26 }
 0x509   :  { %v544_v10 = vpop.xlane.xlu0 %543 }
 0x50a   :  { %v548_v60 = vsub.f32 %v532_v41, %v544_v10  ;;  %4125 = vpow2.f32 %v553_v8 }
 0x50c   :  { %v4122_v51 = vpop.eup %4121  ;;  %v555_v61 = vmul.f32 1.442695, %v548_v60 }
 0x50d   :  { %v4124_v52 = vpop.eup %4123  ;;  %v560_v53 = vsel %vm54_vm0, %v4122_v51, 0.0 }
 0x50e   :  { %561 = vadd.xlane.f32.xlu1 %v560_v53  ;;  %v557_v54 = vsel %vm54_vm0, %v4124_v52, 0.0  ;;  %4127 = vpow2.f32 %v555_v61 }
 0x50f   :  { %558 = vadd.xlane.f32.xlu0 %v557_v54 }
 0x514   :  { %v4126_v62 = vpop.eup %4125 }
 0x515   :  { %v563_v63 = vsel %vm54_vm0, %v4126_v62, 0.0 }
 0x518   :  { %v4128_v0 = vpop.eup %4127 }
 0x519   :  { %v566_v2 = vsel %vm54_vm0, %v4128_v0, 0.0 }
 0x51f   :  { %4049 = vrot.lane.b32.xlu1 %v4651_v55, %s4331_s16 }
 0x523   :  { %4054 = vrot.lane.b32.xlu1 %v4531_v16, %s4332_s17 }
 0x525   :  { %4044 = vrot.lane.b32.xlu0 %v4658_v58, %s4331_s16 }
 0x527   :  { %4059 = vrot.lane.b32.xlu1 %v4538_v22, %s4332_s17 }
 0x544   :  { %564 = vadd.xlane.f32.xlu0 %v563_v63 }
 0x54b   :  { %567 = vadd.xlane.f32.xlu1 %v566_v2 }
 0x55a   :  { %686 = vrot.lane.b32.xlu0 %v4581_v13, %s4333_s18 }
 0x55c   :  { %688 = vrot.lane.b32.xlu1 %v4593_v5, %s4333_s18 }
 0x55e   :  { %690 = vrot.lane.b32.xlu0 %v4607_v20, %s4333_s18 }
 0x560   :  { %692 = vrot.lane.b32.xlu1 %v4615_v46, %s4333_s18 }
 0x59b   :  { %v562_v4 = vpop.xlane.xlu1 %561 }
 0x59c   :  { %v559_v1 = vpop.xlane.xlu0 %558 }
 0x59d   :  { %4129 = vrcp.f32 %v559_v1 }
 0x59e   :  { %4131 = vrcp.f32 %v562_v4 }
 0x59f   :  { %v4050_v3 = vpop.permute.xlu1 %4049 }
 0x5a0   :  { %v4045_v7 = vpop.permute.xlu0 %4044  ;;  %v4052_v15 = vunpack.i.h.bf16 %v4050_v3  ;;  %v4051_v14 = vunpack.i.l.bf16 %v4050_v3 }
 0x5a1   :  { %v4047_v37 = vunpack.i.h.bf16 %v4045_v7  ;;  %v4046_v17 = vunpack.i.l.bf16 %v4045_v7 }
 0x5a2   :  { %v3863_v21 = vpack.c.bf16 %v4052_v15, %v4051_v14 }
 0x5a3   :  { %v4055_v6 = vpop.permute.xlu1 %4054  ;;  %v3859_v11 = vpack.c.bf16 %v4047_v37, %v4046_v17 }
 0x5a4   :  { %v4057_v18 = vunpack.i.h.bf16 %v4055_v6  ;;  %v4056_v19 = vunpack.i.l.bf16 %v4055_v6 }
 0x5a5   :  { %3860 = vmatprep.subr.bf16.mxu0 %v3859_v11 }
 0x5a6   :  { %3862 = vmatpush3.bf16.msra.mxu0 %v3859_v11  ;;  %v3867_v27 = vpack.c.bf16 %v4057_v18, %v4056_v19 }
 0x5a7   :  { %v4130_v23 = vpop.eup %4129  ;;  %3864 = vmatprep.subr.bf16.mxu0 %v3863_v21  ;;  %v4060_v29 = vpop.permute.xlu1 %4059 }
 0x5a8   :  { %v4132_v48 = vpop.eup %4131  ;;  %v573_v24 = vmul.f32 %v4130_v23, %v4124_v52  ;;  %v4062_v57 = vunpack.i.h.bf16 %v4060_v29  ;;  %v4061_v9 = vunpack.i.l.bf16 %v4060_v29 }
 0x5a9   :  { %v574_v30 = vmul.f32 %v4132_v48, %v4122_v51 }
 0x5aa   :  { %3866 = vmatpush3.bf16.msra.mxu0 %v3863_v21  ;;  %3619 = vmatprep.mubr.msk.f32.mxu0 %vm54_vm0, %v573_v24  ;;  %v3873_v31 = vpack.c.bf16 %v4062_v57, %v4061_v9 }
 0x5ab   :  { %3869 = vmatprep.subr.msk.bf16.mxu0 %vm4551_vm8, %v3867_v27 }
 0x5ad   :  { %3620 = vmatmul.mubr.msk.f32.vlgmr.msra.gmra.mrb[0].mxu0 %vm54_vm0, %v574_v30 }
 0x5b3   :  { %3872 = vmatpush3.bf16.xpose.msk.msra.mxu0 %vm4551_vm8, %v3867_v27 }
 0x5b4   :  { %3875 = vmatprep.subr.msk.bf16.mxu0 %vm4551_vm8, %v3873_v31 }
 0x5bb   :  { %3878 = vmatpush3.bf16.xpose.msk.msra.mxu0 %vm4551_vm8, %v3873_v31 }
 0x5d1   :  { %v565_v12 = vpop.xlane.xlu0 %564 }
 0x5d2   :  { %4133 = vrcp.f32 %v565_v12 }
 0x5d5   :  { %v687_v39 = vpop.permute.xlu0 %686 }
 0x5d8   :  { %v568_v32 = vpop.xlane.xlu1 %567 }
 0x5d9   :  { %4135 = vrcp.f32 %v568_v32  ;;  %v691_v42 = vpop.permute.xlu0 %690 }
 0x5dc   :  { %v4134_v33 = vpop.eup %4133  ;;  %v689_v41 = vpop.permute.xlu1 %688 }
 0x5dd   :  { %v575_v35 = vmul.f32 %v4134_v33, %v4126_v62 }
 0x5df   :  { %3622 = vmatprep.mubr.msk.f32.mxu0 %vm54_vm0, %v575_v35 }
 0x5e0   :  { %v693_v43 = vpop.permute.xlu1 %692 }
 0x5e3   :  { %v4136_v36 = vpop.eup %4135 }
 0x5e4   :  { %v576_v40 = vmul.f32 %v4136_v36, %v4128_v0 }
 0x5e6   :  { %3623 = vmatmul.mubr.msk.f32.gmra.mrb[2].mxu0 %vm54_vm0, %v576_v40 }
 0x5e7   :  { %3633 = vmatprep.mubr.msk.f32.mxu0 %vm274_vm2, %v687_v39 }
 0x5ea   :  { %3634 = vmatmul.mubr.msk.f32.vlgmr.msra.gmra.mrb[4].mxu0 %vm274_vm2, %v689_v41 }
 0x5eb   :  { %3636 = vmatprep.mubr.msk.f32.mxu0 %vm274_vm2, %v691_v42 }
 0x5ee   :  { %3637 = vmatmul.mubr.msk.f32.gmra.mrb[6].mxu0 %vm274_vm2, %v693_v43 }
 0x680   :  { %v4685_v44 = vpop.f32.mrb[0].mxu0 }
 0x681   :  { %v4687_v45 = vpop.f32.mrb[1].mxu0 }
 0x6b9   :  { %v4689_v47 = vpop.f32.mrb[2].mxu0 }
 0x6ba   :  { %v4691_v49 = vpop.f32.mrb[3].mxu0 }
 0x6bd   :  { %v3635_v50 = vpop.f32.mrb[4].mxu0 }
 0x6be   :  { %v804_v51 = vmul.f32 0.35355338, %v3635_v50  ;;  %v784_v52 = vpop.f32.mrb[5].mxu0 }
 0x6bf   :  { %v803_v53 = vmul.f32 0.35355338, %v784_v52 }
 0x6c0   :  { %v808_v54 = vadd.f32 %v804_v51, %v4622_v25 }
 0x6c1   :  { %v3638_v59 = vpop.f32.mrb[6].mxu0  ;;  %v807_v26 = vadd.f32 %v803_v53, %v4627_v56 }
 0x6c2   :  { %v794_v8 = vpop.f32.mrb[7].mxu0  ;;  %v814_v10 = vsel %vm54_vm0, %v808_v54, -inf  ;;  %v806_v60 = vmul.f32 0.35355338, %v3638_v59 }
 0x6c3   :  { %v805_v61 = vmul.f32 0.35355338, %v794_v8  ;;  %815 = vmax.xlane.f32.xlu1 %v814_v10  ;;  %v811_v62 = vsel %vm54_vm0, %v807_v26, -inf }
 0x6c4   :  { %812 = vmax.xlane.f32.xlu0 %v811_v62  ;;  %v810_v2 = vadd.f32 %v806_v60, %v4641_v38 }
 0x6c5   :  { %v809_v63 = vadd.f32 %v805_v61, %v4636_v34 }
 0x6c6   :  { %v820_v4 = vsel %vm54_vm0, %v810_v2, -inf }
 0x6c7   :  { %v817_v0 = vsel %vm54_vm0, %v809_v63, -inf }
 0x6c8   :  { %818 = vmax.xlane.f32.xlu0 %v817_v0 }
 0x6cc   :  { %821 = vmax.xlane.f32.xlu0 %v820_v4 }
 0x750   :  { %v816_v1 = vpop.xlane.xlu1 %815 }
 0x751   :  { %v824_v3 = vsub.f32 %v808_v54, %v816_v1  ;;  %v813_v7 = vpop.xlane.xlu0 %812 }
 0x752   :  { %v823_v15 = vsub.f32 %v807_v26, %v813_v7 }
 0x753   :  { %v829_v14 = vmul.f32 1.442695, %v824_v3 }
 0x754   :  { %v827_v37 = vmul.f32 1.442695, %v823_v15 }
 0x755   :  { %4137 = vpow2.f32 %v829_v14  ;;  %v819_v19 = vpop.xlane.xlu0 %818 }
 0x756   :  { %4139 = vpow2.f32 %v827_v37  ;;  %v825_v21 = vsub.f32 %v809_v63, %v819_v19 }
 0x758   :  { %v831_v23 = vmul.f32 1.442695, %v825_v21 }
 0x759   :  { %v822_v48 = vpop.xlane.xlu0 %821 }
 0x75a   :  { %v826_v24 = vsub.f32 %v810_v2, %v822_v48  ;;  %4141 = vpow2.f32 %v831_v23 }
 0x75c   :  { %v833_v27 = vmul.f32 1.442695, %v826_v24 }
 0x75e   :  { %4143 = vpow2.f32 %v833_v27 }
 0x75f   :  { %v4138_v17 = vpop.eup %4137 }
 0x760   :  { %v4140_v6 = vpop.eup %4139  ;;  %v838_v11 = vsel %vm54_vm0, %v4138_v17, 0.0 }
 0x761   :  { %839 = vadd.xlane.f32.xlu1 %v838_v11  ;;  %v835_v18 = vsel %vm54_vm0, %v4140_v6, 0.0 }
 0x762   :  { %836 = vadd.xlane.f32.xlu0 %v835_v18 }
 0x764   :  { %v4142_v29 = vpop.eup %4141 }
 0x765   :  { %v841_v30 = vsel %vm54_vm0, %v4142_v29, 0.0 }
 0x768   :  { %v4144_v57 = vpop.eup %4143 }
 0x769   :  { %v844_v9 = vsel %vm54_vm0, %v4144_v57, 0.0 }
 0x772   :  { %4069 = vrot.lane.b32.xlu1 %v4651_v55, %s4334_s19 }
 0x776   :  { %4074 = vrot.lane.b32.xlu1 %v4531_v16, %s4335_s20 }
 0x778   :  { %4064 = vrot.lane.b32.xlu0 %v4658_v58, %s4334_s19 }
 0x77a   :  { %4079 = vrot.lane.b32.xlu1 %v4538_v22, %s4335_s20 }
 0x797   :  { %842 = vadd.xlane.f32.xlu0 %v841_v30 }
 0x79e   :  { %845 = vadd.xlane.f32.xlu1 %v844_v9 }
 0x7ad   :  { %964 = vrot.lane.b32.xlu0 %v4581_v13, %s4336_s21 }
 0x7af   :  { %966 = vrot.lane.b32.xlu1 %v4593_v5, %s4336_s21 }
 0x7b1   :  { %968 = vrot.lane.b32.xlu0 %v4607_v20, %s4336_s21 }
 0x7b3   :  { %970 = vrot.lane.b32.xlu1 %v4615_v46, %s4336_s21 }
 0x7ee   :  { %v840_v31 = vpop.xlane.xlu1 %839 }
 0x7ef   :  { %v837_v12 = vpop.xlane.xlu0 %836 }
 0x7f0   :  { %4145 = vrcp.f32 %v837_v12 }
 0x7f1   :  { %4147 = vrcp.f32 %v840_v31 }
 0x7f2   :  { %v4070_v32 = vpop.permute.xlu1 %4069 }
 0x7f3   :  { %v4065_v33 = vpop.permute.xlu0 %4064  ;;  %v4072_v35 = vunpack.i.h.bf16 %v4070_v32  ;;  %v4071_v36 = vunpack.i.l.bf16 %v4070_v32 }
 0x7f4   :  { %v4067_v39 = vunpack.i.h.bf16 %v4065_v33  ;;  %v4066_v40 = vunpack.i.l.bf16 %v4065_v33 }
 0x7f5   :  { %v3883_v51 = vpack.c.bf16 %v4072_v35, %v4071_v36 }
 0x7f6   :  { %v4075_v41 = vpop.permute.xlu1 %4074  ;;  %v3879_v42 = vpack.c.bf16 %v4067_v39, %v4066_v40 }
 0x7f7   :  { %v4077_v43 = vunpack.i.h.bf16 %v4075_v41  ;;  %v4076_v50 = vunpack.i.l.bf16 %v4075_v41 }
 0x7f8   :  { %3880 = vmatprep.subr.bf16.mxu1 %v3879_v42 }
 0x7f9   :  { %3882 = vmatpush3.bf16.msra.mxu1 %v3879_v42  ;;  %v3887_v59 = vpack.c.bf16 %v4077_v43, %v4076_v50 }
 0x7fa   :  { %v4146_v52 = vpop.eup %4145  ;;  %3884 = vmatprep.subr.bf16.mxu1 %v3883_v51  ;;  %v4080_v8 = vpop.permute.xlu1 %4079 }
 0x7fb   :  { %v4148_v53 = vpop.eup %4147  ;;  %v851_v54 = vmul.f32 %v4146_v52, %v4140_v6  ;;  %v4082_v10 = vunpack.i.h.bf16 %v4080_v8  ;;  %v4081_v60 = vunpack.i.l.bf16 %v4080_v8 }
 0x7fc   :  { %v852_v26 = vmul.f32 %v4148_v53, %v4138_v17 }
 0x7fd   :  { %3886 = vmatpush3.bf16.msra.mxu1 %v3883_v51  ;;  %3647 = vmatprep.mubr.msk.f32.mxu1 %vm54_vm0, %v851_v54  ;;  %v3893_v61 = vpack.c.bf16 %v4082_v10, %v4081_v60 }
 0x7fe   :  { %3889 = vmatprep.subr.msk.bf16.mxu1 %vm4551_vm8, %v3887_v59 }
 0x800   :  { %3648 = vmatmul.mubr.msk.f32.vlgmr.msra.gmra.mrb[8].mxu1 %vm54_vm0, %v852_v26 }
 0x806   :  { %3892 = vmatpush3.bf16.xpose.msk.msra.mxu1 %vm4551_vm8, %v3887_v59 }
 0x807   :  { %3895 = vmatprep.subr.msk.bf16.mxu1 %vm4551_vm8, %v3893_v61 }
 0x80e   :  { %3898 = vmatpush3.bf16.xpose.msk.msra.mxu1 %vm4551_vm8, %v3893_v61 }
 0x824   :  { %v843_v62 = vpop.xlane.xlu0 %842 }
 0x825   :  { %4149 = vrcp.f32 %v843_v62 }
 0x828   :  { %v965_v1 = vpop.permute.xlu0 %964 }
 0x82b   :  { %v846_v63 = vpop.xlane.xlu1 %845 }
 0x82c   :  { %4151 = vrcp.f32 %v846_v63  ;;  %v969_v15 = vpop.permute.xlu0 %968 }
 0x82f   :  { %v4150_v0 = vpop.eup %4149  ;;  %v967_v7 = vpop.permute.xlu1 %966 }
 0x830   :  { %v853_v2 = vmul.f32 %v4150_v0, %v4142_v29 }
 0x832   :  { %3650 = vmatprep.mubr.msk.f32.mxu1 %vm54_vm0, %v853_v2 }
 0x833   :  { %v971_v14 = vpop.permute.xlu1 %970 }
 0x836   :  { %v4152_v4 = vpop.eup %4151 }
 0x837   :  { %v854_v3 = vmul.f32 %v4152_v4, %v4144_v57 }
 0x839   :  { %3651 = vmatmul.mubr.msk.f32.gmra.mrb[10].mxu1 %vm54_vm0, %v854_v3 }
 0x83a   :  { %3661 = vmatprep.mubr.msk.f32.mxu1 %vm274_vm2, %v965_v1 }
 0x83d   :  { %3662 = vmatmul.mubr.msk.f32.vlgmr.msra.gmra.mrb[12].mxu1 %vm274_vm2, %v967_v7 }
 0x83e   :  { %3664 = vmatprep.mubr.msk.f32.mxu1 %vm274_vm2, %v969_v15 }
 0x841   :  { %3665 = vmatmul.mubr.msk.f32.gmra.mrb[14].mxu1 %vm274_vm2, %v971_v14 }
 0x8d3   :  { %v4733_v37 = vpop.f32.mrb[8].mxu1 }
 0x8d4   :  { %v4735_v17 = vpop.f32.mrb[9].mxu1 }
 0x90c   :  { %v4737_v6 = vpop.f32.mrb[10].mxu1 }
 0x90d   :  { %v4739_v11 = vpop.f32.mrb[11].mxu1 }
 0x910   :  { %v3663_v18 = vpop.f32.mrb[12].mxu1 }
 0x911   :  { %v1082_v19 = vmul.f32 0.35355338, %v3663_v18  ;;  %v1062_v21 = vpop.f32.mrb[13].mxu1 }
 0x912   :  { %v1081_v23 = vmul.f32 0.35355338, %v1062_v21 }
 0x913   :  { %v1086_v48 = vadd.f32 %v1082_v19, %v4622_v25 }
 0x914   :  { %v3666_v24 = vpop.f32.mrb[14].mxu1  ;;  %v1085_v27 = vadd.f32 %v1081_v23, %v4627_v56 }
 0x915   :  { %v1072_v29 = vpop.f32.mrb[15].mxu1  ;;  %v1092_v30 = vsel %vm54_vm0, %v1086_v48, -inf  ;;  %v1084_v57 = vmul.f32 0.35355338, %v3666_v24 }
 0x916   :  { %v1083_v9 = vmul.f32 0.35355338, %v1072_v29  ;;  %1093 = vmax.xlane.f32.xlu1 %v1092_v30  ;;  %v1089_v31 = vsel %vm54_vm0, %v1085_v27, -inf }
 0x917   :  { %1090 = vmax.xlane.f32.xlu0 %v1089_v31  ;;  %v1088_v33 = vadd.f32 %v1084_v57, %v4641_v38 }
 0x918   :  { %v1087_v12 = vadd.f32 %v1083_v9, %v4636_v34 }
 0x919   :  { %v1098_v35 = vsel %vm54_vm0, %v1088_v33, -inf }
 0x91a   :  { %v1095_v32 = vsel %vm54_vm0, %v1087_v12, -inf }
 0x91b   :  { %1096 = vmax.xlane.f32.xlu0 %v1095_v32 }
 0x91f   :  { %1099 = vmax.xlane.f32.xlu0 %v1098_v35 }
 0x9a3   :  { %v1094_v36 = vpop.xlane.xlu1 %1093 }
 0x9a4   :  { %v1102_v39 = vsub.f32 %v1086_v48, %v1094_v36  ;;  %v1091_v40 = vpop.xlane.xlu0 %1090 }
 0x9a5   :  { %v1101_v41 = vsub.f32 %v1085_v27, %v1091_v40 }
 0x9a6   :  { %v1107_v42 = vmul.f32 1.442695, %v1102_v39 }
 0x9a7   :  { %v1105_v43 = vmul.f32 1.442695, %v1101_v41 }
 0x9a8   :  { %4153 = vpow2.f32 %v1107_v42  ;;  %v1097_v54 = vpop.xlane.xlu0 %1096 }
 0x9a9   :  { %4155 = vpow2.f32 %v1105_v43  ;;  %v1103_v59 = vsub.f32 %v1087_v12, %v1097_v54 }
 0x9ab   :  { %v1109_v26 = vmul.f32 1.442695, %v1103_v59 }
 0x9ac   :  { %v1100_v8 = vpop.xlane.xlu0 %1099 }
 0x9ad   :  { %v1104_v10 = vsub.f32 %v1088_v33, %v1100_v8  ;;  %4157 = vpow2.f32 %v1109_v26 }
 0x9af   :  { %v1111_v60 = vmul.f32 1.442695, %v1104_v10 }
 0x9b1   :  { %4159 = vpow2.f32 %v1111_v60 }
 0x9b2   :  { %v4154_v50 = vpop.eup %4153 }
 0x9b3   :  { %v4156_v51 = vpop.eup %4155  ;;  %v1116_v52 = vsel %vm54_vm0, %v4154_v50, 0.0 }
 0x9b4   :  { %1117 = vadd.xlane.f32.xlu1 %v1116_v52  ;;  %v1113_v53 = vsel %vm54_vm0, %v4156_v51, 0.0 }
 0x9b5   :  { %1114 = vadd.xlane.f32.xlu0 %v1113_v53 }
 0x9b7   :  { %v4158_v61 = vpop.eup %4157 }
 0x9b8   :  { %v1119_v62 = vsel %vm54_vm0, %v4158_v61, 0.0 }
 0x9bb   :  { %v4160_v63 = vpop.eup %4159 }
 0x9bc   :  { %v1122_v0 = vsel %vm54_vm0, %v4160_v63, 0.0 }
 0x9c5   :  { %4089 = vrot.lane.b32.xlu1 %v4651_v55, %s4337_s22 }
 0x9c9   :  { %4094 = vrot.lane.b32.xlu1 %v4531_v16, %s4338_s23 }
 0x9cb   :  { %4084 = vrot.lane.b32.xlu0 %v4658_v58, %s4337_s22 }
 0x9cd   :  { %4099 = vrot.lane.b32.xlu1 %v4538_v22, %s4338_s23 }
 0x9ea   :  { %1120 = vadd.xlane.f32.xlu0 %v1119_v62 }
 0x9f1   :  { %1123 = vadd.xlane.f32.xlu1 %v1122_v0 }
 0xa00   :  { %1242 = vrot.lane.b32.xlu0 %v4581_v13, %s4339_s24 }
 0xa02   :  { %1244 = vrot.lane.b32.xlu1 %v4593_v5, %s4339_s24 }
 0xa04   :  { %1246 = vrot.lane.b32.xlu0 %v4607_v20, %s4339_s24 }
 0xa06   :  { %1248 = vrot.lane.b32.xlu1 %v4615_v46, %s4339_s24 }
 0xa41   :  { %v1118_v16 = vpop.xlane.xlu1 %1117 }
 0xa42   :  { %v1115_v22 = vpop.xlane.xlu0 %1114 }
 0xa43   :  { %4161 = vrcp.f32 %v1115_v22 }
 0xa44   :  { %4163 = vrcp.f32 %v1118_v16 }
 0xa45   :  { %v4090_v2 = vpop.permute.xlu1 %4089 }
 0xa46   :  { %v4085_v4 = vpop.permute.xlu0 %4084  ;;  %v4092_v1 = vunpack.i.h.bf16 %v4090_v2  ;;  %v4091_v3 = vunpack.i.l.bf16 %v4090_v2 }
 0xa47   :  { %v4087_v7 = vunpack.i.h.bf16 %v4085_v4  ;;  %v4086_v15 = vunpack.i.l.bf16 %v4085_v4 }
 0xa48   :  { %v3903_v19 = vpack.c.bf16 %v4092_v1, %v4091_v3 }
 0xa49   :  { %v4095_v14 = vpop.permute.xlu1 %4094  ;;  %v3899_v18 = vpack.c.bf16 %v4087_v7, %v4086_v15 }
 0xa4a   :  { %v4097_v13 = vunpack.i.h.bf16 %v4095_v14  ;;  %v4096_v21 = vunpack.i.l.bf16 %v4095_v14 }
 0xa4b   :  { %3900 = vmatprep.subr.bf16.mxu0 %v3899_v18 }
 0xa4c   :  { %3902 = vmatpush3.bf16.msra.mxu0 %v3899_v18  ;;  %v3907_v23 = vpack.c.bf16 %v4097_v13, %v4096_v21 }
 0xa4d   :  { %v4162_v5 = vpop.eup %4161  ;;  %3904 = vmatprep.subr.bf16.mxu0 %v3903_v19  ;;  %v4100_v24 = vpop.permute.xlu1 %4099 }
 0xa4e   :  { %v4164_v20 = vpop.eup %4163  ;;  %v1129_v46 = vmul.f32 %v4162_v5, %v4156_v51  ;;  %v4102_v27 = vunpack.i.h.bf16 %v4100_v24  ;;  %v4101_v29 = vunpack.i.l.bf16 %v4100_v24 }
 0xa4f   :  { %v1130_v48 = vmul.f32 %v4164_v20, %v4154_v50 }
 0xa50   :  { %3906 = vmatpush3.bf16.msra.mxu0 %v3903_v19  ;;  %3675 = vmatprep.mubr.msk.f32.mxu0 %vm54_vm0, %v1129_v46  ;;  %v3913_v30 = vpack.c.bf16 %v4102_v27, %v4101_v29 }
 0xa51   :  { %3909 = vmatprep.subr.msk.bf16.mxu0 %vm4551_vm8, %v3907_v23 }
 0xa53   :  { %3676 = vmatmul.mubr.msk.f32.vlgmr.msra.gmra.mrb[8].mxu0 %vm54_vm0, %v1130_v48 }
 0xa59   :  { %3912 = vmatpush3.bf16.xpose.msk.msra.mxu0 %vm4551_vm8, %v3907_v23 }
 0xa5a   :  { %3915 = vmatprep.subr.msk.bf16.mxu0 %vm4551_vm8, %v3913_v30 }
 0xa61   :  { %3918 = vmatpush3.bf16.xpose.msk.msra.mxu0 %vm4551_vm8, %v3913_v30 }
 0xa77   :  { %v1121_v57 = vpop.xlane.xlu0 %1120 }
 0xa78   :  { %4165 = vrcp.f32 %v1121_v57 }
 0xa7b   :  { %v1243_v33 = vpop.permute.xlu0 %1242 }
 0xa7e   :  { %v1124_v9 = vpop.xlane.xlu1 %1123 }
 0xa7f   :  { %4167 = vrcp.f32 %v1124_v9  ;;  %v1247_v39 = vpop.permute.xlu0 %1246 }
 0xa82   :  { %v4166_v31 = vpop.eup %4165  ;;  %v1245_v36 = vpop.permute.xlu1 %1244 }
 0xa83   :  { %v1131_v12 = vmul.f32 %v4166_v31, %v4158_v61 }
 0xa85   :  { %3678 = vmatprep.mubr.msk.f32.mxu0 %vm54_vm0, %v1131_v12 }
 0xa86   :  { %v1249_v28 = vpop.permute.xlu1 %1248 }
 0xa89   :  { %v4168_v32 = vpop.eup %4167 }
 0xa8a   :  { %v1132_v35 = vmul.f32 %v4168_v32, %v4160_v63 }
 0xa8c   :  { %3679 = vmatmul.mubr.msk.f32.gmra.mrb[10].mxu0 %vm54_vm0, %v1132_v35 }
 0xa8d   :  { %3689 = vmatprep.mubr.msk.f32.mxu0 %vm274_vm2, %v1243_v33 }
 0xa90   :  { %3690 = vmatmul.mubr.msk.f32.vlgmr.msra.gmra.mrb[12].mxu0 %vm274_vm2, %v1245_v36 }
 0xa91   :  { %3692 = vmatprep.mubr.msk.f32.mxu0 %vm274_vm2, %v1247_v39 }
 0xa94   :  { %3693 = vmatmul.mubr.msk.f32.gmra.mrb[14].mxu0 %vm274_vm2, %v1249_v28 }
 0xb26   :  { %v3677_v40 = vpop.f32.mrb[8].mxu0 }
 0xb27   :  { %v1223_v41 = vpop.f32.mrb[9].mxu0 }
 0xb5f   :  { %v4777_v42 = vpop.f32.mrb[10].mxu0 }
 0xb60   :  { %v4779_v43 = vpop.f32.mrb[11].mxu0 }
 0xb63   :  { %v3691_v50 = vpop.f32.mrb[12].mxu0 }
 0xb64   :  { %v1360_v51 = vmul.f32 0.35355338, %v3691_v50  ;;  %v1340_v52 = vpop.f32.mrb[13].mxu0  ;;  %v1582_v50 = vld [vmem:[%s5444_s2 + $0x58] sm:$0xff] }
 0xb65   :  { %v1359_v53 = vmul.f32 0.35355338, %v1340_v52  ;;  %v1583_v52 = vld [vmem:[%s5444_s2 + $0x80] sm:$0xff] }
 0xb66   :  { %v1364_v54 = vadd.f32 %v1360_v51, %v4622_v25 }
 0xb67   :  { %v3694_v59 = vpop.f32.mrb[14].mxu0  ;;  %v1363_v26 = vadd.f32 %v1359_v53, %v4627_v56  ;;  %v3931_v53 = vpack.c.bf16 %v1583_v52, %v1582_v50 }
 0xb68   :  { %v1350_v8 = vpop.f32.mrb[15].mxu0  ;;  %v1370_v10 = vsel %vm54_vm0, %v1364_v54, -inf  ;;  %v1362_v60 = vmul.f32 0.35355338, %v3694_v59 }
 0xb69   :  { %v1361_v61 = vmul.f32 0.35355338, %v1350_v8  ;;  %1371 = vmax.xlane.f32.xlu1 %v1370_v10  ;;  %v1367_v62 = vsel %vm54_vm0, %v1363_v26, -inf }
 0xb6a   :  { %1368 = vmax.xlane.f32.xlu0 %v1367_v62  ;;  %v1366_v16 = vadd.f32 %v1362_v60, %v4641_v38 }
 0xb6b   :  { %v1365_v63 = vadd.f32 %v1361_v61, %v4636_v34 }
 0xb6c   :  { %v1376_v25 = vsel %vm54_vm0, %v1366_v16, -inf }
 0xb6d   :  { %v1373_v0 = vsel %vm54_vm0, %v1365_v63, -inf }
 0xb6e   :  { %1374 = vmax.xlane.f32.xlu0 %v1373_v0 }
 0xb72   :  { %1377 = vmax.xlane.f32.xlu0 %v1376_v25 }
 0xbf6   :  { %v1372_v56 = vpop.xlane.xlu1 %1371 }
 0xbf7   :  { %v1380_v22 = vsub.f32 %v1364_v54, %v1372_v56  ;;  %v1369_v2 = vpop.xlane.xlu0 %1368 }
 0xbf8   :  { %v1379_v4 = vsub.f32 %v1363_v26, %v1369_v2 }
 0xbf9   :  { %v1385_v1 = vmul.f32 1.442695, %v1380_v22 }
 0xbfa   :  { %v1383_v3 = vmul.f32 1.442695, %v1379_v4 }
 0xbfb   :  { %4169 = vpow2.f32 %v1385_v1  ;;  %v1375_v7 = vpop.xlane.xlu0 %1374 }
 0xbfc   :  { %4171 = vpow2.f32 %v1383_v3  ;;  %v1381_v15 = vsub.f32 %v1365_v63, %v1375_v7 }
 0xbfe   :  { %v1387_v14 = vmul.f32 1.442695, %v1381_v15 }
 0xbff   :  { %v1378_v34 = vpop.xlane.xlu0 %1377 }
 0xc00   :  { %4173 = vpow2.f32 %v1387_v14  ;;  %v1382_v18 = vsub.f32 %v1366_v16, %v1378_v34 }
 0xc02   :  { %v1389_v19 = vmul.f32 1.442695, %v1382_v18 }
 0xc04   :  { %4175 = vpow2.f32 %v1389_v19 }
 0xc05   :  { %v4170_v38 = vpop.eup %4169 }
 0xc06   :  { %v4172_v13 = vpop.eup %4171  ;;  %v1394_v21 = vsel %vm54_vm0, %v4170_v38, 0.0 }
 0xc07   :  { %1395 = vadd.xlane.f32.xlu1 %v1394_v21  ;;  %v1391_v5 = vsel %vm54_vm0, %v4172_v13, 0.0 }
 0xc08   :  { %1392 = vadd.xlane.f32.xlu0 %v1391_v5  ;;  %v4298_v5 = vld [vmem:[%s5442_s0] sm:$0xff] }
 0xc0a   :  { %v4174_v20 = vpop.eup %4173 }
 0xc0b   :  { %v1397_v46 = vsel %vm54_vm0, %v4174_v20, 0.0 }
 0xc0c   :  { %1398 = vadd.xlane.f32.xlu0 %v1397_v46 }
 0xc0e   :  { %v4176_v23 = vpop.eup %4175 }
 0xc0f   :  { %v1400_v48 = vsel %vm54_vm0, %v4176_v23, 0.0 }
 0xc10   :  { %1401 = vadd.xlane.f32.xlu1 %v1400_v48 }
 0xc21   :  { %4109 = vrot.lane.b32.xlu1 %v4651_v55, %s4340_s25 }
 0xc22   :  { %4104 = vrot.lane.b32.xlu0 %v4658_v58, %s4340_s25 }
 0xc25   :  { %1524 = vrot.lane.b32.xlu1 %v4735_v17, %s4341_s26 }
 0xc26   :  { %1540 = vrot.lane.b32.xlu0 %v1223_v41, %s4342_s27  ;;  %v1581_v41 = vld [vmem:[%s5444_s2 + $0x30] sm:$0xff] }
 0xc29   :  { %1526 = vrot.lane.b32.xlu1 %v4733_v37, %s4341_s26 }
 0xc2a   :  { %1528 = vrot.lane.b32.xlu0 %v4739_v11, %s4341_s26 }
 0xc2d   :  { %1542 = vrot.lane.b32.xlu1 %v3677_v40, %s4342_s27  ;;  %v1580_v40 = vld [vmem:[%s5444_s2 + $0x8] sm:$0xff] }
 0xc2e   :  { %v3927_v51 = vpack.c.bf16 %v1581_v41, %v1580_v40 }
 0xc31   :  { %1530 = vrot.lane.b32.xlu1 %v4737_v6, %s4341_s26 }
 0xc94   :  { %v1396_v58 = vpop.xlane.xlu1 %1395 }
 0xc95   :  { %v1393_v55 = vpop.xlane.xlu0 %1392 }
 0xc96   :  { %4177 = vrcp.f32 %v1393_v55 }
 0xc97   :  { %4179 = vrcp.f32 %v1396_v58 }
 0xc99   :  { %v1399_v24 = vpop.xlane.xlu0 %1398 }
 0xc9a   :  { %4181 = vrcp.f32 %v1399_v24 }
 0xc9d   :  { %v1402_v17 = vpop.xlane.xlu1 %1401  ;;  %v4105_v27 = vpop.permute.xlu0 %4104 }
 0xc9e   :  { %v4107_v29 = vunpack.i.h.bf16 %v4105_v27  ;;  %v4106_v30 = vunpack.i.l.bf16 %v4105_v27  ;;  %4183 = vrcp.f32 %v1402_v17  ;;  %v4299_v17 = vld [vmem:[%s5442_s0 + $0x18] sm:$0xff] }
 0xca0   :  { %v4178_v37 = vpop.eup %4177  ;;  %v3919_v57 = vpack.c.bf16 %v4107_v29, %v4106_v30  ;;  %v4300_v29 = vld [vmem:[%s5442_s0 + $0x10] sm:$0xff] }
 0xca1   :  { %v4110_v9 = vpop.permute.xlu1 %4109  ;;  %v1407_v11 = vmul.f32 %v4178_v37, %v4172_v13  ;;  %v4180_v32 = vpop.eup %4179 }
 0xca2   :  { %v4112_v31 = vunpack.i.h.bf16 %v4110_v9  ;;  %v4111_v12 = vunpack.i.l.bf16 %v4110_v9  ;;  %3920 = vmatprep.subr.bf16.mxu1 %v3919_v57  ;;  %v1408_v35 = vmul.f32 %v4180_v32, %v4170_v38  ;;  %v1541_v62 = vpop.permute.xlu0 %1540 }
 0xca3   :  { %3922 = vmatpush3.bf16.msra.mxu1 %v3919_v57  ;;  %3703 = vmatprep.mubr.msk.f32.mxu1 %vm54_vm0, %v1407_v11 }
 0xca4   :  { %v3923_v6 = vpack.c.bf16 %v4112_v31, %v4111_v12  ;;  %v4182_v33 = vpop.eup %4181 }
 0xca5   :  { %v1409_v39 = vmul.f32 %v4182_v33, %v4174_v20  ;;  %v1525_v10 = vpop.permute.xlu1 %1524 }
 0xca6   :  { %3924 = vmatprep.subr.bf16.mxu1 %v3923_v6  ;;  %v1529_v0 = vpop.permute.xlu0 %1528  ;;  %v1568_v16 = vsel %vm274_vm2, %v4687_v45, %v1525_v10 }
 0xca7   :  { %3926 = vmatpush3.bf16.msra.mxu1 %v3923_v6  ;;  %v1570_v45 = vsel %vm274_vm2, %v4691_v49, %v1529_v0  ;;  %v3385_v49 = vld [vmem:[%s5443_s1 + $0x3] ss:$0 sm:$0xff]  ;;  %v1764_v0 = vld [vmem:[%s5444_s2 + $0x88] sm:$0xff] }
 0xca8   :  { %v4184_v36 = vpop.eup %4183  ;;  %3928 = vmatprep.subr.bf16.mxu1 %v3927_v51 }
 0xca9   :  { %v1410_v28 = vmul.f32 %v4184_v36, %v4176_v23  ;;  %v1527_v60 = vpop.permute.xlu1 %1526 }
 0xcaa   :  { %3704 = vmatmul.mubr.msk.f32.vlgmr.msra.gmra.mrb[16].mxu1 %vm54_vm0, %v1408_v35  ;;  %v1569_v56 = vsel %vm274_vm2, %v4685_v44, %v1527_v60  ;;  %v1761_v60 = vld [vmem:[%s5444_s2 + $0x10] sm:$0xff] }
 0xcab   :  { %3706 = vmatprep.mubr.msk.f32.mxu1 %vm54_vm0, %v1409_v39  ;;  %3930 = vmatpush3.bf16.msra.mxu1 %v3927_v51 }
 0xcac   :  { %3932 = vmatprep.subr.bf16.mxu1 %v3931_v53 }
 0xcad   :  { %v1543_v61 = vpop.permute.xlu1 %1542 }
 0xcae   :  { %3707 = vmatmul.mubr.msk.f32.gmra.mrb[18].mxu1 %vm54_vm0, %v1410_v28 }
 0xcaf   :  { %3934 = vmatpush3.bf16.msra.mxu1 %v3931_v53 }
 0xcb1   :  { %v1531_v63 = vpop.permute.xlu1 %1530 }
 0xcb2   :  { %v1571_v44 = vsel %vm274_vm2, %v4689_v47, %v1531_v63  ;;  %v4297_v47 = vld [vmem:[%s5442_s0 + $0x8] sm:$0xff]  ;;  %v1763_v63 = vld [vmem:[%s5444_s2 + $0x60] sm:$0xff] }
 0xd7d   :  { %v3705_v54 = vpop.f32.mrb[16].mxu1 }
 0xd7e   :  { %1558 = vrot.lane.b32.xlu1 %v3705_v54, %s4343_s11  ;;  %v1501_v59 = vpop.f32.mrb[17].mxu1 }
 0xd7f   :  { %1556 = vrot.lane.b32.xlu0 %v1501_v59, %s4343_s11 }
 0xd81   :  { %v3708_v26 = vpop.f32.mrb[18].mxu1 }
 0xd82   :  { %1546 = vrot.lane.b32.xlu1 %v4777_v42, %s4342_s27  ;;  %v1511_v8 = vpop.f32.mrb[19].mxu1  ;;  %v1572_v42 = vsel %vm284_vm4, %v1568_v16, %v1541_v62  ;;  %v3939_v16 = vpack.c.bf16 %v1764_v0, %v1763_v63 }
 0xd83   :  { %1544 = vrot.lane.b32.xlu0 %v4779_v43, %s4342_s27  ;;  %v1573_v43 = vsel %vm284_vm4, %v1569_v56, %v1543_v61  ;;  %v1762_v61 = vld [vmem:[%s5444_s2 + $0x38] sm:$0xff] }
 0xd84   :  { %v3935_v62 = vpack.c.bf16 %v1762_v61, %v1761_v60 }
 0xd86   :  { %1562 = vrot.lane.b32.xlu1 %v3708_v26, %s4343_s11  ;;  %3936 = vmatprep.subr.bf16.mxu0 %v3935_v62 }
 0xd87   :  { %1560 = vrot.lane.b32.xlu0 %v1511_v8, %s4343_s11  ;;  %3938 = vmatpush3.bf16.msra.mxu0 %v3935_v62 }
 0xd88   :  { %3940 = vmatprep.subr.bf16.mxu0 %v3939_v16 }
 0xd8b   :  { %3942 = vmatpush3.bf16.msra.mxu0 %v3939_v16 }
 0xdf0   :  { %v1559_v25 = vpop.permute.xlu1 %1558 }
 0xdf1   :  { %v1557_v22 = vpop.permute.xlu0 %1556  ;;  %v1577_v4 = vsel %vm294_vm6, %v1573_v43, %v1559_v25 }
 0xdf2   :  { %v1576_v2 = vsel %vm294_vm6, %v1572_v42, %v1557_v22 }
 0xdf3   :  { %3717 = vmatprep.mubr.msk.f32.mxu1 %vm54_vm0, %v1576_v2 }
 0xdf4   :  { %v1547_v1 = vpop.permute.xlu1 %1546  ;;  %3718 = vmatmul.mubr.msk.f32.vlgmr.msra.gmra.mrb[20].mxu1 %vm54_vm0, %v1577_v4 }
 0xdf5   :  { %v1545_v3 = vpop.permute.xlu0 %1544  ;;  %v1575_v34 = vsel %vm284_vm4, %v1571_v44, %v1547_v1 }
 0xdf6   :  { %v1574_v15 = vsel %vm284_vm4, %v1570_v45, %v1545_v3 }
 0xdf8   :  { %v1563_v7 = vpop.permute.xlu1 %1562 }
 0xdf9   :  { %v1561_v14 = vpop.permute.xlu0 %1560  ;;  %v1579_v19 = vsel %vm294_vm6, %v1575_v34, %v1563_v7 }
 0xdfa   :  { %v1578_v18 = vsel %vm294_vm6, %v1574_v15, %v1561_v14  ;;  %v3386_v15 = vld [vmem:[%s5443_s1 + $0x4] ss:$0 sm:$0xff] }
 0xdfb   :  { %3720 = vmatprep.mubr.msk.f32.mxu1 %vm54_vm0, %v1578_v18 }
 0xdfc   :  { %3721 = vmatmul.mubr.msk.f32.gmra.mrb[22].mxu1 %vm54_vm0, %v1579_v19 }
 0xec7   :  { %v3719_v38 = vpop.f32.mrb[20].mxu1 }
 0xec8   :  { %v1682_v13 = vadd.f32 %v4297_v47, %v3719_v38  ;;  %v1662_v21 = vpop.f32.mrb[21].mxu1 }
 0xec9   :  { %v1681_v20 = vadd.f32 %v4298_v5, %v1662_v21 }
 0xeca   :  { %v4854_v46 = vadd.f32 %v3385_v49, %v1682_v13 }
 0xecb   :  { %v4856_v23 = vadd.f32 %v3385_v49, %v1681_v20 }
 0xecc   :  { %v1696_v48 = vsel %vm54_vm0, %v4854_v46, 0.0 }
 0xecd   :  { %1697 = vadd.xlane.f32.xlu1 %v1696_v48  ;;  %v1693_v55 = vsel %vm54_vm0, %v4856_v23, 0.0 }
 0xece   :  { %1694 = vadd.xlane.f32.xlu0 %v1693_v55 }
 0xecf   :  { %v3722_v58 = vpop.f32.mrb[22].mxu1 }
 0xed0   :  { %v1672_v24 = vpop.f32.mrb[23].mxu1  ;;  %v1684_v27 = vadd.f32 %v4299_v17, %v3722_v58 }
 0xed1   :  { %v1683_v30 = vadd.f32 %v4300_v29, %v1672_v24  ;;  %v1902_v29 = vld [vmem:[%s5445_s3] sm:$0xff] }
 0xed2   :  { %v4870_v57 = vadd.f32 %v3385_v49, %v1684_v27 }
 0xed3   :  { %v4868_v37 = vadd.f32 %v3385_v49, %v1683_v30  ;;  %v3387_v49 = vld [vmem:[%s5443_s1 + $0x5] ss:$0 sm:$0xff]  ;;  %v1903_v30 = vld [vmem:[%s5445_s3 + $0x10] sm:$0xff] }
 0xed4   :  { %v1702_v11 = vsel %vm54_vm0, %v4870_v57, 0.0 }
 0xed5   :  { %v1699_v9 = vsel %vm54_vm0, %v4868_v37, 0.0 }
 0xed6   :  { %1700 = vadd.xlane.f32.xlu0 %v1699_v9  ;;  %v3943_v9 = vpack.c.bf16 %v1903_v30, %v1902_v29 }
 0xed8   :  { %3944 = vmatprep.subr.bf16.mxu1 %v3943_v9 }
 0xed9   :  { %3946 = vmatpush3.bf16.msra.mxu1 %v3943_v9 }
 0xeda   :  { %1703 = vadd.xlane.f32.xlu0 %v1702_v11  ;;  %v1904_v11 = vld [vmem:[%s5445_s3 + $0x20] sm:$0xff] }
 0xf5a   :  { %v1698_v31 = vpop.xlane.xlu1 %1697 }
 0xf5b   :  { %v1706_v12 = vmul.f32 0.03125, %v1698_v31  ;;  %v1695_v6 = vpop.xlane.xlu0 %1694  ;;  %v1905_v31 = vld [vmem:[%s5445_s3 + $0x30] sm:$0xff] }
 0xf5c   :  { %v1705_v32 = vmul.f32 0.03125, %v1695_v6  ;;  %v1906_v6 = vld [vmem:[%s5445_s3 + $0x40] sm:$0xff] }
 0xf5d   :  { %v1710_v33 = vsub.f32 %v4854_v46, %v1706_v12  ;;  %v3947_v12 = vpack.c.bf16 %v1905_v31, %v1904_v11 }
 0xf5e   :  { %v1709_v35 = vsub.f32 %v4856_v23, %v1705_v32  ;;  %v1907_v32 = vld [vmem:[%s5445_s3 + $0x50] sm:$0xff] }
 0xf5f   :  { %v1714_v36 = vmul.f32 %v1710_v33, %v1710_v33  ;;  %3948 = vmatprep.subr.bf16.mxu1 %v3947_v12 }
 0xf60   :  { %v1713_v39 = vmul.f32 %v1709_v35, %v1709_v35  ;;  %3950 = vmatpush3.bf16.msra.mxu1 %v3947_v12 }
 0xf61   :  { %v1720_v28 = vsel %vm54_vm0, %v1714_v36, 0.0  ;;  %v1909_v36 = vld [vmem:[%s5445_s3 + $0x70] sm:$0xff] }
 0xf62   :  { %1721 = vadd.xlane.f32.xlu1 %v1720_v28  ;;  %v1717_v40 = vsel %vm54_vm0, %v1713_v39, 0.0  ;;  %v3388_v28 = vld [vmem:[%s5443_s1 + $0x6] ss:$0 sm:$0xff] }
 0xf63   :  { %1718 = vadd.xlane.f32.xlu0 %v1717_v40  ;;  %v1701_v41 = vpop.xlane.xlu0 %1700 }
 0xf64   :  { %v1707_v50 = vmul.f32 0.03125, %v1701_v41 }
 0xf66   :  { %v1711_v51 = vsub.f32 %v4868_v37, %v1707_v50 }
 0xf67   :  { %v1704_v52 = vpop.xlane.xlu0 %1703 }
 0xf68   :  { %v1708_v53 = vmul.f32 0.03125, %v1704_v52  ;;  %v1715_v54 = vmul.f32 %v1711_v51, %v1711_v51 }
 0xf6a   :  { %v1712_v59 = vsub.f32 %v4870_v57, %v1708_v53  ;;  %v1723_v26 = vsel %vm54_vm0, %v1715_v54, 0.0 }
 0xf6b   :  { %1724 = vadd.xlane.f32.xlu0 %v1723_v26 }
 0xf6c   :  { %v1716_v8 = vmul.f32 %v1712_v59, %v1712_v59 }
 0xf6e   :  { %v1726_v10 = vsel %vm54_vm0, %v1716_v8, 0.0 }
 0xf6f   :  { %1727 = vadd.xlane.f32.xlu1 %v1726_v10 }
 0xfef   :  { %v1722_v25 = vpop.xlane.xlu1 %1721 }
 0xff0   :  { %v1730_v56 = vmul.f32 0.03125, %v1722_v25  ;;  %v1719_v42 = vpop.xlane.xlu0 %1718 }
 0xff1   :  { %v1729_v22 = vmul.f32 0.03125, %v1719_v42 }
 0xff2   :  { %v1734_v43 = vadd.f32 1e-05, %v1730_v56 }
 0xff3   :  { %v1733_v2 = vadd.f32 1e-05, %v1729_v22 }
 0xff4   :  { %4185 = vrsqrt.f32 %v1734_v43 }
 0xff5   :  { %4187 = vrsqrt.f32 %v1733_v2 }
 0xff8   :  { %v1725_v4 = vpop.xlane.xlu0 %1724 }
 0xff9   :  { %v1731_v1 = vmul.f32 0.03125, %v1725_v4 }
 0xffb   :  { %v1735_v3 = vadd.f32 1e-05, %v1731_v1 }
 0xffc   :  { %v1728_v45 = vpop.xlane.xlu1 %1727 }
 0xffd   :  { %4189 = vrsqrt.f32 %v1735_v3  ;;  %v1732_v7 = vmul.f32 0.03125, %v1728_v45 }
 0xffe   :  { %v4186_v44 = vpop.eup %4185 }
 0xfff   :  { %v4188_v14 = vpop.eup %4187  ;;  %v1742_v34 = vmul.f32 %v4186_v44, %v1710_v33  ;;  %v1736_v18 = vadd.f32 1e-05, %v1732_v7  ;;  %v3951_v33 = vpack.c.bf16 %v1907_v32, %v1906_v6 }
0x1000   :  { %v1741_v19 = vmul.f32 %v4188_v14, %v1709_v35  ;;  %v1908_v35 = vld [vmem:[%s5445_s3 + $0x60] sm:$0xff] }
0x1001   :  { %4191 = vrsqrt.f32 %v1736_v18  ;;  %v1750_v38 = vmul.f32 %v3386_v15, %v1742_v34  ;;  %3952 = vmatprep.subr.bf16.mxu1 %v3951_v33  ;;  %v3955_v39 = vpack.c.bf16 %v1909_v36, %v1908_v35 }
0x1002   :  { %v1749_v47 = vmul.f32 %v3386_v15, %v1741_v19  ;;  %3954 = vmatpush3.bf16.msra.mxu1 %v3951_v33 }
0x1003   :  { %v1758_v21 = vadd.f32 %v3387_v49, %v1750_v38  ;;  %3956 = vmatprep.subr.bf16.mxu1 %v3955_v39 }
0x1004   :  { %v1757_v13 = vadd.f32 %v3387_v49, %v1749_v47 }
0x1006   :  { %3731 = vmatprep.mubr.msk.f32.mxu0 %vm54_vm0, %v1757_v13  ;;  %3958 = vmatpush3.bf16.msra.mxu1 %v3955_v39 }
0x1007   :  { %v4190_v5 = vpop.eup %4189  ;;  %3732 = vmatmul.mubr.msk.f32.vlgmr.msra.gmra.mrb[16].mxu0 %vm54_vm0, %v1758_v21 }
0x1008   :  { %v1743_v20 = vmul.f32 %v4190_v5, %v1711_v51 }
0x100a   :  { %v1751_v48 = vmul.f32 %v3386_v15, %v1743_v20 }
0x100b   :  { %v4192_v55 = vpop.eup %4191 }
0x100c   :  { %v1759_v58 = vadd.f32 %v3387_v49, %v1751_v48  ;;  %v1744_v24 = vmul.f32 %v4192_v55, %v1712_v59 }
0x100e   :  { %3734 = vmatprep.mubr.msk.f32.mxu0 %vm54_vm0, %v1759_v58  ;;  %v1752_v17 = vmul.f32 %v3386_v15, %v1744_v24  ;;  %v3397_v24 = vld [vmem:[%s5443_s1 + $0x7] ss:$0 sm:$0xff] }
0x1010   :  { %v1760_v27 = vadd.f32 %v3387_v49, %v1752_v17 }
0x1012   :  { %3735 = vmatmul.mubr.msk.f32.gmra.mrb[18].mxu0 %vm54_vm0, %v1760_v27 }
0x10da   :  { %v3733_v40 = vpop.f32.mrb[16].mxu0 }
0x10db   :  { %v1853_v41 = vadd.f32 %v3733_v40, %v3388_v28  ;;  %v1847_v50 = vpop.f32.mrb[17].mxu0 }
0x10dc   :  { %v1848_v51 = vadd.f32 %v3388_v28, %v1847_v50 }
0x10dd   :  { %v1871_v52 = vmul.f32 0.044715, %v1853_v41  ;;  %v1867_v19 = vmul.f32 0.5, %v1853_v41 }
0x10de   :  { %v1870_v53 = vmul.f32 0.044715, %v1848_v51  ;;  %v1866_v34 = vmul.f32 0.5, %v1848_v51 }
0x10df   :  { %v1875_v54 = vmul.f32 %v1871_v52, %v1853_v41  ;;  %v2060_v52 = vld [vmem:[%s5444_s2 + $0x18] sm:$0xff] }
0x10e0   :  { %v1874_v59 = vmul.f32 %v1870_v53, %v1848_v51  ;;  %v2062_v53 = vld [vmem:[%s5444_s2 + $0x40] sm:$0xff] }
0x10e1   :  { %v1879_v26 = vmul.f32 %v1875_v54, %v1853_v41  ;;  %v3961_v54 = vpack.c.bf16 %v2062_v53, %v2060_v52 }
0x10e2   :  { %v1878_v8 = vmul.f32 %v1874_v59, %v1848_v51  ;;  %v2065_v59 = vld [vmem:[%s5444_s2 + $0x70] sm:$0xff] }
0x10e3   :  { %v1883_v10 = vadd.f32 %v1879_v26, %v1853_v41  ;;  %v2067_v26 = vld [vmem:[%s5444_s2 + $0x98] sm:$0xff] }
0x10e4   :  { %v1882_v60 = vadd.f32 %v1878_v8, %v1848_v51  ;;  %v3963_v8 = vpack.c.bf16 %v2067_v26, %v2065_v59 }
0x10e5   :  { %v1887_v61 = vmul.f32 0.7978846, %v1883_v10  ;;  %v3736_v62 = vpop.f32.mrb[18].mxu0  ;;  %v2064_v10 = vld [vmem:[%s5444_s2 + $0x68] sm:$0xff] }
0x10e6   :  { %v1863_v63 = vadd.f32 %v3736_v62, %v3388_v28  ;;  %v1857_v0 = vpop.f32.mrb[19].mxu0  ;;  %v1886_v16 = vmul.f32 0.7978846, %v1882_v60  ;;  %v2066_v60 = vld [vmem:[%s5444_s2 + $0x90] sm:$0xff]  ;;  %v4344_v62 = vmov 0.0  }
0x10e7   :  { %4193 = vtanh.f32 %v1887_v61  ;;  %v1858_v25 = vadd.f32 %v3388_v28, %v1857_v0  ;;  %v3965_v61 = vpack.c.bf16 %v2066_v60, %v2064_v10  ;;  %2144 = vmatprep.mubr.f32.mxu0 %v4344_v62 }
0x10e8   :  { %v1873_v56 = vmul.f32 0.044715, %v1863_v63  ;;  %4195 = vtanh.f32 %v1886_v16  ;;  %v1869_v48 = vmul.f32 0.5, %v1863_v63 }
0x10e9   :  { %v1872_v42 = vmul.f32 0.044715, %v1858_v25  ;;  %v1868_v5 = vmul.f32 0.5, %v1858_v25 }
0x10ea   :  { %v1877_v22 = vmul.f32 %v1873_v56, %v1863_v63 }
0x10eb   :  { %v1876_v43 = vmul.f32 %v1872_v42, %v1858_v25 }
0x10ec   :  { %v1881_v2 = vmul.f32 %v1877_v22, %v1863_v63 }
0x10ed   :  { %v1880_v4 = vmul.f32 %v1876_v43, %v1858_v25 }
0x10ee   :  { %v1885_v1 = vadd.f32 %v1881_v2, %v1863_v63  ;;  %v3412_v63 = vld [vmem:[%s5443_s1 + $0xa] ss:$0 sm:$0xff] }
0x10ef   :  { %v1884_v3 = vadd.f32 %v1880_v4, %v1858_v25 }
0x10f0   :  { %v1889_v45 = vmul.f32 0.7978846, %v1885_v1 }
0x10f1   :  { %v4194_v7 = vpop.eup %4193  ;;  %v1888_v44 = vmul.f32 0.7978846, %v1884_v3 }
0x10f2   :  { %v4196_v15 = vpop.eup %4195  ;;  %v1895_v14 = vadd.f32 1.0, %v4194_v7  ;;  %4197 = vtanh.f32 %v1889_v45 }
0x10f3   :  { %v1894_v18 = vadd.f32 1.0, %v4196_v15  ;;  %4199 = vtanh.f32 %v1888_v44  ;;  %v3398_v15 = vld [vmem:[%s5443_s1 + $0x8] ss:$0 sm:$0xff] }
0x10f4   :  { %v1899_v38 = vmul.f32 %v1895_v14, %v1867_v19 }
0x10f5   :  { %v1898_v49 = vmul.f32 %v1894_v18, %v1866_v34 }
0x10f7   :  { %3753 = vmatprep.mubr.msk.f32.mxu1 %vm1910_vm9, %v1898_v49 }
0x10f8   :  { %3754 = vmatmul.mubr.msk.f32.vlgmr.msra.gmra.mrb[24].mxu1 %vm1910_vm9, %v1899_v38 }
0x10fc   :  { %v4198_v47 = vpop.eup %4197 }
0x10fd   :  { %v4200_v13 = vpop.eup %4199  ;;  %v1897_v21 = vadd.f32 1.0, %v4198_v47 }
0x10fe   :  { %v1896_v20 = vadd.f32 1.0, %v4200_v13 }
0x10ff   :  { %v1901_v58 = vmul.f32 %v1897_v21, %v1869_v48 }
0x1100   :  { %v1900_v55 = vmul.f32 %v1896_v20, %v1868_v5 }
0x1102   :  { %3756 = vmatprep.mubr.msk.f32.mxu1 %vm1910_vm9, %v1900_v55 }
0x1103   :  { %3757 = vmatmul.mubr.msk.f32.gmra.mrb[26].mxu1 %vm1910_vm9, %v1901_v58 }
0x11cb   :  { %v3755_v17 = vpop.f32.mrb[24].mxu1 }
0x11cc   :  { %v2009_v27 = vadd.f32 %v3755_v17, %v4854_v46  ;;  %v1989_v29 = vpop.f32.mrb[25].mxu1 }
0x11cd   :  { %v2008_v30 = vadd.f32 %v1989_v29, %v4856_v23 }
0x11ce   :  { %v4942_v9 = vadd.f32 %v3397_v24, %v2009_v27 }
0x11cf   :  { %v4944_v11 = vadd.f32 %v3397_v24, %v2008_v30 }
0x11d0   :  { %v2021_v31 = vmul.f32 %v4942_v9, %v4942_v9 }
0x11d1   :  { %v2020_v12 = vmul.f32 %v4944_v11, %v4944_v11 }
0x11d2   :  { %v2027_v6 = vsel %vm54_vm0, %v2021_v31, 0.0 }
0x11d3   :  { %2028 = vadd.xlane.f32.xlu1 %v2027_v6  ;;  %v2024_v32 = vsel %vm54_vm0, %v2020_v12, 0.0 }
0x11d4   :  { %2025 = vadd.xlane.f32.xlu0 %v2024_v32 }
0x11d6   :  { %v3758_v46 = vpop.f32.mrb[26].mxu1 }
0x11d7   :  { %v2011_v33 = vadd.f32 %v3758_v46, %v4870_v57  ;;  %v1999_v23 = vpop.f32.mrb[27].mxu1  ;;  %v2063_v57 = vld [vmem:[%s5444_s2 + $0x48] sm:$0xff] }
0x11d8   :  { %v2010_v35 = vadd.f32 %v1999_v23, %v4868_v37  ;;  %v2061_v37 = vld [vmem:[%s5444_s2 + $0x20] sm:$0xff] }
0x11d9   :  { %v4954_v36 = vadd.f32 %v3397_v24, %v2011_v33  ;;  %v3959_v51 = vpack.c.bf16 %v2063_v57, %v2061_v37 }
0x11da   :  { %v4956_v39 = vadd.f32 %v3397_v24, %v2010_v35 }
0x11db   :  { %v2023_v28 = vmul.f32 %v4954_v36, %v4954_v36  ;;  %3960 = vmatprep.subr.bf16.mxu0 %v3959_v51 }
0x11dc   :  { %v2022_v40 = vmul.f32 %v4956_v39, %v4956_v39  ;;  %3962 = vmatpush1.bf16.msra.mxu0 %v3961_v54 }
0x11dd   :  { %v2033_v41 = vsel %vm54_vm0, %v2023_v28, 0.0  ;;  %3964 = vmatprep.subr.bf16.mxu0 %v3963_v8 }
0x11de   :  { %2034 = vadd.xlane.f32.xlu1 %v2033_v41  ;;  %v2030_v50 = vsel %vm54_vm0, %v2022_v40, 0.0 }
0x11df   :  { %2031 = vadd.xlane.f32.xlu0 %v2030_v50 }
0x11e0   :  { %3966 = vmatpush1.bf16.msra.mxu0 %v3965_v61 }
0x11f5   :  { %2600 = vrot.lane.b32.xlu0 %v3412_v63, %s4327_s15 }
0x1260   :  { %v2029_v0 = vpop.xlane.xlu1 %2028 }
0x1261   :  { %v2037_v16 = vmul.f32 0.03125, %v2029_v0  ;;  %v2026_v25 = vpop.xlane.xlu0 %2025 }
0x1262   :  { %v2036_v56 = vmul.f32 0.03125, %v2026_v25 }
0x1263   :  { %v2041_v42 = vadd.f32 1e-05, %v2037_v16 }
0x1264   :  { %v2040_v22 = vadd.f32 1e-05, %v2036_v56 }
0x1265   :  { %4201 = vrsqrt.f32 %v2041_v42 }
0x1266   :  { %4203 = vrsqrt.f32 %v2040_v22 }
0x126b   :  { %v2035_v43 = vpop.xlane.xlu1 %2034 }
0x126c   :  { %v2039_v2 = vmul.f32 0.03125, %v2035_v43  ;;  %v2032_v4 = vpop.xlane.xlu0 %2031 }
0x126d   :  { %v2038_v1 = vmul.f32 0.03125, %v2032_v4 }
0x126e   :  { %v2043_v3 = vadd.f32 1e-05, %v2039_v2 }
0x126f   :  { %v4202_v45 = vpop.eup %4201  ;;  %v2042_v7 = vadd.f32 1e-05, %v2038_v1 }
0x1270   :  { %v4204_v44 = vpop.eup %4203  ;;  %4205 = vrsqrt.f32 %v2043_v3  ;;  %v2049_v18 = vmul.f32 %v4202_v45, %v4942_v9  ;;  %v2601_v20 = vpop.permute.xlu0 %2600 }
0x1271   :  { %v2048_v14 = vmul.f32 %v4204_v44, %v4944_v11  ;;  %4207 = vrsqrt.f32 %v2042_v7 }
0x1272   :  { %v2057_v19 = vmul.f32 %v3398_v15, %v2049_v18 }
0x1273   :  { %v2056_v34 = vmul.f32 %v3398_v15, %v2048_v14 }
0x1275   :  { %3399 = vmatmul.mubr.msk.f32.vlgmr.msra.gmra.mrb[20].mxu0 %vm54_vm0, %v2056_v34 }
0x1276   :  { %2150 = vmatprep.mubr.f32.mxu0 %v4344_v62 }
0x1279   :  { %3400 = vmatmul.mubr.msk.f32.gmra.mrb[22].mxu0 %vm54_vm0, %v2057_v19 }
0x127a   :  { %v4206_v49 = vpop.eup %4205  ;;  %2156 = vmatprep.mubr.f32.mxu0 %v4344_v62 }
0x127b   :  { %v4208_v38 = vpop.eup %4207  ;;  %v2051_v21 = vmul.f32 %v4206_v49, %v4954_v36 }
0x127c   :  { %v2050_v47 = vmul.f32 %v4208_v38, %v4956_v39 }
0x127d   :  { %v2059_v5 = vmul.f32 %v3398_v15, %v2051_v21 }
0x127e   :  { %v2058_v13 = vmul.f32 %v3398_v15, %v2050_v47 }
0x1280   :  { %3401 = vmatmul.mubr.msk.f32.gmra.mrb[24].mxu0 %vm54_vm0, %v2058_v13 }
0x1281   :  { %2162 = vmatprep.mubr.f32.mxu0 %v4344_v62 }
0x1284   :  { %3402 = vmatmul.mubr.msk.f32.gmra.mrb[26].mxu0 %vm54_vm0, %v2059_v5 }
0x1348   :  { %v5003_v48 = vpop.f32.mrb[20].mxu0 }
0x1349   :  { %v5005_v55 = vpop.f32.mrb[21].mxu0  ;;  %v2190_v27 = vrot.slane %v5003_v48, 5  ;;  %v2265_v29 = vrot.slane %v5003_v48, 6  ;;  %v2336_v32 = vrot.slane %v5003_v48, 7 }
0x134a   :  { %v5008_v58 = vadd.f32 %v2601_v20, %v5005_v55  ;;  %v2191_v31 = vrot.slane %v5005_v55, 5  ;;  %v2266_v40 = vrot.slane %v5005_v55, 6  ;;  %v2337_v53 = vrot.slane %v5005_v55, 7 }
0x134c   :  { %v2611_v24 = vand.u32 2147483647, %v5008_v58  ;;  %v5011_v17 = vpop.f32.mrb[22].mxu0 }
0x134d   :  { %v5015_v30 = vpop.f32.mrb[23].mxu0  ;;  %v2192_v12 = vrot.slane %v5011_v17, 5  ;;  %v2267_v6 = vrot.slane %v5011_v17, 6  ;;  %v2338_v50 = vrot.slane %v5011_v17, 7 }
0x134e   :  { %v2615_v46 = vsub.f32 0.0, %v2611_v24  ;;  %v5022_v33 = vadd.f32 %v2601_v20, %v5015_v30  ;;  %v2194_v23 = vrot.slane %v5015_v30, 5  ;;  %v2269_v35 = vrot.slane %v5015_v30, 6 }
0x134f   :  { %v5029_v28 = vsel %vm2189_vm10, %v2190_v27, %v2192_v12  ;;  %v5035_v41 = vsel %vm2264_vm11, %v2265_v29, %v2267_v6  ;;  %v5053_v54 = vsel %vm2335_vm12, %v2336_v32, %v2338_v50  ;;  %v2340_v59 = vrot.slane %v5015_v30, 7 }
0x1350   :  { %v2619_v37 = vmul.f32 1.442695, %v2615_v46  ;;  %v2612_v57 = vand.u32 2147483647, %v5022_v33  ;;  %v5042_v51 = vsel %vm2189_vm10, %v2191_v31, %v2194_v23  ;;  %v5047_v52 = vsel %vm2264_vm11, %v2266_v40, %v2269_v35 }
0x1351   :  { %v5061_v10 = vsel %vm2335_vm12, %v2337_v53, %v2340_v59 }
0x1352   :  { %4209 = vpow2.f32 %v2619_v37  ;;  %v2616_v26 = vsub.f32 0.0, %v2612_v57  ;;  %v2607_v37 = vmax.f32 %v5008_v58, 0.0  ;;  %v5112_v58 = vld [vmem:[%s5443_s1 + $0x58] sm:$0xff] }
0x1353   :  { %v5056_v8 = vpop.f32.mrb[24].mxu0  ;;  %3781 = vmatprep.mubr.msk.f32.mxu1 %vm54_vm0, %v5112_v58 }
0x1354   :  { %v2621_v60 = vmul.f32 1.442695, %v2616_v26  ;;  %v5063_v61 = vpop.f32.mrb[25].mxu0  ;;  %v2212_v25 = vrot.slane %v5056_v8, 5  ;;  %v2283_v3 = vrot.slane %v5056_v8, 6  ;;  %v2354_v49 = vrot.slane %v5056_v8, 7 }
0x1355   :  { %v2605_v62 = vadd.f32 %v2601_v20, %v5063_v61  ;;  %v2213_v56 = vrot.slane %v5063_v61, 5  ;;  %v2284_v45 = vrot.slane %v5063_v61, 6  ;;  %v2355_v21 = vrot.slane %v5063_v61, 7 }
0x1356   :  { %4211 = vpow2.f32 %v2621_v60 }
0x1357   :  { %v2613_v63 = vand.u32 2147483647, %v2605_v62  ;;  %v5066_v0 = vpop.f32.mrb[26].mxu0 }
0x1358   :  { %v5068_v16 = vpop.f32.mrb[27].mxu0  ;;  %v2214_v42 = vrot.slane %v5066_v0, 5  ;;  %v2285_v4 = vrot.slane %v5066_v0, 6  ;;  %v2356_v13 = vrot.slane %v5066_v0, 7 }
0x1359   :  { %v2617_v22 = vsub.f32 0.0, %v2613_v63  ;;  %v2606_v43 = vadd.f32 %v2601_v20, %v5068_v16  ;;  %v2216_v2 = vrot.slane %v5068_v16, 5  ;;  %v2287_v7 = vrot.slane %v5068_v16, 6 }
0x135a   :  { %v5079_v1 = vsel %vm2189_vm10, %v2212_v25, %v2214_v42  ;;  %v5090_v18 = vsel %vm2264_vm11, %v2283_v3, %v2285_v4  ;;  %v2358_v5 = vrot.slane %v5068_v16, 7  ;;  %v2357_v24 = vsel %vm2335_vm12, %v2354_v49, %v2356_v13 }
0x135b   :  { %v2623_v44 = vmul.f32 1.442695, %v2617_v22  ;;  %v2614_v15 = vand.u32 2147483647, %v2606_v43  ;;  %v2217_v14 = vsel %vm2189_vm10, %v2213_v56, %v2216_v2  ;;  %v5095_v19 = vsel %vm2264_vm11, %v2284_v45, %v2287_v7 }
0x135c   :  { %v4210_v34 = vpop.eup %4209  ;;  %v2359_v6 = vsel %vm2335_vm12, %v2355_v21, %v2358_v5  ;;  %v2608_v42 = vmax.f32 %v5022_v33, 0.0  ;;  %v2609_v7 = vmax.f32 %v2605_v62, 0.0  ;;  %v2610_v33 = vmax.f32 %v2606_v43, 0.0  ;;  %v5215_v5 = vld [vmem:[%s5443_s1 + $0x70] sm:$0xff] }
0x135d   :  { %v2627_v38 = vadd.f32 1.0, %v4210_v34  ;;  %4213 = vpow2.f32 %v2623_v44  ;;  %v2618_v47 = vsub.f32 0.0, %v2614_v15 }
0x135f   :  { %v2625_v20 = vmul.f32 1.442695, %v2618_v47  ;;  %4215 = vlog2.f32 %v2627_v38 }
0x1360   :  { %v4212_v12 = vpop.eup %4211 }
0x1361   :  { %4217 = vpow2.f32 %v2625_v20  ;;  %v2628_v46 = vadd.f32 1.0, %v4212_v12 }
0x1363   :  { %4219 = vlog2.f32 %v2628_v46 }
0x1367   :  { %v4214_v23 = vpop.eup %4213 }
0x1368   :  { %v2629_v35 = vadd.f32 1.0, %v4214_v23 }
0x1369   :  { %v4216_v50 = vpop.eup %4215 }
0x136a   :  { %v2632_v57 = vmul.f32 0.6931472, %v4216_v50  ;;  %4221 = vlog2.f32 %v2629_v35 }
0x136b   :  { %v4218_v59 = vpop.eup %4217 }
0x136c   :  { %v2639_v26 = vadd.f32 %v2632_v57, %v2607_v37  ;;  %v2630_v60 = vadd.f32 1.0, %v4218_v59 }
0x136d   :  { %v4220_v63 = vpop.eup %4219 }
0x136e   :  { %2647 = vrot.lane.b32.xlu1 %v2639_v26, %s4329_s5  ;;  %v2634_v22 = vmul.f32 0.6931472, %v4220_v63  ;;  %4223 = vlog2.f32 %v2630_v60 }
0x1370   :  { %v2640_v2 = vadd.f32 %v2634_v22, %v2608_v42 }
0x1372   :  { %2649 = vrot.lane.b32.xlu1 %v2640_v2, %s4329_s5 }
0x1374   :  { %v4222_v4 = vpop.eup %4221 }
0x1375   :  { %v2636_v44 = vmul.f32 0.6931472, %v4222_v4 }
0x1377   :  { %v2641_v15 = vadd.f32 %v2636_v44, %v2609_v7 }
0x1378   :  { %v4224_v34 = vpop.eup %4223 }
0x1379   :  { %2651 = vrot.lane.b32.xlu1 %v2641_v15, %s4329_s5  ;;  %v2638_v38 = vmul.f32 0.6931472, %v4224_v34 }
0x137b   :  { %v2642_v47 = vadd.f32 %v2638_v38, %v2610_v33 }
0x137d   :  { %2653 = vrot.lane.b32.xlu0 %v2642_v47, %s4329_s5  ;;  %2196 = vrot.lane.b32.xlu1 %v2190_v27, %s4331_s16  ;;  %v2169_v27 = vlaneseq }
0x1381   :  { %2198 = vrot.lane.b32.xlu0 %v2191_v31, %s4331_s16  ;;  %2200 = vrot.lane.b32.xlu1 %v5029_v28, %s4331_s16 }
0x1385   :  { %2202 = vrot.lane.b32.xlu0 %v5042_v51, %s4331_s16  ;;  %2271 = vrot.lane.b32.xlu1 %v2265_v29, %s4331_s16  ;;  %v2170_v29 = vshrl.u32 %v2169_v27, 7 }
0x1387   :  { %v2171_v31 = vsub.s32 3, %v2170_v29  ;;  %v2376_v26 = vsub.s32 2, %v2170_v29 }
0x1389   :  { %2273 = vrot.lane.b32.xlu0 %v2266_v40, %s4331_s16  ;;  %2218 = vrot.lane.b32.xlu1 %v2212_v25, %s4331_s16  ;;  %v3403_v40 = vld [vmem:[%s5443_s1 + $0x9] ss:$0 sm:$0xff] }
0x138d   :  { %2220 = vrot.lane.b32.xlu0 %v2213_v56, %s4331_s16  ;;  %2275 = vrot.lane.b32.xlu1 %v5035_v41, %s4331_s16 }
0x1391   :  { %2277 = vrot.lane.b32.xlu0 %v5047_v52, %s4331_s16  ;;  %2342 = vrot.lane.b32.xlu1 %v2336_v32, %s4331_s16  ;;  %v36_v32 = vld [vmem:[%s5443_s1 + $0xe] sm:$0xf] }
0x1392   :  { %v2172_v28 = vrot.slane %v36_v32, %v2171_v31  ;;  %v2377_v42 = vrot.slane %v36_v32, %v2376_v26 }
0x1395   :  { %2344 = vrot.lane.b32.xlu0 %v2337_v53, %s4331_s16  ;;  %2222 = vrot.lane.b32.xlu1 %v5079_v1, %s4331_s16 }
0x1399   :  { %2224 = vrot.lane.b32.xlu0 %v2217_v14, %s4331_s16  ;;  %2289 = vrot.lane.b32.xlu1 %v2283_v3, %s4331_s16  ;;  %v5199_v3 = vld [vmem:[%s5443_s1 + $0x60] sm:$0xff]  ;;  %v5205_v14 = vld [vmem:[%s5443_s1 + $0x68] sm:$0xff] }
0x139d   :  { %2291 = vrot.lane.b32.xlu0 %v2284_v45, %s4331_s16  ;;  %2346 = vrot.lane.b32.xlu1 %v5053_v54, %s4331_s16  ;;  %v5189_v54 = vsub.s32 0, %v2170_v29 }
0x139f   :  { %v2235_v56 = vrot.slane %v36_v32, %v5189_v54 }
0x13a1   :  { %2348 = vrot.lane.b32.xlu0 %v5061_v10, %s4331_s16  ;;  %2293 = vrot.lane.b32.xlu1 %v5090_v18, %s4331_s16 }
0x13a5   :  { %2295 = vrot.lane.b32.xlu0 %v5095_v19, %s4331_s16  ;;  %2360 = vrot.lane.b32.xlu1 %v2354_v49, %s4331_s16  ;;  %v2305_v49 = vsub.s32 1, %v2170_v29 }
0x13a7   :  { %v2306_v20 = vrot.slane %v36_v32, %v2305_v49 }
0x13a9   :  { %2362 = vrot.lane.b32.xlu0 %v2355_v21, %s4331_s16  ;;  %2364 = vrot.lane.b32.xlu1 %v2357_v24, %s4331_s16 }
0x13ad   :  { %2366 = vrot.lane.b32.xlu0 %v2359_v6, %s4331_s16  ;;  %2174 = vrot.lane.b32.xlu1 %v2172_v28, %s4331_s16 }
0x13b1   :  { %2411 = vrot.lane.b32.xlu1 %v3403_v40, %s4331_s16 }
0x13e0   :  { %v5181_v41 = vpop.permute.xlu1 %2647 }
0x13e4   :  { %v5183_v51 = vpop.permute.xlu1 %2649 }
0x13e5   :  { %v3979_v52 = vpack.c.bf16 %v5183_v51, %v5181_v41 }
0x13e7   :  { %3980 = vmatprep.subr.bf16.mxu1 %v3979_v52 }
0x13e8   :  { %3982 = vmatpush3.bf16.msra.mxu1 %v3979_v52 }
0x13eb   :  { %v5187_v53 = vpop.permute.xlu1 %2651 }
0x13ef   :  { %v5191_v10 = vpop.permute.xlu0 %2653  ;;  %v2197_v62 = vpop.permute.xlu1 %2196 }
0x13f0   :  { %v3983_v25 = vpack.c.bf16 %v5191_v10, %v5187_v53 }
0x13f2   :  { %3984 = vmatprep.subr.bf16.mxu1 %v3983_v25 }
0x13f3   :  { %v2199_v43 = vpop.permute.xlu0 %2198  ;;  %3986 = vmatpush3.bf16.msra.mxu1 %v3983_v25  ;;  %v2201_v1 = vpop.permute.xlu1 %2200 }
0x13f4   :  { %v2204_v45 = vsel %vm1910_vm9, %v2197_v62, %v2199_v43 }
0x13f5   :  { %v2230_v18 = vsel %vm2189_vm10, 0.0, %v2204_v45 }
0x13f6   :  { %v2236_v19 = vmul.f32 %v2235_v56, %v2230_v18  ;;  %3782 = vmatmul.mubr.msk.f32.vlgmr.msra.gmra.mrb[28].mxu1 %vm54_vm0, %v5199_v3 }
0x13f7   :  { %v2203_v13 = vpop.permute.xlu0 %2202  ;;  %v2272_v21 = vpop.permute.xlu1 %2271  ;;  %3784 = vmatprep.mubr.msk.f32.mxu1 %vm54_vm0, %v5205_v14 }
0x13f8   :  { %2244 = vrot.lane.b32.xlu0 %v2236_v19, %s4331_s16  ;;  %v2205_v15 = vsel %vm1910_vm9, %v2201_v1, %v2203_v13 }
0x13f9   :  { %v2237_v38 = vmul.f32 %v2235_v56, %v2205_v15 }
0x13fa   :  { %3785 = vmatmul.mubr.msk.f32.gmra.mrb[30].mxu1 %vm54_vm0, %v5215_v5 }
0x13fb   :  { %v2274_v24 = vpop.permute.xlu0 %2273  ;;  %v2219_v12 = vpop.permute.xlu1 %2218 }
0x13fc   :  { %v2279_v6 = vsel %vm1910_vm9, %v2272_v21, %v2274_v24 }
0x13fd   :  { %v2301_v46 = vsel %vm2264_vm11, 0.0, %v2279_v6 }
0x13fe   :  { %v2307_v23 = vmul.f32 %v2306_v20, %v2301_v46 }
0x13ff   :  { %v2221_v35 = vpop.permute.xlu0 %2220  ;;  %v2276_v50 = vpop.permute.xlu1 %2275 }
0x1400   :  { %v2226_v37 = vsel %vm1910_vm9, %v2219_v12, %v2221_v35  ;;  %2315 = vrot.lane.b32.xlu0 %v2307_v23, %s4331_s16 }
0x1401   :  { %v2231_v57 = vsel %vm2189_vm10, 0.0, %v2226_v37 }
0x1402   :  { %v2238_v59 = vmul.f32 %v2235_v56, %v2231_v57 }
0x1403   :  { %v2278_v60 = vpop.permute.xlu0 %2277  ;;  %v2343_v63 = vpop.permute.xlu1 %2342 }
0x1404   :  { %2248 = vrot.lane.b32.xlu0 %v2238_v59, %s4331_s16  ;;  %v2280_v47 = vsel %vm1910_vm9, %v2276_v50, %v2278_v60 }
0x1405   :  { %v2308_v28 = vmul.f32 %v2306_v20, %v2280_v47 }
0x1407   :  { %v2345_v22 = vpop.permute.xlu0 %2344  ;;  %v2223_v2 = vpop.permute.xlu1 %2222 }
0x1408   :  { %v2350_v4 = vsel %vm1910_vm9, %v2343_v63, %v2345_v22 }
0x1409   :  { %v2372_v7 = vsel %vm2335_vm12, 0.0, %v2350_v4 }
0x140a   :  { %v2378_v44 = vmul.f32 %v2377_v42, %v2372_v7 }
0x140b   :  { %v2225_v34 = vpop.permute.xlu0 %2224  ;;  %v2290_v33 = vpop.permute.xlu1 %2289 }
0x140c   :  { %2386 = vrot.lane.b32.xlu1 %v2378_v44, %s4331_s16  ;;  %v2227_v52 = vsel %vm1910_vm9, %v2223_v2, %v2225_v34 }
0x140d   :  { %v2239_v45 = vmul.f32 %v2235_v56, %v2227_v52 }
0x140f   :  { %v2292_v27 = vpop.permute.xlu0 %2291  ;;  %v2347_v29 = vpop.permute.xlu1 %2346 }
0x1410   :  { %v2297_v31 = vsel %vm1910_vm9, %v2290_v33, %v2292_v27  ;;  %2246 = vrot.lane.b32.xlu1 %v2237_v38, %s4331_s16 }
0x1411   :  { %v2302_v32 = vsel %vm2264_vm11, 0.0, %v2297_v31 }
0x1412   :  { %v2309_v40 = vmul.f32 %v2306_v20, %v2302_v32 }
0x1413   :  { %v2349_v62 = vpop.permute.xlu0 %2348  ;;  %v2294_v25 = vpop.permute.xlu1 %2293 }
0x1414   :  { %v2351_v43 = vsel %vm1910_vm9, %v2347_v29, %v2349_v62  ;;  %2317 = vrot.lane.b32.xlu1 %v2308_v28, %s4331_s16  ;;  %2319 = vrot.lane.b32.xlu0 %v2309_v40, %s4331_s16 }
0x1415   :  { %v2379_v1 = vmul.f32 %v2377_v42, %v2351_v43 }
0x1417   :  { %v2296_v18 = vpop.permute.xlu0 %2295  ;;  %v2361_v13 = vpop.permute.xlu1 %2360 }
0x1418   :  { %v2298_v19 = vsel %vm1910_vm9, %v2294_v25, %v2296_v18  ;;  %2250 = vrot.lane.b32.xlu0 %v2239_v45, %s4331_s16  ;;  %2388 = vrot.lane.b32.xlu1 %v2379_v1, %s4331_s16 }
0x1419   :  { %v2310_v49 = vmul.f32 %v2306_v20, %v2298_v19  ;;  %v5250_v20 = vld [vmem:[%s5443_s1 + $0x12] sm:$0xf] }
0x141a   :  { %3787 = vmatprep.subr.msk.mxu1 %vm2805_vm13, %v5250_v20 }
0x141b   :  { %v2363_v21 = vpop.permute.xlu0 %2362  ;;  %v2365_v46 = vpop.permute.xlu1 %2364  ;;  %3788 = vmatpush3.msk.msra.mxu1 %vm2805_vm13, %v5250_v20 }
0x141c   :  { %v2368_v24 = vsel %vm1910_vm9, %v2361_v13, %v2363_v21  ;;  %2321 = vrot.lane.b32.xlu0 %v2310_v49, %s4331_s16 }
0x141d   :  { %v2373_v12 = vsel %vm2335_vm12, 0.0, %v2368_v24 }
0x141e   :  { %v2380_v6 = vmul.f32 %v2377_v42, %v2373_v12 }
0x141f   :  { %v2367_v23 = vpop.permute.xlu0 %2366  ;;  %v2175_v50 = vpop.permute.xlu1 %2174 }
0x1420   :  { %v2369_v56 = vsel %vm1910_vm9, %v2365_v46, %v2367_v23  ;;  %2390 = vrot.lane.b32.xlu1 %v2380_v6, %s4331_s16  ;;  %v2178_v59 = vmul.f32 %v2175_v50, %v5005_v55  ;;  %v2177_v15 = vmul.f32 %v2175_v50, %v5003_v48  ;;  %v2180_v33 = vmul.f32 %v2175_v50, %v5015_v30 }
0x1421   :  { %v2381_v35 = vmul.f32 %v2377_v42, %v2369_v56  ;;  %v2179_v27 = vmul.f32 %v2175_v50, %v5011_v17  ;;  %v2181_v1 = vmul.f32 %v2175_v50, %v5056_v8  ;;  %v2182_v45 = vmul.f32 %v2175_v50, %v5063_v61 }
0x1422   :  { %v2183_v24 = vmul.f32 %v2175_v50, %v5066_v0  ;;  %v2184_v12 = vmul.f32 %v2175_v50, %v5068_v16 }
0x1423   :  { %2392 = vrot.lane.b32.xlu0 %v2381_v35, %s4331_s16  ;;  %v5256_v57 = vpop.permute.xlu1 %2411 }
0x146a   :  { %v2245_v37 = vpop.permute.xlu0 %2244 }
0x146b   :  { %v2257_v60 = vadd.f32 %v2245_v37, %v2178_v59  ;;  %v2256_v38 = vadd.f32 %v2245_v37, %v2177_v15 }
0x1472   :  { %v2316_v26 = vpop.permute.xlu0 %2315 }
0x1473   :  { %v2328_v63 = vadd.f32 %v2316_v26, %v2257_v60  ;;  %v2327_v31 = vadd.f32 %v2316_v26, %v2256_v38 }
0x1476   :  { %v2249_v4 = vpop.permute.xlu0 %2248 }
0x1477   :  { %v2260_v49 = vadd.f32 %v2249_v4, %v2181_v1  ;;  %v2261_v13 = vadd.f32 %v2249_v4, %v2182_v45 }
0x147e   :  { %v2387_v42 = vpop.permute.xlu1 %2386 }
0x147f   :  { %v2399_v22 = vadd.f32 %v2387_v42, %v2328_v63  ;;  %v2398_v40 = vadd.f32 %v2387_v42, %v2327_v31 }
0x1481   :  { %v5260_v2 = vadd.f32 %v5256_v57, %v2399_v22  ;;  %v5272_v19 = vadd.f32 %v5256_v57, %v2398_v40 }
0x1482   :  { %v2247_v7 = vpop.permute.xlu1 %2246 }
0x1483   :  { %v2423_v44 = vsub.f32 0.0, %v5260_v2  ;;  %v2259_v29 = vadd.f32 %v2247_v7, %v2180_v33  ;;  %v2258_v32 = vadd.f32 %v2247_v7, %v2179_v27  ;;  %v2422_v35 = vsub.f32 0.0, %v5272_v19 }
0x1485   :  { %v2432_v34 = vmul.f32 1.442695, %v2423_v44 }
0x1486   :  { %v2320_v47 = vpop.permute.xlu0 %2319  ;;  %v2318_v55 = vpop.permute.xlu1 %2317 }
0x1487   :  { %4225 = vpow2.f32 %v2432_v34  ;;  %v2330_v28 = vadd.f32 %v2318_v55, %v2259_v29  ;;  %v2329_v62 = vadd.f32 %v2318_v55, %v2258_v32  ;;  %v2331_v6 = vadd.f32 %v2320_v47, %v2260_v49 }
0x1488   :  { %v2332_v46 = vadd.f32 %v2320_v47, %v2261_v13  ;;  %v2430_v34 = vmul.f32 1.442695, %v2422_v35 }
0x148a   :  { %v2389_v52 = vpop.permute.xlu1 %2388  ;;  %v2251_v25 = vpop.permute.xlu0 %2250 }
0x148b   :  { %v2401_v43 = vadd.f32 %v2389_v52, %v2330_v28  ;;  %v2400_v30 = vadd.f32 %v2389_v52, %v2329_v62  ;;  %v2262_v37 = vadd.f32 %v2251_v25, %v2183_v24  ;;  %v2263_v59 = vadd.f32 %v2251_v25, %v2184_v12 }
0x148d   :  { %v5269_v18 = vadd.f32 %v5256_v57, %v2401_v43  ;;  %v5278_v23 = vadd.f32 %v5256_v57, %v2400_v30 }
0x148e   :  { %v2322_v61 = vpop.permute.xlu0 %2321 }
0x148f   :  { %v2425_v21 = vsub.f32 0.0, %v5269_v18  ;;  %v2333_v4 = vadd.f32 %v2322_v61, %v2262_v37  ;;  %v2334_v7 = vadd.f32 %v2322_v61, %v2263_v59  ;;  %v2424_v16 = vsub.f32 0.0, %v5278_v23 }
0x1491   :  { %v4226_v56 = vpop.eup %4225  ;;  %v2436_v26 = vmul.f32 1.442695, %v2425_v21  ;;  %v2434_v31 = vmul.f32 1.442695, %v2424_v16 }
0x1492   :  { %v2391_v60 = vpop.permute.xlu1 %2390  ;;  %v2447_v63 = vadd.f32 1.0, %v4226_v56 }
0x1493   :  { %v2402_v42 = vadd.f32 %v2391_v60, %v2331_v6  ;;  %v2403_v22 = vadd.f32 %v2391_v60, %v2332_v46 }
0x1494   :  { %4227 = vrcp.f32 %v2447_v63 }
0x1495   :  { %v5283_v50 = vadd.f32 %v5256_v57, %v2402_v42  ;;  %v2419_v44 = vadd.f32 %v5256_v57, %v2403_v22  ;;  %v2393_v15 = vpop.permute.xlu0 %2392  ;;  %4229 = vpow2.f32 %v2436_v26 }
0x1496   :  { %v2404_v33 = vadd.f32 %v2393_v15, %v2333_v4  ;;  %v2405_v38 = vadd.f32 %v2393_v15, %v2334_v7  ;;  %4231 = vpow2.f32 %v2430_v34 }
0x1497   :  { %v2426_v47 = vsub.f32 0.0, %v5283_v50  ;;  %v2427_v55 = vsub.f32 0.0, %v2419_v44 }
0x1498   :  { %v5288_v27 = vadd.f32 %v5256_v57, %v2404_v33  ;;  %v2421_v29 = vadd.f32 %v5256_v57, %v2405_v38 }
0x1499   :  { %v2440_v32 = vmul.f32 1.442695, %v2427_v55  ;;  %v2438_v28 = vmul.f32 1.442695, %v2426_v47 }
0x149a   :  { %v2428_v40 = vsub.f32 0.0, %v5288_v27  ;;  %v2429_v52 = vsub.f32 0.0, %v2421_v29 }
0x149b   :  { %4233 = vpow2.f32 %v2440_v32 }
0x149c   :  { %v2444_v62 = vmul.f32 1.442695, %v2429_v52  ;;  %4235 = vpow2.f32 %v2434_v31  ;;  %v2442_v25 = vmul.f32 1.442695, %v2428_v40 }
0x149d   :  { %4237 = vpow2.f32 %v2438_v28 }
0x149e   :  { %v4228_v43 = vpop.eup %4227  ;;  %4239 = vpow2.f32 %v2444_v62 }
0x149f   :  { %v4230_v1 = vpop.eup %4229  ;;  %v2471_v45 = vmul.f32 %v4228_v43, %v5260_v2  ;;  %4241 = vpow2.f32 %v2442_v25 }
0x14a0   :  { %v2449_v30 = vadd.f32 1.0, %v4230_v1  ;;  %v4232_v57 = vpop.eup %4231 }
0x14a1   :  { %2482 = vrot.lane.b32.xlu1 %v2471_v45, %s4336_s21  ;;  %v2446_v21 = vadd.f32 1.0, %v4232_v57 }
0x14a2   :  { %4243 = vrcp.f32 %v2449_v30 }
0x14a5   :  { %v4234_v49 = vpop.eup %4233 }
0x14a6   :  { %v4236_v13 = vpop.eup %4235  ;;  %v2451_v24 = vadd.f32 1.0, %v4234_v49 }
0x14a7   :  { %v4238_v12 = vpop.eup %4237  ;;  %v2448_v46 = vadd.f32 1.0, %v4236_v13 }
0x14a8   :  { %v4240_v6 = vpop.eup %4239  ;;  %4245 = vrcp.f32 %v2451_v24  ;;  %v2450_v35 = vadd.f32 1.0, %v4238_v12 }
0x14a9   :  { %v2453_v61 = vadd.f32 1.0, %v4240_v6  ;;  %v4242_v56 = vpop.eup %4241  ;;  %4247 = vrcp.f32 %v2446_v21 }
0x14aa   :  { %v2452_v59 = vadd.f32 1.0, %v4242_v56 }
0x14ab   :  { %4249 = vrcp.f32 %v2453_v61 }
0x14ac   :  { %v4244_v2 = vpop.eup %4243  ;;  %4251 = vrcp.f32 %v2448_v46 }
0x14ad   :  { %v2473_v37 = vmul.f32 %v4244_v2, %v5269_v18  ;;  %4253 = vrcp.f32 %v2450_v35 }
0x14ae   :  { %4255 = vrcp.f32 %v2452_v59 }
0x14af   :  { %2484 = vrot.lane.b32.xlu0 %v2473_v37, %s4336_s21  ;;  %v3967_v60 = vpack.c.bf16 %v2473_v37, %v2471_v45 }
0x14b1   :  { %3969 = vmatprep.subr.msk.bf16.mxu0 %vm5297_vm14, %v3967_v60 }
0x14b2   :  { %v4246_v63 = vpop.eup %4245  ;;  %3972 = vmatpush3.bf16.xpose.msk.msra.mxu0 %vm5297_vm14, %v3967_v60 }
0x14b3   :  { %v2475_v18 = vmul.f32 %v4246_v63, %v2419_v44  ;;  %v4248_v42 = vpop.eup %4247 }
0x14b4   :  { %v2470_v16 = vmul.f32 %v4248_v42, %v5272_v19 }
0x14b5   :  { %v4250_v22 = vpop.eup %4249  ;;  %2486 = vrot.lane.b32.xlu1 %v2475_v18, %s4336_s21 }
0x14b6   :  { %v2477_v4 = vmul.f32 %v4250_v22, %v2421_v29  ;;  %v4252_v7 = vpop.eup %4251 }
0x14b7   :  { %v4254_v15 = vpop.eup %4253  ;;  %v2472_v33 = vmul.f32 %v4252_v7, %v5278_v23  ;;  %v33_v23 = vld [vmem:[%s5443_s1 + $0xb] sm:$0x1] }
0x14b8   :  { %2488 = vrot.lane.b32.xlu0 %v2477_v4, %s4336_s21  ;;  %v3973_v34 = vpack.c.bf16 %v2477_v4, %v2475_v18  ;;  %v4256_v44 = vpop.eup %4255  ;;  %v2474_v38 = vmul.f32 %v4254_v15, %v5283_v50  ;;  %v2756_v47 = vsub.f32 0.0, %v33_v23  ;;  %v2780_v55 = vrot.slane %v33_v23, %v5189_v54 }
0x14b9   :  { %2898 = vrot.lane.b32.xlu1 %v2470_v16, %s4331_s16  ;;  %v2476_v19 = vmul.f32 %v4256_v44, %v5288_v27 }
0x14ba   :  { %3975 = vmatprep.subr.msk.bf16.mxu0 %vm5297_vm14, %v3973_v34  ;;  %v2760_v50 = vrot.slane %v2756_v47, %v5189_v54 }
0x14bb   :  { %3978 = vmatpush3.bf16.xpose.msk.msra.mxu0 %vm5297_vm14, %v3973_v34 }
0x14bc   :  { %2900 = vrot.lane.b32.xlu0 %v2472_v33, %s4331_s16  ;;  %3795 = vmatprep.subr.msk.mxu0 %vm2805_vm13, %v5250_v20 }
0x14bd   :  { %2902 = vrot.lane.b32.xlu1 %v2474_v38, %s4331_s16 }
0x14c0   :  { %2904 = vrot.lane.b32.xlu0 %v2476_v19, %s4331_s16 }
0x14c9   :  { %v3783_v29 = vpop.f32.mrb[28].mxu1 }
0x14ca   :  { %v2762_v31 = vmul.f32 %v3783_v29, %v2760_v50  ;;  %v2782_v32 = vmul.f32 %v3783_v29, %v2780_v55  ;;  %v2737_v28 = vpop.f32.mrb[29].mxu1 }
0x14cb   :  { %v2761_v40 = vmul.f32 %v2760_v50, %v2737_v28  ;;  %v2781_v52 = vmul.f32 %v2780_v55, %v2737_v28 }
0x14cc   :  { %v2767_v62 = vmul.f32 1.442695, %v2762_v31  ;;  %v2787_v2 = vmul.f32 1.442695, %v2782_v32 }
0x14cd   :  { %v2765_v25 = vmul.f32 1.442695, %v2761_v40  ;;  %v3786_v27 = vpop.f32.mrb[30].mxu1 }
0x14ce   :  { %v2764_v43 = vmul.f32 %v3786_v27, %v2760_v50  ;;  %v2784_v1 = vmul.f32 %v3786_v27, %v2780_v55  ;;  %v2747_v45 = vpop.f32.mrb[31].mxu1  ;;  %4257 = vpow2.f32 %v2767_v62 }
0x14cf   :  { %v2763_v30 = vmul.f32 %v2760_v50, %v2747_v45  ;;  %v2783_v57 = vmul.f32 %v2780_v55, %v2747_v45  ;;  %4259 = vpow2.f32 %v2765_v25 }
0x14d0   :  { %v2771_v49 = vmul.f32 1.442695, %v2764_v43  ;;  %v3124_v43 = vsub.f32 0.0, %v5003_v48 }
0x14d1   :  { %v2769_v13 = vmul.f32 1.442695, %v2763_v30 }
0x14d2   :  { %4261 = vpow2.f32 %v2771_v49  ;;  %v3128_v45 = vmul.f32 1.442695, %v3124_v43 }
0x14d3   :  { %4263 = vpow2.f32 %v2769_v13 }
0x14d8   :  { %v4258_v54 = vpop.eup %4257 }
0x14d9   :  { %v4260_v21 = vpop.eup %4259  ;;  %v2774_v12 = vmul.f32 %v4258_v54, %v5183_v51  ;;  %v2789_v51 = vmul.f32 1.442695, %v2783_v57 }
0x14da   :  { %v2773_v24 = vmul.f32 %v4260_v21, %v5181_v41  ;;  %v2785_v41 = vmul.f32 1.442695, %v2781_v52 }
0x14dc   :  { %v4262_v6 = vpop.eup %4261  ;;  %3789 = vmatprep.mubr.msk.f32.mxu1 %vm269_vm1, %v2773_v24  ;;  %4265 = vpow2.f32 %v2785_v41 }
0x14dd   :  { %v4264_v46 = vpop.eup %4263  ;;  %3790 = vmatmul.mubr.msk.f32.vlgmr.msra.gmra.mrb[32].mxu1 %vm269_vm1, %v2774_v12  ;;  %v2776_v56 = vmul.f32 %v4262_v6, %v5191_v10  ;;  %4267 = vpow2.f32 %v2787_v2 }
0x14de   :  { %v2775_v61 = vmul.f32 %v4264_v46, %v5187_v53  ;;  %v2791_v53 = vmul.f32 1.442695, %v2784_v1  ;;  %4269 = vpow2.f32 %v2789_v51 }
0x14e0   :  { %3792 = vmatprep.mubr.msk.f32.mxu1 %vm269_vm1, %v2775_v61  ;;  %4271 = vpow2.f32 %v2791_v53  ;;  %v3431_v61 = vld [vmem:[%s5443_s1 + $0xc] ss:$0 sm:$0xff] }
0x14e1   :  { %3793 = vmatmul.mubr.msk.f32.gmra.mrb[34].mxu1 %vm269_vm1, %v2776_v56 }
0x14e6   :  { %v4266_v26 = vpop.eup %4265 }
0x14e7   :  { %v4268_v60 = vpop.eup %4267 }
0x14e8   :  { %v4270_v63 = vpop.eup %4269 }
0x1513   :  { %v2483_v35 = vpop.permute.xlu1 %2482 }
0x1514   :  { %3767 = vmatprep.mubr.msk.f32.mxu0 %vm284_vm4, %v2483_v35 }
0x1521   :  { %v2485_v37 = vpop.permute.xlu0 %2484 }
0x1522   :  { %3768 = vmatmul.mubr.msk.f32.vlgmr.msra.gmra.mrb[28].mxu0 %vm284_vm4, %v2485_v37 }
0x1523   :  { %3796 = vmatpush3.msk.msra.mxu0 %vm2805_vm13, %v5250_v20  ;;  %v4272_v20 = vpop.eup %4271 }
0x1527   :  { %v2487_v10 = vpop.permute.xlu1 %2486 }
0x1528   :  { %3770 = vmatprep.mubr.msk.f32.mxu0 %vm284_vm4, %v2487_v10 }
0x152a   :  { %v2489_v59 = vpop.permute.xlu0 %2488 }
0x152b   :  { %3771 = vmatmul.mubr.msk.f32.gmra.mrb[30].mxu0 %vm284_vm4, %v2489_v59  ;;  %v5345_v42 = vpop.permute.xlu1 %2898 }
0x152c   :  { %3797 = vmatprep.mubr.msk.f32.mxu0 %vm269_vm1, %v4266_v26  ;;  %v3116_v53 = vmul.f32 %v3431_v61, %v5345_v42 }
0x152e   :  { %v2901_v18 = vpop.permute.xlu0 %2900 }
0x152f   :  { %3798 = vmatmul.mubr.msk.f32.vlgmr.msra.gmra.mrb[32].mxu0 %vm269_vm1, %v4268_v60  ;;  %v5350_v44 = vpop.permute.xlu1 %2902  ;;  %v3117_v2 = vmul.f32 %v3431_v61, %v2901_v18 }
0x1530   :  { %3800 = vmatprep.mubr.msk.f32.mxu0 %vm269_vm1, %v4270_v63 }
0x1532   :  { %v5348_v15 = vpop.permute.xlu0 %2904 }
0x1533   :  { %3801 = vmatmul.mubr.msk.f32.gmra.mrb[34].mxu0 %vm269_vm1, %v4272_v20 }
0x15b0   :  { %v3791_v22 = vpop.f32.mrb[32].mxu1 }
0x15b1   :  { %v2911_v4 = vmul.f32 %v3791_v22, %v2901_v18  ;;  %v2875_v7 = vpop.f32.mrb[33].mxu1 }
0x15b2   :  { %v2910_v16 = vmul.f32 %v5345_v42, %v2875_v7 }
0x15b4   :  { %v3987_v34 = vpack.c.bf16 %v2911_v4, %v2910_v16  ;;  %v3794_v33 = vpop.f32.mrb[34].mxu1 }
0x15b5   :  { %v2913_v38 = vmul.f32 %v3794_v33, %v5348_v15  ;;  %v2885_v19 = vpop.f32.mrb[35].mxu1 }
0x15b6   :  { %v2912_v23 = vmul.f32 %v5350_v44, %v2885_v19  ;;  %3988 = vmatprep.subr.bf16.mxu1 %v3987_v34  ;;  %v3118_v19 = vmul.f32 %v3431_v61, %v5350_v44  ;;  %v3197_v44 = vld [vmem:[%s5445_s3 + $0x8] sm:$0xff] }
0x15b7   :  { %3990 = vmatpush3.bf16.msra.mxu1 %v3987_v34 }
0x15b8   :  { %v3991_v47 = vpack.c.bf16 %v2913_v38, %v2912_v23 }
0x15ba   :  { %3992 = vmatprep.subr.bf16.mxu1 %v3991_v47 }
0x15bb   :  { %3994 = vmatpush3.bf16.msra.mxu1 %v3991_v47 }
0x15f5   :  { %v3769_v50 = vpop.f32.mrb[28].mxu0 }
0x15f6   :  { %v2572_v55 = vpop.f32.mrb[29].mxu0  ;;  %v2592_v31 = vmul.f32 %v3769_v50, %v5199_v3  ;;  %v3125_v3 = vsub.f32 0.0, %v5011_v17 }
0x15f7   :  { %v2591_v29 = vmul.f32 %v2572_v55, %v5112_v58 }
0x15f8   :  { %v3130_v1 = vmul.f32 1.442695, %v3125_v3  ;;  %v3202_v3 = vld [vmem:[%s5445_s3 + $0x58] sm:$0xff] }
0x15f9   :  { %3811 = vmatprep.mubr.msk.f32.mxu1 %vm54_vm0, %v2591_v29 }
0x15fa   :  { %3812 = vmatmul.mubr.msk.f32.vlgmr.msra.gmra.mrb[36].mxu1 %vm54_vm0, %v2592_v31  ;;  %4273 = vpow2.f32 %v3130_v1  ;;  %v3203_v1 = vld [vmem:[%s5445_s3 + $0x68] sm:$0xff] }
0x15fb   :  { %4275 = vpow2.f32 %v3128_v45  ;;  %v3204_v45 = vld [vmem:[%s5445_s3 + $0x78] sm:$0xff] }
0x15fe   :  { %v3772_v32 = vpop.f32.mrb[30].mxu0 }
0x15ff   :  { %v2582_v28 = vpop.f32.mrb[31].mxu0  ;;  %v2594_v52 = vmul.f32 %v3772_v32, %v5215_v5  ;;  %v3126_v5 = vsub.f32 0.0, %v5056_v8 }
0x1600   :  { %v2593_v40 = vmul.f32 %v2582_v28, %v5205_v14  ;;  %v3127_v14 = vsub.f32 0.0, %v5066_v0 }
0x1601   :  { %v3132_v57 = vmul.f32 1.442695, %v3126_v5 }
0x1602   :  { %v3799_v62 = vpop.f32.mrb[32].mxu0  ;;  %3814 = vmatprep.mubr.msk.f32.mxu1 %vm54_vm0, %v2593_v40  ;;  %v3134_v30 = vmul.f32 1.442695, %v3127_v14  ;;  %v4007_v14 = vpack.c.bf16 %v3204_v45, %v3203_v1 }
0x1603   :  { %v2992_v25 = vpop.f32.mrb[33].mxu0  ;;  %3815 = vmatmul.mubr.msk.f32.gmra.mrb[38].mxu1 %vm54_vm0, %v2594_v52 }
0x1604   :  { %4277 = vpow2.f32 %v3134_v30  ;;  %v4274_v49 = vpop.eup %4273 }
0x1605   :  { %4279 = vpow2.f32 %v3132_v57  ;;  %v4276_v13 = vpop.eup %4275  ;;  %v3137_v54 = vadd.f32 1.0, %v4274_v49 }
0x1606   :  { %v3802_v27 = vpop.f32.mrb[34].mxu0  ;;  %v3136_v21 = vadd.f32 1.0, %v4276_v13 }
0x1607   :  { %v3002_v58 = vpop.f32.mrb[35].mxu0  ;;  %4281 = vrcp.f32 %v3137_v54 }
0x1608   :  { %4283 = vrcp.f32 %v3136_v21 }
0x160e   :  { %v4278_v24 = vpop.eup %4277 }
0x160f   :  { %v4280_v12 = vpop.eup %4279  ;;  %v3139_v6 = vadd.f32 1.0, %v4278_v24 }
0x1610   :  { %v3138_v46 = vadd.f32 1.0, %v4280_v12 }
0x1611   :  { %4285 = vrcp.f32 %v3139_v6  ;;  %v4282_v56 = vpop.eup %4281 }
0x1612   :  { %4287 = vrcp.f32 %v3138_v46  ;;  %v4284_v41 = vpop.eup %4283  ;;  %v3149_v26 = vmul.f32 %v4282_v56, %v5011_v17  ;;  %v3119_v17 = vmul.f32 %v3431_v61, %v5348_v15 }
0x1613   :  { %v3148_v63 = vmul.f32 %v4284_v41, %v5003_v48  ;;  %v3432_v41 = vld [vmem:[%s5443_s1 + $0xd] ss:$0 sm:$0xff]  ;;  %s4345_s1 = smov [#allocation2]  }
0x1614   :  { %s3315_s13 = sshll.u32 %s4345_s1, 4  ;;  %s3316_s13 = int_to_ptr.vmem [resolvable:$true] %s3315_s13 }
0x1615   :  { %s4301_s14 = scalar_lea.vmem %s3316_s13, 512  ;;  %p4306_p1 = scmp.lt.s32.totalorder %s3316_s13, %s3316_s13 }
0x1616   :  { %p4302_p0 = scmp.ne.s32.totalorder %s3316_s13, %s4301_s14  ;;  %p4307_p2 = scmp.lt.s32.totalorder %s4301_s14, %s4301_s14 }
0x1618   :  { %p4308_p3 = por %p4307_p2, %p4306_p1 }
0x161a   :  { %p4309_p4 = pnand %p4308_p3, %p4302_p0 }
0x161b   :  { %v4286_v7 = vpop.eup %4285 }
0x161c   :  { %v4288_v34 = vpop.eup %4287  ;;  %v3151_v50 = vmul.f32 %v4286_v7, %v5066_v0  ;;  %v3198_v0 = vld [vmem:[%s5445_s3 + $0x18] sm:$0xff] }
0x161d   :  { %v3150_v29 = vmul.f32 %v4288_v34, %v5056_v8  ;;  %v3199_v8 = vld [vmem:[%s5445_s3 + $0x28] sm:$0xff] }
0x16cd   :  { %v3813_v35 = vpop.f32.mrb[36].mxu1 }
0x16ce   :  { %v3109_v51 = vmul.f32 %v3813_v35, %v3799_v62  ;;  %v3089_v37 = vpop.f32.mrb[37].mxu1  ;;  %v3995_v62 = vpack.c.bf16 %v3198_v0, %v3197_v44 }
0x16cf   :  { %v3108_v10 = vmul.f32 %v3089_v37, %v2992_v25  ;;  %v3200_v25 = vld [vmem:[%s5445_s3 + $0x38] sm:$0xff] }
0x16d0   :  { %v3121_v59 = vadd.f32 %v3117_v2, %v3109_v51  ;;  %3996 = vmatprep.subr.bf16.mxu0 %v3995_v62 }
0x16d1   :  { %v3120_v60 = vadd.f32 %v3116_v53, %v3108_v10  ;;  %3998 = vmatpush3.bf16.msra.mxu0 %v3995_v62 }
0x16d2   :  { %v5372_v20 = vmul.f32 %v3149_v26, %v3121_v59 }
0x16d3   :  { %v5374_v22 = vmul.f32 %v3148_v63, %v3120_v60 }
0x16d4   :  { %v3157_v4 = vmul.f32 %v5372_v20, %v5372_v20 }
0x16d5   :  { %v3156_v18 = vmul.f32 %v5374_v22, %v5374_v22 }
0x16d6   :  { %v3163_v42 = vsel %vm1910_vm9, %v3157_v4, 0.0  ;;  %v3816_v16 = vpop.f32.mrb[38].mxu1 }
0x16d7   :  { %3164 = vadd.xlane.f32.xlu0 %v3163_v42  ;;  %v3160_v48 = vsel %vm1910_vm9, %v3156_v18, 0.0  ;;  %v3111_v33 = vmul.f32 %v3816_v16, %v3802_v27  ;;  %v3099_v38 = vpop.f32.mrb[39].mxu1  ;;  %v3999_v27 = vpack.c.bf16 %v3200_v25, %v3199_v8 }
0x16d8   :  { %3161 = vadd.xlane.f32.xlu1 %v3160_v48  ;;  %v3110_v23 = vmul.f32 %v3099_v38, %v3002_v58  ;;  %v3201_v58 = vld [vmem:[%s5445_s3 + $0x48] sm:$0xff] }
0x16d9   :  { %v3123_v47 = vadd.f32 %v3119_v17, %v3111_v33  ;;  %4000 = vmatprep.subr.bf16.mxu0 %v3999_v27  ;;  %v4003_v43 = vpack.c.bf16 %v3202_v3, %v3201_v58 }
0x16da   :  { %v3122_v55 = vadd.f32 %v3118_v19, %v3110_v23  ;;  %4002 = vmatpush3.bf16.msra.mxu0 %v3999_v27 }
0x16db   :  { %v3155_v31 = vmul.f32 %v3151_v50, %v3123_v47  ;;  %4004 = vmatprep.subr.bf16.mxu0 %v4003_v43 }
0x16dc   :  { %v3154_v32 = vmul.f32 %v3150_v29, %v3122_v55 }
0x16dd   :  { %v3159_v40 = vmul.f32 %v3155_v31, %v3155_v31 }
0x16de   :  { %v3158_v28 = vmul.f32 %v3154_v32, %v3154_v32  ;;  %4006 = vmatpush3.bf16.msra.mxu0 %v4003_v43 }
0x16df   :  { %v3169_v52 = vsel %vm1910_vm9, %v3159_v40, 0.0  ;;  %4008 = vmatprep.subr.bf16.mxu0 %v4007_v14 }
0x16e0   :  { %v3166_v15 = vsel %vm1910_vm9, %v3158_v28, 0.0 }
0x16e1   :  { %3167 = vadd.xlane.f32.xlu0 %v3166_v15 }
0x16e2   :  { %4010 = vmatpush3.bf16.msra.mxu0 %v4007_v14 }
0x16e5   :  { %3170 = vadd.xlane.f32.xlu0 %v3169_v52 }
0x1764   :  { %v3165_v5 = vpop.xlane.xlu0 %3164 }
0x1765   :  { %v3174_v30 = vmul.f32 0.015625, %v3165_v5  ;;  %v3162_v57 = vpop.xlane.xlu1 %3161 }
0x1766   :  { %v3173_v49 = vmul.f32 0.015625, %v3162_v57 }
0x1767   :  { %v3178_v13 = vadd.f32 1e-05, %v3174_v30 }
0x1768   :  { %v3177_v54 = vadd.f32 1e-05, %v3173_v49 }
0x1769   :  { %4289 = vrsqrt.f32 %v3178_v13 }
0x176a   :  { %4291 = vrsqrt.f32 %v3177_v54 }
0x176e   :  { %v3168_v21 = vpop.xlane.xlu0 %3167 }
0x176f   :  { %v3175_v24 = vmul.f32 0.015625, %v3168_v21 }
0x1771   :  { %v3179_v12 = vadd.f32 1e-05, %v3175_v24 }
0x1772   :  { %v3171_v6 = vpop.xlane.xlu0 %3170 }
0x1773   :  { %v4290_v46 = vpop.eup %4289  ;;  %4293 = vrsqrt.f32 %v3179_v12  ;;  %v3176_v61 = vmul.f32 0.015625, %v3171_v6 }
0x1774   :  { %v4292_v56 = vpop.eup %4291  ;;  %v3186_v35 = vmul.f32 %v4290_v46, %v5372_v20 }
0x1775   :  { %v3180_v2 = vadd.f32 1e-05, %v3176_v61  ;;  %v3185_v51 = vmul.f32 %v4292_v56, %v5374_v22 }
0x1776   :  { %v3194_v53 = vmul.f32 %v3432_v41, %v3186_v35 }
0x1777   :  { %4295 = vrsqrt.f32 %v3180_v2  ;;  %v3193_v37 = vmul.f32 %v3432_v41, %v3185_v51 }
0x1779   :  { %3833 = vmatprep.mubr.msk.f32.mxu0 %vm1910_vm9, %v3193_v37 }
0x177a   :  { %3834 = vmatmul.mubr.msk.f32.vlgmr.msra.gmra.mrb[36].mxu0 %vm1910_vm9, %v3194_v53 }
0x177d   :  { %v4294_v10 = vpop.eup %4293 }
0x177e   :  { %v3187_v59 = vmul.f32 %v4294_v10, %v3154_v32 }
0x1780   :  { %v3195_v26 = vmul.f32 %v3432_v41, %v3187_v59 }
0x1781   :  { %v4296_v60 = vpop.eup %4295 }
0x1782   :  { %3836 = vmatprep.mubr.msk.f32.mxu0 %vm1910_vm9, %v3195_v26  ;;  %v3188_v63 = vmul.f32 %v4296_v60, %v3155_v31 }
0x1784   :  { %v3196_v20 = vmul.f32 %v3432_v41, %v3188_v63 }
0x1786   :  { %3837 = vmatmul.mubr.msk.f32.gmra.mrb[38].mxu0 %vm1910_vm9, %v3196_v20 }
0x184d   :  { %v3835_v4 = vpop.f32.mrb[36].mxu0 }
0x184e   :  { %v3303_v22 = vadd.f32 %v3835_v4, %v4942_v9  ;;  %v3283_v18 = vpop.f32.mrb[37].mxu0 }
0x184f   :  { %v3302_v7 = vadd.f32 %v3283_v18, %v4944_v11 }
0x1850   :  { %3307 = vst.msk [vmem:[#allocation2 + $0x8] sm:$0xff] %vm54_vm0, %v3303_v22 }
0x1851   :  { %3306 = vst.msk [vmem:[#allocation2] sm:$0xff] %vm54_vm0, %v3302_v7 }
0x1859   :  { %v3838_v42 = vpop.f32.mrb[38].mxu0 }
0x185a   :  { %v3305_v16 = vadd.f32 %v3838_v42, %v4954_v36  ;;  %v3293_v34 = vpop.f32.mrb[39].mxu0 }
0x185b   :  { %v3304_v17 = vadd.f32 %v3293_v34, %v4956_v39 }
0x185c   :  { %3309 = vst.msk [vmem:[#allocation2 + $0x18] sm:$0xff] %vm54_vm0, %v3305_v16 }
0x185d   :  { %3308 = vst.msk [vmem:[#allocation2 + $0x10] sm:$0xff] %vm54_vm0, %v3304_v17 }
0x185e   :  { %4312 = shalt.err (!%p4309_p4)
}
0x185f   :  { %s4313_s19 = scalar_lea.hbm %s5446_s4, 512 }
0x1860   :  { %p4314_p5 = scmp.ne.s32.totalorder %s5446_s4, %s4313_s19  ;;  %p4317_p6 = scmp.lt.u32.totalorder %s4313_s19, %s5446_s4 }
0x1862   :  { %p4319_p7 = pnand %p4317_p6, %p4314_p5 }
0x1864   :  { %4322 = shalt.err (!%p4319_p7)
}
0x1865   :  { %s4346_s23 = smov 128  }
0x1866   :  { %3321 = dma.vmem_to_hbm [thread:$0]  %s3316_s13, 512, %s5446_s4, [#allocation3], %s4346_s23, %s4346_s23, %s4341_s26  }
0x1867   :  { %4323 = dma.done.wait [#allocation3], 512  }
0x1868   :  { %4324 = vsyncadd [#allocation3], 4294966784 }
0x1869   :  { %3325 = vsyncpa [#allocation3], 1 }

</bundles_post_ra>
